<compile_context>
chip_gen: v6e
topology: v6e:2x2x1
jax: 0.10.0
libtpu: 0.0.40
codegen_flags: <defaults>
</compile_context>

<pallas_src>
import jax
import jax.numpy as jnp
from jax.experimental import pallas as pl
from jax.experimental.pallas import tpu as pltpu

VOCAB = 2000
EMB = 50
EMB_P = 64        # K-padded embedding width (multiple of 8)
HID = 64          # true hidden size
HP = 128          # per-gate padded width (one full 128-lane group)
FC_OUT = 256


def lstm_fc_kernel(tok_ref, emb_hbm, wih_ref, whh_ref, b_ref, fcw_ref, fcb_ref,
                   out_ref, x_s, xg_s, gather_sem):
    """tok_ref:  SMEM (B, T) int32 token ids
    emb_hbm: HBM  (VOCAB, EMB_P) f32 padded embedding table (pl.ANY)
    wih_ref: VMEM (EMB_P, 4*HP) gate-padded input weights
    whh_ref: VMEM (HP, 4*HP)    gate-padded recurrent weights
    b_ref:   VMEM (1, 4*HP)     gate-padded combined bias (b_ih + b_hh)
    fcw_ref: VMEM (HP, FC_OUT)  row-padded FC weights
    fcb_ref: VMEM (1, FC_OUT)
    out_ref: VMEM (bp, FC_OUT)
    x_s:     VMEM scratch (T*bp, EMB_P) time-major gathered embeddings
    xg_s:    VMEM scratch (T*bp, 4*HP)  hoisted input projection
    gather_sem: DMA sems (T*B,)
    """
    B, T = tok_ref.shape
    bp = out_ref.shape[0]
    embp = x_s.shape[1]

    # --- (0) zero the pad-batch rows of the gather scratch (disjoint from the
    # DMA destinations, so no ordering hazard).  Pad rows never contaminate
    # real rows (all ops are row-independent) but keep them deterministic.
    if bp > B:
        pad_zeros = jnp.zeros((bp - B, embp), jnp.float32)
        for t in range(T):
            x_s[pl.ds(t * bp + B, bp - B), :] = pad_zeros

    # --- (1) Fused embedding gather: one tiny async copy per (t, b) token,
    # all issued before any wait so the HBM latencies overlap.
    copies = []
    for t in range(T):
        for b in range(B):
            tok = tok_ref[b, t]
            cp = pltpu.make_async_copy(
                emb_hbm.at[pl.ds(tok, 1), :],
                x_s.at[pl.ds(t * bp + b, 1), :],
                gather_sem.at[t * B + b],
            )
            cp.start()
            copies.append(cp)
    for cp in copies:
        cp.wait()

    # --- (2) Input projection for ALL timesteps as one MXU matmul, hoisted
    # off the serial recurrence; bias folded in.  Stored to VMEM scratch so it
    # is not held live in vregs across the whole unrolled loop.
    xg_s[...] = (
        jnp.dot(x_s[...], wih_ref[...], preferred_element_type=jnp.float32)
        + b_ref[...]
    )

    # --- (3) Serial recurrence, fully unrolled (T tiny & static).  Per-step
    # operands are re-read from refs/scratch so the live vreg set stays small;
    # only h @ W_hh sits on the critical path.  Gate slices are whole
    # (8, 128) vregs (lane-aligned) and bp=8 rows (sublane-aligned).
    h = jnp.zeros((bp, HP), jnp.float32)
    c = jnp.zeros((bp, HP), jnp.float32)
    for t in range(T):
        gates = xg_s[pl.ds(t * bp, bp), :] + jnp.dot(
            h, whh_ref[...], preferred_element_type=jnp.float32)   # (bp, 4*HP)
        i_g = jax.nn.sigmoid(gates[:, 0 * HP:1 * HP])
        f_g = jax.nn.sigmoid(gates[:, 1 * HP:2 * HP])
        g_g = jnp.tanh(gates[:, 2 * HP:3 * HP])
        o_g = jax.nn.sigmoid(gates[:, 3 * HP:4 * HP])
        c = f_g * c + i_g * g_g
        h = o_g * jnp.tanh(c)

    # --- (4) Fused final Linear + ReLU on the last hidden state.
    # Dropout(0.5) is identity in eval mode.
    y = jnp.dot(h, fcw_ref[...], preferred_element_type=jnp.float32) + fcb_ref[...]
    out_ref[...] = jnp.maximum(y, 0.0)


def _gate_pad_cols(m):
    """(..., 4*HID) -> (..., 4*HP): each gate's 64 cols placed in its own
    full 128-lane group, zero-padded."""
    blocks = jnp.split(m, 4, axis=-1)
    pad = [(0, 0)] * (m.ndim - 1) + [(0, HP - HID)]
    return jnp.concatenate([jnp.pad(b, pad) for b in blocks], axis=-1)


def prepare_padded_weights(params):
    """One-time (cached) weight prep: all padding/transposes happen here, not
    per forward call."""
    emb_pad = jnp.pad(params["embedding"].astype(jnp.float32),
                      ((0, 0), (0, EMB_P - EMB)))                        # (VOCAB, EMB_P)
    wih_pad = jnp.pad(_gate_pad_cols(params["w_ih"].T),
                      ((0, EMB_P - EMB), (0, 0)))                        # (EMB_P, 4*HP)
    whh_pad = jnp.pad(_gate_pad_cols(params["w_hh"].T),
                      ((0, HP - HID), (0, 0)))                           # (HP, 4*HP)
    b_pad = _gate_pad_cols((params["b_ih"] + params["b_hh"]).reshape(1, 4 * HID))
    fcw_pad = jnp.pad(params["fc_w"].T, ((0, HP - HID), (0, 0)))         # (HP, FC_OUT)
    fcb = params["fc_b"].reshape(1, FC_OUT)
    return {
        "emb": jax.device_put(emb_pad),
        "wih": jax.device_put(wih_pad),
        "whh": jax.device_put(whh_pad),
        "b": jax.device_put(b_pad),
        "fcw": jax.device_put(fcw_pad),
        "fcb": jax.device_put(fcb),
    }


def lstm_header_forward(tokens, padded):
    """tokens: (B, T) int32 in [0, VOCAB). Returns (B, FC_OUT) float32."""
    tokens = tokens.astype(jnp.int32)
    B, T = tokens.shape
    bp = max(8, ((B + 7) // 8) * 8)        # pad batch to the 8-sublane tile

    out = pl.pallas_call(
        lstm_fc_kernel,
        out_shape=jax.ShapeDtypeStruct((bp, FC_OUT), jnp.float32),
        in_specs=[
            pl.BlockSpec(memory_space=pltpu.MemorySpace.SMEM),   # token ids
            pl.BlockSpec(memory_space=pl.ANY),                   # embedding table (HBM)
            pl.BlockSpec(memory_space=pltpu.MemorySpace.VMEM),   # W_ih (padded)
            pl.BlockSpec(memory_space=pltpu.MemorySpace.VMEM),   # W_hh (padded)
            pl.BlockSpec(memory_space=pltpu.MemorySpace.VMEM),   # bias (padded)
            pl.BlockSpec(memory_space=pltpu.MemorySpace.VMEM),   # FC W (padded)
            pl.BlockSpec(memory_space=pltpu.MemorySpace.VMEM),   # FC b
        ],
        out_specs=pl.BlockSpec(memory_space=pltpu.MemorySpace.VMEM),
        scratch_shapes=[
            pltpu.VMEM((T * bp, EMB_P), jnp.float32),            # gathered x
            pltpu.VMEM((T * bp, 4 * HP), jnp.float32),           # input projection
            pltpu.SemaphoreType.DMA((T * B,)),                   # gather sems
        ],
    )(tokens, padded["emb"], padded["wih"], padded["whh"], padded["b"],
      padded["fcw"], padded["fcb"])
    return out[:B]


def init_params(key):
    ks = jax.random.split(key, 7)
    scale = 0.1
    return {
        "embedding": scale * jax.random.normal(ks[0], (VOCAB, EMB), jnp.float32),
        "w_ih": scale * jax.random.normal(ks[1], (4 * HID, EMB), jnp.float32),
        "w_hh": scale * jax.random.normal(ks[2], (4 * HID, HID), jnp.float32),
        "b_ih": scale * jax.random.normal(ks[3], (4 * HID,), jnp.float32),
        "b_hh": scale * jax.random.normal(ks[4], (4 * HID,), jnp.float32),
        "fc_w": scale * jax.random.normal(ks[5], (FC_OUT, HID), jnp.float32),
        "fc_b": scale * jax.random.normal(ks[6], (FC_OUT,), jnp.float32),
    }


def _reference(tokens, params):
    """Pure-JAX reference for a sanity check."""
    emb = jnp.take(params["embedding"], tokens, axis=0)  # (B, T, EMB)
    B, T, _ = emb.shape
    h = jnp.zeros((B, HID), jnp.float32)
    c = jnp.zeros((B, HID), jnp.float32)

    def step(carry, x_t):
        h, c = carry
        gates = (x_t @ params["w_ih"].T + params["b_ih"]
                 + h @ params["w_hh"].T + params["b_hh"])
        i = jax.nn.sigmoid(gates[:, 0 * HID:1 * HID])
        f = jax.nn.sigmoid(gates[:, 1 * HID:2 * HID])
        g = jnp.tanh(gates[:, 2 * HID:3 * HID])
        o = jax.nn.sigmoid(gates[:, 3 * HID:4 * HID])
        c = f * c + i * g
        h = o * jnp.tanh(c)
        return (h, c), None

    (h, c), _ = jax.lax.scan(step, (h, c), jnp.transpose(emb, (1, 0, 2)))
    y = h @ params["fc_w"].T + params["fc_b"]
    return jnp.maximum(y, 0.0)
    # TODO(synk): Dropout(0.5) is modeled as identity (eval mode); training-mode
    # stochastic masking is not reproduced.


if __name__ == "__main__":
    key = jax.random.PRNGKey(0)
    pkey, tkey = jax.random.split(key)
    params = init_params(pkey)
    padded = prepare_padded_weights(params)   # one-time cached weight prep

    B, T = 2, 8
    tokens = jax.random.randint(tkey, (B, T), 0, VOCAB, dtype=jnp.int32)

    out = jax.block_until_ready(lstm_header_forward(tokens, padded))
    ref = _reference(tokens, params)
    assert out.shape == (B, FC_OUT)
    assert jnp.allclose(out, ref, atol=1e-4, rtol=1e-4)

    print("KERNEL_OK")
</pallas_src>

<mosaic_0001>
module attributes {stable_mosaic.version = 11 : i64} {
  func.func @lstm_fc_kernel(%arg0: memref<2x8xi32, #tpu.memory_space<smem>>, %arg1: memref<2000x64xf32, #tpu.memory_space<any>>, %arg2: memref<64x512xf32, #tpu.memory_space<vmem>>, %arg3: memref<128x512xf32, #tpu.memory_space<vmem>>, %arg4: memref<1x512xf32, #tpu.memory_space<vmem>>, %arg5: memref<128x256xf32, #tpu.memory_space<vmem>>, %arg6: memref<1x256xf32, #tpu.memory_space<vmem>>, %arg7: memref<8x256xf32, #tpu.memory_space<vmem>>, %arg8: memref<64x64xf32, #tpu.memory_space<vmem>>, %arg9: memref<64x512xf32, #tpu.memory_space<vmem>>, %arg10: memref<16x!tpu.dma_semaphore, #tpu.memory_space<semaphore_mem>>) attributes {dimension_semantics = [], scalar_prefetch = 0 : i64, scratch_operands = 3 : i64, tpu.core_type = #tpu.core_type<tc>} {
    %cst = arith.constant 0.000000e+00 : f32
    %0 = vector.broadcast %cst : f32 to vector<6x64xf32>
    %c2 = arith.constant 2 : index
    %c0 = arith.constant 0 : index
    %1 = vector.load %arg8[%c2, %c0] : memref<64x64xf32, #tpu.memory_space<vmem>>, vector<6x64xf32>
    tpu.vector_store %arg8[%c2, %c0], %0 {strides = array<i32>} : memref<64x64xf32, #tpu.memory_space<vmem>>, vector<6x64xf32>,
    %c10 = arith.constant 10 : index
    %c0_0 = arith.constant 0 : index
    %2 = vector.load %arg8[%c10, %c0_0] : memref<64x64xf32, #tpu.memory_space<vmem>>, vector<6x64xf32>
    tpu.vector_store %arg8[%c10, %c0_0], %0 {strides = array<i32>} : memref<64x64xf32, #tpu.memory_space<vmem>>, vector<6x64xf32>,
    %c18 = arith.constant 18 : index
    %c0_1 = arith.constant 0 : index
    %3 = vector.load %arg8[%c18, %c0_1] : memref<64x64xf32, #tpu.memory_space<vmem>>, vector<6x64xf32>
    tpu.vector_store %arg8[%c18, %c0_1], %0 {strides = array<i32>} : memref<64x64xf32, #tpu.memory_space<vmem>>, vector<6x64xf32>,
    %c26 = arith.constant 26 : index
    %c0_2 = arith.constant 0 : index
    %4 = vector.load %arg8[%c26, %c0_2] : memref<64x64xf32, #tpu.memory_space<vmem>>, vector<6x64xf32>
    tpu.vector_store %arg8[%c26, %c0_2], %0 {strides = array<i32>} : memref<64x64xf32, #tpu.memory_space<vmem>>, vector<6x64xf32>,
    %c34 = arith.constant 34 : index
    %c0_3 = arith.constant 0 : index
    %5 = vector.load %arg8[%c34, %c0_3] : memref<64x64xf32, #tpu.memory_space<vmem>>, vector<6x64xf32>
    tpu.vector_store %arg8[%c34, %c0_3], %0 {strides = array<i32>} : memref<64x64xf32, #tpu.memory_space<vmem>>, vector<6x64xf32>,
    %c42 = arith.constant 42 : index
    %c0_4 = arith.constant 0 : index
    %6 = vector.load %arg8[%c42, %c0_4] : memref<64x64xf32, #tpu.memory_space<vmem>>, vector<6x64xf32>
    tpu.vector_store %arg8[%c42, %c0_4], %0 {strides = array<i32>} : memref<64x64xf32, #tpu.memory_space<vmem>>, vector<6x64xf32>,
    %c50 = arith.constant 50 : index
    %c0_5 = arith.constant 0 : index
    %7 = vector.load %arg8[%c50, %c0_5] : memref<64x64xf32, #tpu.memory_space<vmem>>, vector<6x64xf32>
    tpu.vector_store %arg8[%c50, %c0_5], %0 {strides = array<i32>} : memref<64x64xf32, #tpu.memory_space<vmem>>, vector<6x64xf32>,
    %c58 = arith.constant 58 : index
    %c0_6 = arith.constant 0 : index
    %8 = vector.load %arg8[%c58, %c0_6] : memref<64x64xf32, #tpu.memory_space<vmem>>, vector<6x64xf32>
    tpu.vector_store %arg8[%c58, %c0_6], %0 {strides = array<i32>} : memref<64x64xf32, #tpu.memory_space<vmem>>, vector<6x64xf32>,
    %c0_7 = arith.constant 0 : index
    %c0_8 = arith.constant 0 : index
    %9 = memref.load %arg0[%c0_7, %c0_8] : memref<2x8xi32, #tpu.memory_space<smem>>
    %c0_i32 = arith.constant 0 : i32
    %c0_i32_9 = arith.constant 0 : i32
    %10 = tpu.memref_slice %arg1[%9, %c0_i32_9] : memref<2000x64xf32, #tpu.memory_space<any>> -> memref<1x64xf32, #tpu.memory_space<any>>
    %c0_i32_10 = arith.constant 0 : i32
    %c0_i32_11 = arith.constant 0 : i32
    %11 = tpu.memref_slice %arg8[%c0_i32_10, %c0_i32_11] : memref<64x64xf32, #tpu.memory_space<vmem>> -> memref<1x64xf32, #tpu.memory_space<vmem>>
    %12 = tpu.memref_slice %arg10[%c0_i32] : memref<16x!tpu.dma_semaphore, #tpu.memory_space<semaphore_mem>> -> memref<1x!tpu.dma_semaphore, #tpu.memory_space<semaphore_mem>>
    %13 = tpu.memref_squeeze %12 : memref<1x!tpu.dma_semaphore, #tpu.memory_space<semaphore_mem>> -> memref<!tpu.dma_semaphore, #tpu.memory_space<semaphore_mem>>
    tpu.enqueue_dma source(%10 : memref<1x64xf32, #tpu.memory_space<any>>) target(%11 : memref<1x64xf32, #tpu.memory_space<vmem>>) target_semaphore(%13 : memref<!tpu.dma_semaphore, #tpu.memory_space<semaphore_mem>>)
    %c1 = arith.constant 1 : index
    %c0_12 = arith.constant 0 : index
    %14 = memref.load %arg0[%c1, %c0_12] : memref<2x8xi32, #tpu.memory_space<smem>>
    %c1_i32 = arith.constant 1 : i32
    %c0_i32_13 = arith.constant 0 : i32
    %15 = tpu.memref_slice %arg1[%14, %c0_i32_13] : memref<2000x64xf32, #tpu.memory_space<any>> -> memref<1x64xf32, #tpu.memory_space<any>>
    %c1_i32_14 = arith.constant 1 : i32
    %c0_i32_15 = arith.constant 0 : i32
    %16 = tpu.memref_slice %arg8[%c1_i32_14, %c0_i32_15] : memref<64x64xf32, #tpu.memory_space<vmem>> -> memref<1x64xf32, #tpu.memory_space<vmem>>
    %17 = tpu.memref_slice %arg10[%c1_i32] : memref<16x!tpu.dma_semaphore, #tpu.memory_space<semaphore_mem>> -> memref<1x!tpu.dma_semaphore, #tpu.memory_space<semaphore_mem>>
    %18 = tpu.memref_squeeze %17 : memref<1x!tpu.dma_semaphore, #tpu.memory_space<semaphore_mem>> -> memref<!tpu.dma_semaphore, #tpu.memory_space<semaphore_mem>>
    tpu.enqueue_dma source(%15 : memref<1x64xf32, #tpu.memory_space<any>>) target(%16 : memref<1x64xf32, #tpu.memory_space<vmem>>) target_semaphore(%18 : memref<!tpu.dma_semaphore, #tpu.memory_space<semaphore_mem>>)
    %c0_16 = arith.constant 0 : index
    %c1_17 = arith.constant 1 : index
    %19 = memref.load %arg0[%c0_16, %c1_17] : memref<2x8xi32, #tpu.memory_space<smem>>
    %c2_i32 = arith.constant 2 : i32
    %c0_i32_18 = arith.constant 0 : i32
    %20 = tpu.memref_slice %arg1[%19, %c0_i32_18] : memref<2000x64xf32, #tpu.memory_space<any>> -> memref<1x64xf32, #tpu.memory_space<any>>
    %c8_i32 = arith.constant 8 : i32
    %c0_i32_19 = arith.constant 0 : i32
    %21 = tpu.memref_slice %arg8[%c8_i32, %c0_i32_19] : memref<64x64xf32, #tpu.memory_space<vmem>> -> memref<1x64xf32, #tpu.memory_space<vmem>>
    %22 = tpu.memref_slice %arg10[%c2_i32] : memref<16x!tpu.dma_semaphore, #tpu.memory_space<semaphore_mem>> -> memref<1x!tpu.dma_semaphore, #tpu.memory_space<semaphore_mem>>
    %23 = tpu.memref_squeeze %22 : memref<1x!tpu.dma_semaphore, #tpu.memory_space<semaphore_mem>> -> memref<!tpu.dma_semaphore, #tpu.memory_space<semaphore_mem>>
    tpu.enqueue_dma source(%20 : memref<1x64xf32, #tpu.memory_space<any>>) target(%21 : memref<1x64xf32, #tpu.memory_space<vmem>>) target_semaphore(%23 : memref<!tpu.dma_semaphore, #tpu.memory_space<semaphore_mem>>)
    %c1_20 = arith.constant 1 : index
    %c1_21 = arith.constant 1 : index
    %24 = memref.load %arg0[%c1_20, %c1_21] : memref<2x8xi32, #tpu.memory_space<smem>>
    %c3_i32 = arith.constant 3 : i32
    %c0_i32_22 = arith.constant 0 : i32
    %25 = tpu.memref_slice %arg1[%24, %c0_i32_22] : memref<2000x64xf32, #tpu.memory_space<any>> -> memref<1x64xf32, #tpu.memory_space<any>>
    %c9_i32 = arith.constant 9 : i32
    %c0_i32_23 = arith.constant 0 : i32
    %26 = tpu.memref_slice %arg8[%c9_i32, %c0_i32_23] : memref<64x64xf32, #tpu.memory_space<vmem>> -> memref<1x64xf32, #tpu.memory_space<vmem>>
    %27 = tpu.memref_slice %arg10[%c3_i32] : memref<16x!tpu.dma_semaphore, #tpu.memory_space<semaphore_mem>> -> memref<1x!tpu.dma_semaphore, #tpu.memory_space<semaphore_mem>>
    %28 = tpu.memref_squeeze %27 : memref<1x!tpu.dma_semaphore, #tpu.memory_space<semaphore_mem>> -> memref<!tpu.dma_semaphore, #tpu.memory_space<semaphore_mem>>
    tpu.enqueue_dma source(%25 : memref<1x64xf32, #tpu.memory_space<any>>) target(%26 : memref<1x64xf32, #tpu.memory_space<vmem>>) target_semaphore(%28 : memref<!tpu.dma_semaphore, #tpu.memory_space<semaphore_mem>>)
    %c0_24 = arith.constant 0 : index
    %c2_25 = arith.constant 2 : index
    %29 = memref.load %arg0[%c0_24, %c2_25] : memref<2x8xi32, #tpu.memory_space<smem>>
    %c4_i32 = arith.constant 4 : i32
    %c0_i32_26 = arith.constant 0 : i32
    %30 = tpu.memref_slice %arg1[%29, %c0_i32_26] : memref<2000x64xf32, #tpu.memory_space<any>> -> memref<1x64xf32, #tpu.memory_space<any>>
    %c16_i32 = arith.constant 16 : i32
    %c0_i32_27 = arith.constant 0 : i32
    %31 = tpu.memref_slice %arg8[%c16_i32, %c0_i32_27] : memref<64x64xf32, #tpu.memory_space<vmem>> -> memref<1x64xf32, #tpu.memory_space<vmem>>
    %32 = tpu.memref_slice %arg10[%c4_i32] : memref<16x!tpu.dma_semaphore, #tpu.memory_space<semaphore_mem>> -> memref<1x!tpu.dma_semaphore, #tpu.memory_space<semaphore_mem>>
    %33 = tpu.memref_squeeze %32 : memref<1x!tpu.dma_semaphore, #tpu.memory_space<semaphore_mem>> -> memref<!tpu.dma_semaphore, #tpu.memory_space<semaphore_mem>>
    tpu.enqueue_dma source(%30 : memref<1x64xf32, #tpu.memory_space<any>>) target(%31 : memref<1x64xf32, #tpu.memory_space<vmem>>) target_semaphore(%33 : memref<!tpu.dma_semaphore, #tpu.memory_space<semaphore_mem>>)
    %c1_28 = arith.constant 1 : index
    %c2_29 = arith.constant 2 : index
    %34 = memref.load %arg0[%c1_28, %c2_29] : memref<2x8xi32, #tpu.memory_space<smem>>
    %c5_i32 = arith.constant 5 : i32
    %c0_i32_30 = arith.constant 0 : i32
    %35 = tpu.memref_slice %arg1[%34, %c0_i32_30] : memref<2000x64xf32, #tpu.memory_space<any>> -> memref<1x64xf32, #tpu.memory_space<any>>
    %c17_i32 = arith.constant 17 : i32
    %c0_i32_31 = arith.constant 0 : i32
    %36 = tpu.memref_slice %arg8[%c17_i32, %c0_i32_31] : memref<64x64xf32, #tpu.memory_space<vmem>> -> memref<1x64xf32, #tpu.memory_space<vmem>>
    %37 = tpu.memref_slice %arg10[%c5_i32] : memref<16x!tpu.dma_semaphore, #tpu.memory_space<semaphore_mem>> -> memref<1x!tpu.dma_semaphore, #tpu.memory_space<semaphore_mem>>
    %38 = tpu.memref_squeeze %37 : memref<1x!tpu.dma_semaphore, #tpu.memory_space<semaphore_mem>> -> memref<!tpu.dma_semaphore, #tpu.memory_space<semaphore_mem>>
    tpu.enqueue_dma source(%35 : memref<1x64xf32, #tpu.memory_space<any>>) target(%36 : memref<1x64xf32, #tpu.memory_space<vmem>>) target_semaphore(%38 : memref<!tpu.dma_semaphore, #tpu.memory_space<semaphore_mem>>)
    %c0_32 = arith.constant 0 : index
    %c3 = arith.constant 3 : index
    %39 = memref.load %arg0[%c0_32, %c3] : memref<2x8xi32, #tpu.memory_space<smem>>
    %c6_i32 = arith.constant 6 : i32
    %c0_i32_33 = arith.constant 0 : i32
    %40 = tpu.memref_slice %arg1[%39, %c0_i32_33] : memref<2000x64xf32, #tpu.memory_space<any>> -> memref<1x64xf32, #tpu.memory_space<any>>
    %c24_i32 = arith.constant 24 : i32
    %c0_i32_34 = arith.constant 0 : i32
    %41 = tpu.memref_slice %arg8[%c24_i32, %c0_i32_34] : memref<64x64xf32, #tpu.memory_space<vmem>> -> memref<1x64xf32, #tpu.memory_space<vmem>>
    %42 = tpu.memref_slice %arg10[%c6_i32] : memref<16x!tpu.dma_semaphore, #tpu.memory_space<semaphore_mem>> -> memref<1x!tpu.dma_semaphore, #tpu.memory_space<semaphore_mem>>
    %43 = tpu.memref_squeeze %42 : memref<1x!tpu.dma_semaphore, #tpu.memory_space<semaphore_mem>> -> memref<!tpu.dma_semaphore, #tpu.memory_space<semaphore_mem>>
    tpu.enqueue_dma source(%40 : memref<1x64xf32, #tpu.memory_space<any>>) target(%41 : memref<1x64xf32, #tpu.memory_space<vmem>>) target_semaphore(%43 : memref<!tpu.dma_semaphore, #tpu.memory_space<semaphore_mem>>)
    %c1_35 = arith.constant 1 : index
    %c3_36 = arith.constant 3 : index
    %44 = memref.load %arg0[%c1_35, %c3_36] : memref<2x8xi32, #tpu.memory_space<smem>>
    %c7_i32 = arith.constant 7 : i32
    %c0_i32_37 = arith.constant 0 : i32
    %45 = tpu.memref_slice %arg1[%44, %c0_i32_37] : memref<2000x64xf32, #tpu.memory_space<any>> -> memref<1x64xf32, #tpu.memory_space<any>>
    %c25_i32 = arith.constant 25 : i32
    %c0_i32_38 = arith.constant 0 : i32
    %46 = tpu.memref_slice %arg8[%c25_i32, %c0_i32_38] : memref<64x64xf32, #tpu.memory_space<vmem>> -> memref<1x64xf32, #tpu.memory_space<vmem>>
    %47 = tpu.memref_slice %arg10[%c7_i32] : memref<16x!tpu.dma_semaphore, #tpu.memory_space<semaphore_mem>> -> memref<1x!tpu.dma_semaphore, #tpu.memory_space<semaphore_mem>>
    %48 = tpu.memref_squeeze %47 : memref<1x!tpu.dma_semaphore, #tpu.memory_space<semaphore_mem>> -> memref<!tpu.dma_semaphore, #tpu.memory_space<semaphore_mem>>
    tpu.enqueue_dma source(%45 : memref<1x64xf32, #tpu.memory_space<any>>) target(%46 : memref<1x64xf32, #tpu.memory_space<vmem>>) target_semaphore(%48 : memref<!tpu.dma_semaphore, #tpu.memory_space<semaphore_mem>>)
    %c0_39 = arith.constant 0 : index
    %c4 = arith.constant 4 : index
    %49 = memref.load %arg0[%c0_39, %c4] : memref<2x8xi32, #tpu.memory_space<smem>>
    %c8_i32_40 = arith.constant 8 : i32
    %c0_i32_41 = arith.constant 0 : i32
    %50 = tpu.memref_slice %arg1[%49, %c0_i32_41] : memref<2000x64xf32, #tpu.memory_space<any>> -> memref<1x64xf32, #tpu.memory_space<any>>
    %c32_i32 = arith.constant 32 : i32
    %c0_i32_42 = arith.constant 0 : i32
    %51 = tpu.memref_slice %arg8[%c32_i32, %c0_i32_42] : memref<64x64xf32, #tpu.memory_space<vmem>> -> memref<1x64xf32, #tpu.memory_space<vmem>>
    %52 = tpu.memref_slice %arg10[%c8_i32_40] : memref<16x!tpu.dma_semaphore, #tpu.memory_space<semaphore_mem>> -> memref<1x!tpu.dma_semaphore, #tpu.memory_space<semaphore_mem>>
    %53 = tpu.memref_squeeze %52 : memref<1x!tpu.dma_semaphore, #tpu.memory_space<semaphore_mem>> -> memref<!tpu.dma_semaphore, #tpu.memory_space<semaphore_mem>>
    tpu.enqueue_dma source(%50 : memref<1x64xf32, #tpu.memory_space<any>>) target(%51 : memref<1x64xf32, #tpu.memory_space<vmem>>) target_semaphore(%53 : memref<!tpu.dma_semaphore, #tpu.memory_space<semaphore_mem>>)
    %c1_43 = arith.constant 1 : index
    %c4_44 = arith.constant 4 : index
    %54 = memref.load %arg0[%c1_43, %c4_44] : memref<2x8xi32, #tpu.memory_space<smem>>
    %c9_i32_45 = arith.constant 9 : i32
    %c0_i32_46 = arith.constant 0 : i32
    %55 = tpu.memref_slice %arg1[%54, %c0_i32_46] : memref<2000x64xf32, #tpu.memory_space<any>> -> memref<1x64xf32, #tpu.memory_space<any>>
    %c33_i32 = arith.constant 33 : i32
    %c0_i32_47 = arith.constant 0 : i32
    %56 = tpu.memref_slice %arg8[%c33_i32, %c0_i32_47] : memref<64x64xf32, #tpu.memory_space<vmem>> -> memref<1x64xf32, #tpu.memory_space<vmem>>
    %57 = tpu.memref_slice %arg10[%c9_i32_45] : memref<16x!tpu.dma_semaphore, #tpu.memory_space<semaphore_mem>> -> memref<1x!tpu.dma_semaphore, #tpu.memory_space<semaphore_mem>>
    %58 = tpu.memref_squeeze %57 : memref<1x!tpu.dma_semaphore, #tpu.memory_space<semaphore_mem>> -> memref<!tpu.dma_semaphore, #tpu.memory_space<semaphore_mem>>
    tpu.enqueue_dma source(%55 : memref<1x64xf32, #tpu.memory_space<any>>) target(%56 : memref<1x64xf32, #tpu.memory_space<vmem>>) target_semaphore(%58 : memref<!tpu.dma_semaphore, #tpu.memory_space<semaphore_mem>>)
    %c0_48 = arith.constant 0 : index
    %c5 = arith.constant 5 : index
    %59 = memref.load %arg0[%c0_48, %c5] : memref<2x8xi32, #tpu.memory_space<smem>>
    %c10_i32 = arith.constant 10 : i32
    %c0_i32_49 = arith.constant 0 : i32
    %60 = tpu.memref_slice %arg1[%59, %c0_i32_49] : memref<2000x64xf32, #tpu.memory_space<any>> -> memref<1x64xf32, #tpu.memory_space<any>>
    %c40_i32 = arith.constant 40 : i32
    %c0_i32_50 = arith.constant 0 : i32
    %61 = tpu.memref_slice %arg8[%c40_i32, %c0_i32_50] : memref<64x64xf32, #tpu.memory_space<vmem>> -> memref<1x64xf32, #tpu.memory_space<vmem>>
    %62 = tpu.memref_slice %arg10[%c10_i32] : memref<16x!tpu.dma_semaphore, #tpu.memory_space<semaphore_mem>> -> memref<1x!tpu.dma_semaphore, #tpu.memory_space<semaphore_mem>>
    %63 = tpu.memref_squeeze %62 : memref<1x!tpu.dma_semaphore, #tpu.memory_space<semaphore_mem>> -> memref<!tpu.dma_semaphore, #tpu.memory_space<semaphore_mem>>
    tpu.enqueue_dma source(%60 : memref<1x64xf32, #tpu.memory_space<any>>) target(%61 : memref<1x64xf32, #tpu.memory_space<vmem>>) target_semaphore(%63 : memref<!tpu.dma_semaphore, #tpu.memory_space<semaphore_mem>>)
    %c1_51 = arith.constant 1 : index
    %c5_52 = arith.constant 5 : index
    %64 = memref.load %arg0[%c1_51, %c5_52] : memref<2x8xi32, #tpu.memory_space<smem>>
    %c11_i32 = arith.constant 11 : i32
    %c0_i32_53 = arith.constant 0 : i32
    %65 = tpu.memref_slice %arg1[%64, %c0_i32_53] : memref<2000x64xf32, #tpu.memory_space<any>> -> memref<1x64xf32, #tpu.memory_space<any>>
    %c41_i32 = arith.constant 41 : i32
    %c0_i32_54 = arith.constant 0 : i32
    %66 = tpu.memref_slice %arg8[%c41_i32, %c0_i32_54] : memref<64x64xf32, #tpu.memory_space<vmem>> -> memref<1x64xf32, #tpu.memory_space<vmem>>
    %67 = tpu.memref_slice %arg10[%c11_i32] : memref<16x!tpu.dma_semaphore, #tpu.memory_space<semaphore_mem>> -> memref<1x!tpu.dma_semaphore, #tpu.memory_space<semaphore_mem>>
    %68 = tpu.memref_squeeze %67 : memref<1x!tpu.dma_semaphore, #tpu.memory_space<semaphore_mem>> -> memref<!tpu.dma_semaphore, #tpu.memory_space<semaphore_mem>>
    tpu.enqueue_dma source(%65 : memref<1x64xf32, #tpu.memory_space<any>>) target(%66 : memref<1x64xf32, #tpu.memory_space<vmem>>) target_semaphore(%68 : memref<!tpu.dma_semaphore, #tpu.memory_space<semaphore_mem>>)
    %c0_55 = arith.constant 0 : index
    %c6 = arith.constant 6 : index
    %69 = memref.load %arg0[%c0_55, %c6] : memref<2x8xi32, #tpu.memory_space<smem>>
    %c12_i32 = arith.constant 12 : i32
    %c0_i32_56 = arith.constant 0 : i32
    %70 = tpu.memref_slice %arg1[%69, %c0_i32_56] : memref<2000x64xf32, #tpu.memory_space<any>> -> memref<1x64xf32, #tpu.memory_space<any>>
    %c48_i32 = arith.constant 48 : i32
    %c0_i32_57 = arith.constant 0 : i32
    %71 = tpu.memref_slice %arg8[%c48_i32, %c0_i32_57] : memref<64x64xf32, #tpu.memory_space<vmem>> -> memref<1x64xf32, #tpu.memory_space<vmem>>
    %72 = tpu.memref_slice %arg10[%c12_i32] : memref<16x!tpu.dma_semaphore, #tpu.memory_space<semaphore_mem>> -> memref<1x!tpu.dma_semaphore, #tpu.memory_space<semaphore_mem>>
    %73 = tpu.memref_squeeze %72 : memref<1x!tpu.dma_semaphore, #tpu.memory_space<semaphore_mem>> -> memref<!tpu.dma_semaphore, #tpu.memory_space<semaphore_mem>>
    tpu.enqueue_dma source(%70 : memref<1x64xf32, #tpu.memory_space<any>>) target(%71 : memref<1x64xf32, #tpu.memory_space<vmem>>) target_semaphore(%73 : memref<!tpu.dma_semaphore, #tpu.memory_space<semaphore_mem>>)
    %c1_58 = arith.constant 1 : index
    %c6_59 = arith.constant 6 : index
    %74 = memref.load %arg0[%c1_58, %c6_59] : memref<2x8xi32, #tpu.memory_space<smem>>
    %c13_i32 = arith.constant 13 : i32
    %c0_i32_60 = arith.constant 0 : i32
    %75 = tpu.memref_slice %arg1[%74, %c0_i32_60] : memref<2000x64xf32, #tpu.memory_space<any>> -> memref<1x64xf32, #tpu.memory_space<any>>
    %c49_i32 = arith.constant 49 : i32
    %c0_i32_61 = arith.constant 0 : i32
    %76 = tpu.memref_slice %arg8[%c49_i32, %c0_i32_61] : memref<64x64xf32, #tpu.memory_space<vmem>> -> memref<1x64xf32, #tpu.memory_space<vmem>>
    %77 = tpu.memref_slice %arg10[%c13_i32] : memref<16x!tpu.dma_semaphore, #tpu.memory_space<semaphore_mem>> -> memref<1x!tpu.dma_semaphore, #tpu.memory_space<semaphore_mem>>
    %78 = tpu.memref_squeeze %77 : memref<1x!tpu.dma_semaphore, #tpu.memory_space<semaphore_mem>> -> memref<!tpu.dma_semaphore, #tpu.memory_space<semaphore_mem>>
    tpu.enqueue_dma source(%75 : memref<1x64xf32, #tpu.memory_space<any>>) target(%76 : memref<1x64xf32, #tpu.memory_space<vmem>>) target_semaphore(%78 : memref<!tpu.dma_semaphore, #tpu.memory_space<semaphore_mem>>)
    %c0_62 = arith.constant 0 : index
    %c7 = arith.constant 7 : index
    %79 = memref.load %arg0[%c0_62, %c7] : memref<2x8xi32, #tpu.memory_space<smem>>
    %c14_i32 = arith.constant 14 : i32
    %c0_i32_63 = arith.constant 0 : i32
    %80 = tpu.memref_slice %arg1[%79, %c0_i32_63] : memref<2000x64xf32, #tpu.memory_space<any>> -> memref<1x64xf32, #tpu.memory_space<any>>
    %c56_i32 = arith.constant 56 : i32
    %c0_i32_64 = arith.constant 0 : i32
    %81 = tpu.memref_slice %arg8[%c56_i32, %c0_i32_64] : memref<64x64xf32, #tpu.memory_space<vmem>> -> memref<1x64xf32, #tpu.memory_space<vmem>>
    %82 = tpu.memref_slice %arg10[%c14_i32] : memref<16x!tpu.dma_semaphore, #tpu.memory_space<semaphore_mem>> -> memref<1x!tpu.dma_semaphore, #tpu.memory_space<semaphore_mem>>
    %83 = tpu.memref_squeeze %82 : memref<1x!tpu.dma_semaphore, #tpu.memory_space<semaphore_mem>> -> memref<!tpu.dma_semaphore, #tpu.memory_space<semaphore_mem>>
    tpu.enqueue_dma source(%80 : memref<1x64xf32, #tpu.memory_space<any>>) target(%81 : memref<1x64xf32, #tpu.memory_space<vmem>>) target_semaphore(%83 : memref<!tpu.dma_semaphore, #tpu.memory_space<semaphore_mem>>)
    %c1_65 = arith.constant 1 : index
    %c7_66 = arith.constant 7 : index
    %84 = memref.load %arg0[%c1_65, %c7_66] : memref<2x8xi32, #tpu.memory_space<smem>>
    %c15_i32 = arith.constant 15 : i32
    %c0_i32_67 = arith.constant 0 : i32
    %85 = tpu.memref_slice %arg1[%84, %c0_i32_67] : memref<2000x64xf32, #tpu.memory_space<any>> -> memref<1x64xf32, #tpu.memory_space<any>>
    %c57_i32 = arith.constant 57 : i32
    %c0_i32_68 = arith.constant 0 : i32
    %86 = tpu.memref_slice %arg8[%c57_i32, %c0_i32_68] : memref<64x64xf32, #tpu.memory_space<vmem>> -> memref<1x64xf32, #tpu.memory_space<vmem>>
    %87 = tpu.memref_slice %arg10[%c15_i32] : memref<16x!tpu.dma_semaphore, #tpu.memory_space<semaphore_mem>> -> memref<1x!tpu.dma_semaphore, #tpu.memory_space<semaphore_mem>>
    %88 = tpu.memref_squeeze %87 : memref<1x!tpu.dma_semaphore, #tpu.memory_space<semaphore_mem>> -> memref<!tpu.dma_semaphore, #tpu.memory_space<semaphore_mem>>
    tpu.enqueue_dma source(%85 : memref<1x64xf32, #tpu.memory_space<any>>) target(%86 : memref<1x64xf32, #tpu.memory_space<vmem>>) target_semaphore(%88 : memref<!tpu.dma_semaphore, #tpu.memory_space<semaphore_mem>>)
    %c0_i32_69 = arith.constant 0 : i32
    %c0_i32_70 = arith.constant 0 : i32
    %89 = tpu.memref_slice %arg1[%9, %c0_i32_70] : memref<2000x64xf32, #tpu.memory_space<any>> -> memref<1x64xf32, #tpu.memory_space<any>>
    %c0_i32_71 = arith.constant 0 : i32
    %c0_i32_72 = arith.constant 0 : i32
    %90 = tpu.memref_slice %arg8[%c0_i32_71, %c0_i32_72] : memref<64x64xf32, #tpu.memory_space<vmem>> -> memref<1x64xf32, #tpu.memory_space<vmem>>
    %91 = tpu.memref_slice %arg10[%c0_i32_69] : memref<16x!tpu.dma_semaphore, #tpu.memory_space<semaphore_mem>> -> memref<1x!tpu.dma_semaphore, #tpu.memory_space<semaphore_mem>>
    %92 = tpu.memref_squeeze %91 : memref<1x!tpu.dma_semaphore, #tpu.memory_space<semaphore_mem>> -> memref<!tpu.dma_semaphore, #tpu.memory_space<semaphore_mem>>
    tpu.wait_dma2 semaphore(%92 : memref<!tpu.dma_semaphore, #tpu.memory_space<semaphore_mem>>) src(%89 : memref<1x64xf32, #tpu.memory_space<any>>) dst(%90 : memref<1x64xf32, #tpu.memory_space<vmem>>)
    %c1_i32_73 = arith.constant 1 : i32
    %c0_i32_74 = arith.constant 0 : i32
    %93 = tpu.memref_slice %arg1[%14, %c0_i32_74] : memref<2000x64xf32, #tpu.memory_space<any>> -> memref<1x64xf32, #tpu.memory_space<any>>
    %c1_i32_75 = arith.constant 1 : i32
    %c0_i32_76 = arith.constant 0 : i32
    %94 = tpu.memref_slice %arg8[%c1_i32_75, %c0_i32_76] : memref<64x64xf32, #tpu.memory_space<vmem>> -> memref<1x64xf32, #tpu.memory_space<vmem>>
    %95 = tpu.memref_slice %arg10[%c1_i32_73] : memref<16x!tpu.dma_semaphore, #tpu.memory_space<semaphore_mem>> -> memref<1x!tpu.dma_semaphore, #tpu.memory_space<semaphore_mem>>
    %96 = tpu.memref_squeeze %95 : memref<1x!tpu.dma_semaphore, #tpu.memory_space<semaphore_mem>> -> memref<!tpu.dma_semaphore, #tpu.memory_space<semaphore_mem>>
    tpu.wait_dma2 semaphore(%96 : memref<!tpu.dma_semaphore, #tpu.memory_space<semaphore_mem>>) src(%93 : memref<1x64xf32, #tpu.memory_space<any>>) dst(%94 : memref<1x64xf32, #tpu.memory_space<vmem>>)
    %c2_i32_77 = arith.constant 2 : i32
    %c0_i32_78 = arith.constant 0 : i32
    %97 = tpu.memref_slice %arg1[%19, %c0_i32_78] : memref<2000x64xf32, #tpu.memory_space<any>> -> memref<1x64xf32, #tpu.memory_space<any>>
    %c8_i32_79 = arith.constant 8 : i32
    %c0_i32_80 = arith.constant 0 : i32
    %98 = tpu.memref_slice %arg8[%c8_i32_79, %c0_i32_80] : memref<64x64xf32, #tpu.memory_space<vmem>> -> memref<1x64xf32, #tpu.memory_space<vmem>>
    %99 = tpu.memref_slice %arg10[%c2_i32_77] : memref<16x!tpu.dma_semaphore, #tpu.memory_space<semaphore_mem>> -> memref<1x!tpu.dma_semaphore, #tpu.memory_space<semaphore_mem>>
    %100 = tpu.memref_squeeze %99 : memref<1x!tpu.dma_semaphore, #tpu.memory_space<semaphore_mem>> -> memref<!tpu.dma_semaphore, #tpu.memory_space<semaphore_mem>>
    tpu.wait_dma2 semaphore(%100 : memref<!tpu.dma_semaphore, #tpu.memory_space<semaphore_mem>>) src(%97 : memref<1x64xf32, #tpu.memory_space<any>>) dst(%98 : memref<1x64xf32, #tpu.memory_space<vmem>>)
    %c3_i32_81 = arith.constant 3 : i32
    %c0_i32_82 = arith.constant 0 : i32
    %101 = tpu.memref_slice %arg1[%24, %c0_i32_82] : memref<2000x64xf32, #tpu.memory_space<any>> -> memref<1x64xf32, #tpu.memory_space<any>>
    %c9_i32_83 = arith.constant 9 : i32
    %c0_i32_84 = arith.constant 0 : i32
    %102 = tpu.memref_slice %arg8[%c9_i32_83, %c0_i32_84] : memref<64x64xf32, #tpu.memory_space<vmem>> -> memref<1x64xf32, #tpu.memory_space<vmem>>
    %103 = tpu.memref_slice %arg10[%c3_i32_81] : memref<16x!tpu.dma_semaphore, #tpu.memory_space<semaphore_mem>> -> memref<1x!tpu.dma_semaphore, #tpu.memory_space<semaphore_mem>>
    %104 = tpu.memref_squeeze %103 : memref<1x!tpu.dma_semaphore, #tpu.memory_space<semaphore_mem>> -> memref<!tpu.dma_semaphore, #tpu.memory_space<semaphore_mem>>
    tpu.wait_dma2 semaphore(%104 : memref<!tpu.dma_semaphore, #tpu.memory_space<semaphore_mem>>) src(%101 : memref<1x64xf32, #tpu.memory_space<any>>) dst(%102 : memref<1x64xf32, #tpu.memory_space<vmem>>)
    %c4_i32_85 = arith.constant 4 : i32
    %c0_i32_86 = arith.constant 0 : i32
    %105 = tpu.memref_slice %arg1[%29, %c0_i32_86] : memref<2000x64xf32, #tpu.memory_space<any>> -> memref<1x64xf32, #tpu.memory_space<any>>
    %c16_i32_87 = arith.constant 16 : i32
    %c0_i32_88 = arith.constant 0 : i32
    %106 = tpu.memref_slice %arg8[%c16_i32_87, %c0_i32_88] : memref<64x64xf32, #tpu.memory_space<vmem>> -> memref<1x64xf32, #tpu.memory_space<vmem>>
    %107 = tpu.memref_slice %arg10[%c4_i32_85] : memref<16x!tpu.dma_semaphore, #tpu.memory_space<semaphore_mem>> -> memref<1x!tpu.dma_semaphore, #tpu.memory_space<semaphore_mem>>
    %108 = tpu.memref_squeeze %107 : memref<1x!tpu.dma_semaphore, #tpu.memory_space<semaphore_mem>> -> memref<!tpu.dma_semaphore, #tpu.memory_space<semaphore_mem>>
    tpu.wait_dma2 semaphore(%108 : memref<!tpu.dma_semaphore, #tpu.memory_space<semaphore_mem>>) src(%105 : memref<1x64xf32, #tpu.memory_space<any>>) dst(%106 : memref<1x64xf32, #tpu.memory_space<vmem>>)
    %c5_i32_89 = arith.constant 5 : i32
    %c0_i32_90 = arith.constant 0 : i32
    %109 = tpu.memref_slice %arg1[%34, %c0_i32_90] : memref<2000x64xf32, #tpu.memory_space<any>> -> memref<1x64xf32, #tpu.memory_space<any>>
    %c17_i32_91 = arith.constant 17 : i32
    %c0_i32_92 = arith.constant 0 : i32
    %110 = tpu.memref_slice %arg8[%c17_i32_91, %c0_i32_92] : memref<64x64xf32, #tpu.memory_space<vmem>> -> memref<1x64xf32, #tpu.memory_space<vmem>>
    %111 = tpu.memref_slice %arg10[%c5_i32_89] : memref<16x!tpu.dma_semaphore, #tpu.memory_space<semaphore_mem>> -> memref<1x!tpu.dma_semaphore, #tpu.memory_space<semaphore_mem>>
    %112 = tpu.memref_squeeze %111 : memref<1x!tpu.dma_semaphore, #tpu.memory_space<semaphore_mem>> -> memref<!tpu.dma_semaphore, #tpu.memory_space<semaphore_mem>>
    tpu.wait_dma2 semaphore(%112 : memref<!tpu.dma_semaphore, #tpu.memory_space<semaphore_mem>>) src(%109 : memref<1x64xf32, #tpu.memory_space<any>>) dst(%110 : memref<1x64xf32, #tpu.memory_space<vmem>>)
    %c6_i32_93 = arith.constant 6 : i32
    %c0_i32_94 = arith.constant 0 : i32
    %113 = tpu.memref_slice %arg1[%39, %c0_i32_94] : memref<2000x64xf32, #tpu.memory_space<any>> -> memref<1x64xf32, #tpu.memory_space<any>>
    %c24_i32_95 = arith.constant 24 : i32
    %c0_i32_96 = arith.constant 0 : i32
    %114 = tpu.memref_slice %arg8[%c24_i32_95, %c0_i32_96] : memref<64x64xf32, #tpu.memory_space<vmem>> -> memref<1x64xf32, #tpu.memory_space<vmem>>
    %115 = tpu.memref_slice %arg10[%c6_i32_93] : memref<16x!tpu.dma_semaphore, #tpu.memory_space<semaphore_mem>> -> memref<1x!tpu.dma_semaphore, #tpu.memory_space<semaphore_mem>>
    %116 = tpu.memref_squeeze %115 : memref<1x!tpu.dma_semaphore, #tpu.memory_space<semaphore_mem>> -> memref<!tpu.dma_semaphore, #tpu.memory_space<semaphore_mem>>
    tpu.wait_dma2 semaphore(%116 : memref<!tpu.dma_semaphore, #tpu.memory_space<semaphore_mem>>) src(%113 : memref<1x64xf32, #tpu.memory_space<any>>) dst(%114 : memref<1x64xf32, #tpu.memory_space<vmem>>)
    %c7_i32_97 = arith.constant 7 : i32
    %c0_i32_98 = arith.constant 0 : i32
    %117 = tpu.memref_slice %arg1[%44, %c0_i32_98] : memref<2000x64xf32, #tpu.memory_space<any>> -> memref<1x64xf32, #tpu.memory_space<any>>
    %c25_i32_99 = arith.constant 25 : i32
    %c0_i32_100 = arith.constant 0 : i32
    %118 = tpu.memref_slice %arg8[%c25_i32_99, %c0_i32_100] : memref<64x64xf32, #tpu.memory_space<vmem>> -> memref<1x64xf32, #tpu.memory_space<vmem>>
    %119 = tpu.memref_slice %arg10[%c7_i32_97] : memref<16x!tpu.dma_semaphore, #tpu.memory_space<semaphore_mem>> -> memref<1x!tpu.dma_semaphore, #tpu.memory_space<semaphore_mem>>
    %120 = tpu.memref_squeeze %119 : memref<1x!tpu.dma_semaphore, #tpu.memory_space<semaphore_mem>> -> memref<!tpu.dma_semaphore, #tpu.memory_space<semaphore_mem>>
    tpu.wait_dma2 semaphore(%120 : memref<!tpu.dma_semaphore, #tpu.memory_space<semaphore_mem>>) src(%117 : memref<1x64xf32, #tpu.memory_space<any>>) dst(%118 : memref<1x64xf32, #tpu.memory_space<vmem>>)
    %c8_i32_101 = arith.constant 8 : i32
    %c0_i32_102 = arith.constant 0 : i32
    %121 = tpu.memref_slice %arg1[%49, %c0_i32_102] : memref<2000x64xf32, #tpu.memory_space<any>> -> memref<1x64xf32, #tpu.memory_space<any>>
    %c32_i32_103 = arith.constant 32 : i32
    %c0_i32_104 = arith.constant 0 : i32
    %122 = tpu.memref_slice %arg8[%c32_i32_103, %c0_i32_104] : memref<64x64xf32, #tpu.memory_space<vmem>> -> memref<1x64xf32, #tpu.memory_space<vmem>>
    %123 = tpu.memref_slice %arg10[%c8_i32_101] : memref<16x!tpu.dma_semaphore, #tpu.memory_space<semaphore_mem>> -> memref<1x!tpu.dma_semaphore, #tpu.memory_space<semaphore_mem>>
    %124 = tpu.memref_squeeze %123 : memref<1x!tpu.dma_semaphore, #tpu.memory_space<semaphore_mem>> -> memref<!tpu.dma_semaphore, #tpu.memory_space<semaphore_mem>>
    tpu.wait_dma2 semaphore(%124 : memref<!tpu.dma_semaphore, #tpu.memory_space<semaphore_mem>>) src(%121 : memref<1x64xf32, #tpu.memory_space<any>>) dst(%122 : memref<1x64xf32, #tpu.memory_space<vmem>>)
    %c9_i32_105 = arith.constant 9 : i32
    %c0_i32_106 = arith.constant 0 : i32
    %125 = tpu.memref_slice %arg1[%54, %c0_i32_106] : memref<2000x64xf32, #tpu.memory_space<any>> -> memref<1x64xf32, #tpu.memory_space<any>>
    %c33_i32_107 = arith.constant 33 : i32
    %c0_i32_108 = arith.constant 0 : i32
    %126 = tpu.memref_slice %arg8[%c33_i32_107, %c0_i32_108] : memref<64x64xf32, #tpu.memory_space<vmem>> -> memref<1x64xf32, #tpu.memory_space<vmem>>
    %127 = tpu.memref_slice %arg10[%c9_i32_105] : memref<16x!tpu.dma_semaphore, #tpu.memory_space<semaphore_mem>> -> memref<1x!tpu.dma_semaphore, #tpu.memory_space<semaphore_mem>>
    %128 = tpu.memref_squeeze %127 : memref<1x!tpu.dma_semaphore, #tpu.memory_space<semaphore_mem>> -> memref<!tpu.dma_semaphore, #tpu.memory_space<semaphore_mem>>
    tpu.wait_dma2 semaphore(%128 : memref<!tpu.dma_semaphore, #tpu.memory_space<semaphore_mem>>) src(%125 : memref<1x64xf32, #tpu.memory_space<any>>) dst(%126 : memref<1x64xf32, #tpu.memory_space<vmem>>)
    %c10_i32_109 = arith.constant 10 : i32
    %c0_i32_110 = arith.constant 0 : i32
    %129 = tpu.memref_slice %arg1[%59, %c0_i32_110] : memref<2000x64xf32, #tpu.memory_space<any>> -> memref<1x64xf32, #tpu.memory_space<any>>
    %c40_i32_111 = arith.constant 40 : i32
    %c0_i32_112 = arith.constant 0 : i32
    %130 = tpu.memref_slice %arg8[%c40_i32_111, %c0_i32_112] : memref<64x64xf32, #tpu.memory_space<vmem>> -> memref<1x64xf32, #tpu.memory_space<vmem>>
    %131 = tpu.memref_slice %arg10[%c10_i32_109] : memref<16x!tpu.dma_semaphore, #tpu.memory_space<semaphore_mem>> -> memref<1x!tpu.dma_semaphore, #tpu.memory_space<semaphore_mem>>
    %132 = tpu.memref_squeeze %131 : memref<1x!tpu.dma_semaphore, #tpu.memory_space<semaphore_mem>> -> memref<!tpu.dma_semaphore, #tpu.memory_space<semaphore_mem>>
    tpu.wait_dma2 semaphore(%132 : memref<!tpu.dma_semaphore, #tpu.memory_space<semaphore_mem>>) src(%129 : memref<1x64xf32, #tpu.memory_space<any>>) dst(%130 : memref<1x64xf32, #tpu.memory_space<vmem>>)
    %c11_i32_113 = arith.constant 11 : i32
    %c0_i32_114 = arith.constant 0 : i32
    %133 = tpu.memref_slice %arg1[%64, %c0_i32_114] : memref<2000x64xf32, #tpu.memory_space<any>> -> memref<1x64xf32, #tpu.memory_space<any>>
    %c41_i32_115 = arith.constant 41 : i32
    %c0_i32_116 = arith.constant 0 : i32
    %134 = tpu.memref_slice %arg8[%c41_i32_115, %c0_i32_116] : memref<64x64xf32, #tpu.memory_space<vmem>> -> memref<1x64xf32, #tpu.memory_space<vmem>>
    %135 = tpu.memref_slice %arg10[%c11_i32_113] : memref<16x!tpu.dma_semaphore, #tpu.memory_space<semaphore_mem>> -> memref<1x!tpu.dma_semaphore, #tpu.memory_space<semaphore_mem>>
    %136 = tpu.memref_squeeze %135 : memref<1x!tpu.dma_semaphore, #tpu.memory_space<semaphore_mem>> -> memref<!tpu.dma_semaphore, #tpu.memory_space<semaphore_mem>>
    tpu.wait_dma2 semaphore(%136 : memref<!tpu.dma_semaphore, #tpu.memory_space<semaphore_mem>>) src(%133 : memref<1x64xf32, #tpu.memory_space<any>>) dst(%134 : memref<1x64xf32, #tpu.memory_space<vmem>>)
    %c12_i32_117 = arith.constant 12 : i32
    %c0_i32_118 = arith.constant 0 : i32
    %137 = tpu.memref_slice %arg1[%69, %c0_i32_118] : memref<2000x64xf32, #tpu.memory_space<any>> -> memref<1x64xf32, #tpu.memory_space<any>>
    %c48_i32_119 = arith.constant 48 : i32
    %c0_i32_120 = arith.constant 0 : i32
    %138 = tpu.memref_slice %arg8[%c48_i32_119, %c0_i32_120] : memref<64x64xf32, #tpu.memory_space<vmem>> -> memref<1x64xf32, #tpu.memory_space<vmem>>
    %139 = tpu.memref_slice %arg10[%c12_i32_117] : memref<16x!tpu.dma_semaphore, #tpu.memory_space<semaphore_mem>> -> memref<1x!tpu.dma_semaphore, #tpu.memory_space<semaphore_mem>>
    %140 = tpu.memref_squeeze %139 : memref<1x!tpu.dma_semaphore, #tpu.memory_space<semaphore_mem>> -> memref<!tpu.dma_semaphore, #tpu.memory_space<semaphore_mem>>
    tpu.wait_dma2 semaphore(%140 : memref<!tpu.dma_semaphore, #tpu.memory_space<semaphore_mem>>) src(%137 : memref<1x64xf32, #tpu.memory_space<any>>) dst(%138 : memref<1x64xf32, #tpu.memory_space<vmem>>)
    %c13_i32_121 = arith.constant 13 : i32
    %c0_i32_122 = arith.constant 0 : i32
    %141 = tpu.memref_slice %arg1[%74, %c0_i32_122] : memref<2000x64xf32, #tpu.memory_space<any>> -> memref<1x64xf32, #tpu.memory_space<any>>
    %c49_i32_123 = arith.constant 49 : i32
    %c0_i32_124 = arith.constant 0 : i32
    %142 = tpu.memref_slice %arg8[%c49_i32_123, %c0_i32_124] : memref<64x64xf32, #tpu.memory_space<vmem>> -> memref<1x64xf32, #tpu.memory_space<vmem>>
    %143 = tpu.memref_slice %arg10[%c13_i32_121] : memref<16x!tpu.dma_semaphore, #tpu.memory_space<semaphore_mem>> -> memref<1x!tpu.dma_semaphore, #tpu.memory_space<semaphore_mem>>
    %144 = tpu.memref_squeeze %143 : memref<1x!tpu.dma_semaphore, #tpu.memory_space<semaphore_mem>> -> memref<!tpu.dma_semaphore, #tpu.memory_space<semaphore_mem>>
    tpu.wait_dma2 semaphore(%144 : memref<!tpu.dma_semaphore, #tpu.memory_space<semaphore_mem>>) src(%141 : memref<1x64xf32, #tpu.memory_space<any>>) dst(%142 : memref<1x64xf32, #tpu.memory_space<vmem>>)
    %c14_i32_125 = arith.constant 14 : i32
    %c0_i32_126 = arith.constant 0 : i32
    %145 = tpu.memref_slice %arg1[%79, %c0_i32_126] : memref<2000x64xf32, #tpu.memory_space<any>> -> memref<1x64xf32, #tpu.memory_space<any>>
    %c56_i32_127 = arith.constant 56 : i32
    %c0_i32_128 = arith.constant 0 : i32
    %146 = tpu.memref_slice %arg8[%c56_i32_127, %c0_i32_128] : memref<64x64xf32, #tpu.memory_space<vmem>> -> memref<1x64xf32, #tpu.memory_space<vmem>>
    %147 = tpu.memref_slice %arg10[%c14_i32_125] : memref<16x!tpu.dma_semaphore, #tpu.memory_space<semaphore_mem>> -> memref<1x!tpu.dma_semaphore, #tpu.memory_space<semaphore_mem>>
    %148 = tpu.memref_squeeze %147 : memref<1x!tpu.dma_semaphore, #tpu.memory_space<semaphore_mem>> -> memref<!tpu.dma_semaphore, #tpu.memory_space<semaphore_mem>>
    tpu.wait_dma2 semaphore(%148 : memref<!tpu.dma_semaphore, #tpu.memory_space<semaphore_mem>>) src(%145 : memref<1x64xf32, #tpu.memory_space<any>>) dst(%146 : memref<1x64xf32, #tpu.memory_space<vmem>>)
    %c15_i32_129 = arith.constant 15 : i32
    %c0_i32_130 = arith.constant 0 : i32
    %149 = tpu.memref_slice %arg1[%84, %c0_i32_130] : memref<2000x64xf32, #tpu.memory_space<any>> -> memref<1x64xf32, #tpu.memory_space<any>>
    %c57_i32_131 = arith.constant 57 : i32
    %c0_i32_132 = arith.constant 0 : i32
    %150 = tpu.memref_slice %arg8[%c57_i32_131, %c0_i32_132] : memref<64x64xf32, #tpu.memory_space<vmem>> -> memref<1x64xf32, #tpu.memory_space<vmem>>
    %151 = tpu.memref_slice %arg10[%c15_i32_129] : memref<16x!tpu.dma_semaphore, #tpu.memory_space<semaphore_mem>> -> memref<1x!tpu.dma_semaphore, #tpu.memory_space<semaphore_mem>>
    %152 = tpu.memref_squeeze %151 : memref<1x!tpu.dma_semaphore, #tpu.memory_space<semaphore_mem>> -> memref<!tpu.dma_semaphore, #tpu.memory_space<semaphore_mem>>
    tpu.wait_dma2 semaphore(%152 : memref<!tpu.dma_semaphore, #tpu.memory_space<semaphore_mem>>) src(%149 : memref<1x64xf32, #tpu.memory_space<any>>) dst(%150 : memref<1x64xf32, #tpu.memory_space<vmem>>)
    %c0_133 = arith.constant 0 : index
    %c0_134 = arith.constant 0 : index
    %153 = vector.load %arg8[%c0_133, %c0_134] : memref<64x64xf32, #tpu.memory_space<vmem>>, vector<64x64xf32>
    %c0_135 = arith.constant 0 : index
    %c0_136 = arith.constant 0 : index
    %154 = vector.load %arg2[%c0_135, %c0_136] : memref<64x512xf32, #tpu.memory_space<vmem>>, vector<64x512xf32>
    %cst_137 = arith.constant dense<0.000000e+00> : vector<64x512xf32>
    %155 = tpu.matmul %153, %154, %cst_137 {dimension_numbers = #tpu.dot_dimension_numbers<[1], [0], [0], [1], [0, 0, 1, 1], [], []>} : vector<64x64xf32>, vector<64x512xf32>, vector<64x512xf32> -> vector<64x512xf32>
    %c0_138 = arith.constant 0 : index
    %c0_139 = arith.constant 0 : index
    %156 = vector.load %arg4[%c0_138, %c0_139] : memref<1x512xf32, #tpu.memory_space<vmem>>, vector<1x512xf32>
    %157 = vector.broadcast %156 : vector<1x512xf32> to vector<64x512xf32>
    %158 = arith.addf %155, %157 : vector<64x512xf32>
    %c0_140 = arith.constant 0 : index
    %c0_141 = arith.constant 0 : index
    %159 = vector.load %arg9[%c0_140, %c0_141] : memref<64x512xf32, #tpu.memory_space<vmem>>, vector<64x512xf32>
    tpu.vector_store %arg9[%c0_140, %c0_141], %158 {strides = array<i32>} : memref<64x512xf32, #tpu.memory_space<vmem>>, vector<64x512xf32>,
    %cst_142 = arith.constant 0.000000e+00 : f32
    %160 = vector.broadcast %cst_142 : f32 to vector<8x128xf32>
    %cst_143 = arith.constant 0.000000e+00 : f32
    %161 = vector.broadcast %cst_143 : f32 to vector<8x128xf32>
    %c0_144 = arith.constant 0 : index
    %c0_145 = arith.constant 0 : index
    %162 = vector.load %arg9[%c0_144, %c0_145] : memref<64x512xf32, #tpu.memory_space<vmem>>, vector<8x512xf32>
    %c0_146 = arith.constant 0 : index
    %c0_147 = arith.constant 0 : index
    %163 = vector.load %arg3[%c0_146, %c0_147] : memref<128x512xf32, #tpu.memory_space<vmem>>, vector<128x512xf32>
    %cst_148 = arith.constant dense<0.000000e+00> : vector<8x512xf32>
    %164 = tpu.matmul %160, %163, %cst_148 {dimension_numbers = #tpu.dot_dimension_numbers<[1], [0], [0], [1], [0, 0, 1, 1], [], []>} : vector<8x128xf32>, vector<128x512xf32>, vector<8x512xf32> -> vector<8x512xf32>
    %165 = arith.addf %162, %164 : vector<8x512xf32>
    %166 = vector.extract_strided_slice %165 {offsets = [0, 0], sizes = [8, 128], strides = [1, 1]} : vector<8x512xf32> to vector<8x128xf32>
    %167 = arith.negf %166 : vector<8x128xf32>
    %168 = math.exp %167 : vector<8x128xf32>
    %cst_149 = arith.constant 1.000000e+00 : f32
    %169 = vector.broadcast %cst_149 : f32 to vector<8x128xf32>
    %170 = arith.addf %169, %168 : vector<8x128xf32>
    %171 = arith.divf %169, %170 : vector<8x128xf32>
    %172 = vector.extract_strided_slice %165 {offsets = [0, 128], sizes = [8, 128], strides = [1, 1]} : vector<8x512xf32> to vector<8x128xf32>
    %173 = arith.negf %172 : vector<8x128xf32>
    %174 = math.exp %173 : vector<8x128xf32>
    %cst_150 = arith.constant 1.000000e+00 : f32
    %175 = vector.broadcast %cst_150 : f32 to vector<8x128xf32>
    %176 = arith.addf %175, %174 : vector<8x128xf32>
    %177 = arith.divf %175, %176 : vector<8x128xf32>
    %178 = vector.extract_strided_slice %165 {offsets = [0, 256], sizes = [8, 128], strides = [1, 1]} : vector<8x512xf32> to vector<8x128xf32>
    %179 = math.tanh %178 : vector<8x128xf32>
    %180 = vector.extract_strided_slice %165 {offsets = [0, 384], sizes = [8, 128], strides = [1, 1]} : vector<8x512xf32> to vector<8x128xf32>
    %181 = arith.negf %180 : vector<8x128xf32>
    %182 = math.exp %181 : vector<8x128xf32>
    %cst_151 = arith.constant 1.000000e+00 : f32
    %183 = vector.broadcast %cst_151 : f32 to vector<8x128xf32>
    %184 = arith.addf %183, %182 : vector<8x128xf32>
    %185 = arith.divf %183, %184 : vector<8x128xf32>
    %186 = arith.mulf %177, %161 : vector<8x128xf32>
    %187 = arith.mulf %171, %179 : vector<8x128xf32>
    %188 = arith.addf %186, %187 : vector<8x128xf32>
    %189 = math.tanh %188 : vector<8x128xf32>
    %190 = arith.mulf %185, %189 : vector<8x128xf32>
    %c8 = arith.constant 8 : index
    %c0_152 = arith.constant 0 : index
    %191 = vector.load %arg9[%c8, %c0_152] : memref<64x512xf32, #tpu.memory_space<vmem>>, vector<8x512xf32>
    %c0_153 = arith.constant 0 : index
    %c0_154 = arith.constant 0 : index
    %192 = vector.load %arg3[%c0_153, %c0_154] : memref<128x512xf32, #tpu.memory_space<vmem>>, vector<128x512xf32>
    %cst_155 = arith.constant dense<0.000000e+00> : vector<8x512xf32>
    %193 = tpu.matmul %190, %192, %cst_155 {dimension_numbers = #tpu.dot_dimension_numbers<[1], [0], [0], [1], [0, 0, 1, 1], [], []>} : vector<8x128xf32>, vector<128x512xf32>, vector<8x512xf32> -> vector<8x512xf32>
    %194 = arith.addf %191, %193 : vector<8x512xf32>
    %195 = vector.extract_strided_slice %194 {offsets = [0, 0], sizes = [8, 128], strides = [1, 1]} : vector<8x512xf32> to vector<8x128xf32>
    %196 = arith.negf %195 : vector<8x128xf32>
    %197 = math.exp %196 : vector<8x128xf32>
    %cst_156 = arith.constant 1.000000e+00 : f32
    %198 = vector.broadcast %cst_156 : f32 to vector<8x128xf32>
    %199 = arith.addf %198, %197 : vector<8x128xf32>
    %200 = arith.divf %198, %199 : vector<8x128xf32>
    %201 = vector.extract_strided_slice %194 {offsets = [0, 128], sizes = [8, 128], strides = [1, 1]} : vector<8x512xf32> to vector<8x128xf32>
    %202 = arith.negf %201 : vector<8x128xf32>
    %203 = math.exp %202 : vector<8x128xf32>
    %cst_157 = arith.constant 1.000000e+00 : f32
    %204 = vector.broadcast %cst_157 : f32 to vector<8x128xf32>
    %205 = arith.addf %204, %203 : vector<8x128xf32>
    %206 = arith.divf %204, %205 : vector<8x128xf32>
    %207 = vector.extract_strided_slice %194 {offsets = [0, 256], sizes = [8, 128], strides = [1, 1]} : vector<8x512xf32> to vector<8x128xf32>
    %208 = math.tanh %207 : vector<8x128xf32>
    %209 = vector.extract_strided_slice %194 {offsets = [0, 384], sizes = [8, 128], strides = [1, 1]} : vector<8x512xf32> to vector<8x128xf32>
    %210 = arith.negf %209 : vector<8x128xf32>
    %211 = math.exp %210 : vector<8x128xf32>
    %cst_158 = arith.constant 1.000000e+00 : f32
    %212 = vector.broadcast %cst_158 : f32 to vector<8x128xf32>
    %213 = arith.addf %212, %211 : vector<8x128xf32>
    %214 = arith.divf %212, %213 : vector<8x128xf32>
    %215 = arith.mulf %206, %188 : vector<8x128xf32>
    %216 = arith.mulf %200, %208 : vector<8x128xf32>
    %217 = arith.addf %215, %216 : vector<8x128xf32>
    %218 = math.tanh %217 : vector<8x128xf32>
    %219 = arith.mulf %214, %218 : vector<8x128xf32>
    %c16 = arith.constant 16 : index
    %c0_159 = arith.constant 0 : index
    %220 = vector.load %arg9[%c16, %c0_159] : memref<64x512xf32, #tpu.memory_space<vmem>>, vector<8x512xf32>
    %c0_160 = arith.constant 0 : index
    %c0_161 = arith.constant 0 : index
    %221 = vector.load %arg3[%c0_160, %c0_161] : memref<128x512xf32, #tpu.memory_space<vmem>>, vector<128x512xf32>
    %cst_162 = arith.constant dense<0.000000e+00> : vector<8x512xf32>
    %222 = tpu.matmul %219, %221, %cst_162 {dimension_numbers = #tpu.dot_dimension_numbers<[1], [0], [0], [1], [0, 0, 1, 1], [], []>} : vector<8x128xf32>, vector<128x512xf32>, vector<8x512xf32> -> vector<8x512xf32>
    %223 = arith.addf %220, %222 : vector<8x512xf32>
    %224 = vector.extract_strided_slice %223 {offsets = [0, 0], sizes = [8, 128], strides = [1, 1]} : vector<8x512xf32> to vector<8x128xf32>
    %225 = arith.negf %224 : vector<8x128xf32>
    %226 = math.exp %225 : vector<8x128xf32>
    %cst_163 = arith.constant 1.000000e+00 : f32
    %227 = vector.broadcast %cst_163 : f32 to vector<8x128xf32>
    %228 = arith.addf %227, %226 : vector<8x128xf32>
    %229 = arith.divf %227, %228 : vector<8x128xf32>
    %230 = vector.extract_strided_slice %223 {offsets = [0, 128], sizes = [8, 128], strides = [1, 1]} : vector<8x512xf32> to vector<8x128xf32>
    %231 = arith.negf %230 : vector<8x128xf32>
    %232 = math.exp %231 : vector<8x128xf32>
    %cst_164 = arith.constant 1.000000e+00 : f32
    %233 = vector.broadcast %cst_164 : f32 to vector<8x128xf32>
    %234 = arith.addf %233, %232 : vector<8x128xf32>
    %235 = arith.divf %233, %234 : vector<8x128xf32>
    %236 = vector.extract_strided_slice %223 {offsets = [0, 256], sizes = [8, 128], strides = [1, 1]} : vector<8x512xf32> to vector<8x128xf32>
    %237 = math.tanh %236 : vector<8x128xf32>
    %238 = vector.extract_strided_slice %223 {offsets = [0, 384], sizes = [8, 128], strides = [1, 1]} : vector<8x512xf32> to vector<8x128xf32>
    %239 = arith.negf %238 : vector<8x128xf32>
    %240 = math.exp %239 : vector<8x128xf32>
    %cst_165 = arith.constant 1.000000e+00 : f32
    %241 = vector.broadcast %cst_165 : f32 to vector<8x128xf32>
    %242 = arith.addf %241, %240 : vector<8x128xf32>
    %243 = arith.divf %241, %242 : vector<8x128xf32>
    %244 = arith.mulf %235, %217 : vector<8x128xf32>
    %245 = arith.mulf %229, %237 : vector<8x128xf32>
    %246 = arith.addf %244, %245 : vector<8x128xf32>
    %247 = math.tanh %246 : vector<8x128xf32>
    %248 = arith.mulf %243, %247 : vector<8x128xf32>
    %c24 = arith.constant 24 : index
    %c0_166 = arith.constant 0 : index
    %249 = vector.load %arg9[%c24, %c0_166] : memref<64x512xf32, #tpu.memory_space<vmem>>, vector<8x512xf32>
    %c0_167 = arith.constant 0 : index
    %c0_168 = arith.constant 0 : index
    %250 = vector.load %arg3[%c0_167, %c0_168] : memref<128x512xf32, #tpu.memory_space<vmem>>, vector<128x512xf32>
    %cst_169 = arith.constant dense<0.000000e+00> : vector<8x512xf32>
    %251 = tpu.matmul %248, %250, %cst_169 {dimension_numbers = #tpu.dot_dimension_numbers<[1], [0], [0], [1], [0, 0, 1, 1], [], []>} : vector<8x128xf32>, vector<128x512xf32>, vector<8x512xf32> -> vector<8x512xf32>
    %252 = arith.addf %249, %251 : vector<8x512xf32>
    %253 = vector.extract_strided_slice %252 {offsets = [0, 0], sizes = [8, 128], strides = [1, 1]} : vector<8x512xf32> to vector<8x128xf32>
    %254 = arith.negf %253 : vector<8x128xf32>
    %255 = math.exp %254 : vector<8x128xf32>
    %cst_170 = arith.constant 1.000000e+00 : f32
    %256 = vector.broadcast %cst_170 : f32 to vector<8x128xf32>
    %257 = arith.addf %256, %255 : vector<8x128xf32>
    %258 = arith.divf %256, %257 : vector<8x128xf32>
    %259 = vector.extract_strided_slice %252 {offsets = [0, 128], sizes = [8, 128], strides = [1, 1]} : vector<8x512xf32> to vector<8x128xf32>
    %260 = arith.negf %259 : vector<8x128xf32>
    %261 = math.exp %260 : vector<8x128xf32>
    %cst_171 = arith.constant 1.000000e+00 : f32
    %262 = vector.broadcast %cst_171 : f32 to vector<8x128xf32>
    %263 = arith.addf %262, %261 : vector<8x128xf32>
    %264 = arith.divf %262, %263 : vector<8x128xf32>
    %265 = vector.extract_strided_slice %252 {offsets = [0, 256], sizes = [8, 128], strides = [1, 1]} : vector<8x512xf32> to vector<8x128xf32>
    %266 = math.tanh %265 : vector<8x128xf32>
    %267 = vector.extract_strided_slice %252 {offsets = [0, 384], sizes = [8, 128], strides = [1, 1]} : vector<8x512xf32> to vector<8x128xf32>
    %268 = arith.negf %267 : vector<8x128xf32>
    %269 = math.exp %268 : vector<8x128xf32>
    %cst_172 = arith.constant 1.000000e+00 : f32
    %270 = vector.broadcast %cst_172 : f32 to vector<8x128xf32>
    %271 = arith.addf %270, %269 : vector<8x128xf32>
    %272 = arith.divf %270, %271 : vector<8x128xf32>
    %273 = arith.mulf %264, %246 : vector<8x128xf32>
    %274 = arith.mulf %258, %266 : vector<8x128xf32>
    %275 = arith.addf %273, %274 : vector<8x128xf32>
    %276 = math.tanh %275 : vector<8x128xf32>
    %277 = arith.mulf %272, %276 : vector<8x128xf32>
    %c32 = arith.constant 32 : index
    %c0_173 = arith.constant 0 : index
    %278 = vector.load %arg9[%c32, %c0_173] : memref<64x512xf32, #tpu.memory_space<vmem>>, vector<8x512xf32>
    %c0_174 = arith.constant 0 : index
    %c0_175 = arith.constant 0 : index
    %279 = vector.load %arg3[%c0_174, %c0_175] : memref<128x512xf32, #tpu.memory_space<vmem>>, vector<128x512xf32>
    %cst_176 = arith.constant dense<0.000000e+00> : vector<8x512xf32>
    %280 = tpu.matmul %277, %279, %cst_176 {dimension_numbers = #tpu.dot_dimension_numbers<[1], [0], [0], [1], [0, 0, 1, 1], [], []>} : vector<8x128xf32>, vector<128x512xf32>, vector<8x512xf32> -> vector<8x512xf32>
    %281 = arith.addf %278, %280 : vector<8x512xf32>
    %282 = vector.extract_strided_slice %281 {offsets = [0, 0], sizes = [8, 128], strides = [1, 1]} : vector<8x512xf32> to vector<8x128xf32>
    %283 = arith.negf %282 : vector<8x128xf32>
    %284 = math.exp %283 : vector<8x128xf32>
    %cst_177 = arith.constant 1.000000e+00 : f32
    %285 = vector.broadcast %cst_177 : f32 to vector<8x128xf32>
    %286 = arith.addf %285, %284 : vector<8x128xf32>
    %287 = arith.divf %285, %286 : vector<8x128xf32>
    %288 = vector.extract_strided_slice %281 {offsets = [0, 128], sizes = [8, 128], strides = [1, 1]} : vector<8x512xf32> to vector<8x128xf32>
    %289 = arith.negf %288 : vector<8x128xf32>
    %290 = math.exp %289 : vector<8x128xf32>
    %cst_178 = arith.constant 1.000000e+00 : f32
    %291 = vector.broadcast %cst_178 : f32 to vector<8x128xf32>
    %292 = arith.addf %291, %290 : vector<8x128xf32>
    %293 = arith.divf %291, %292 : vector<8x128xf32>
    %294 = vector.extract_strided_slice %281 {offsets = [0, 256], sizes = [8, 128], strides = [1, 1]} : vector<8x512xf32> to vector<8x128xf32>
    %295 = math.tanh %294 : vector<8x128xf32>
    %296 = vector.extract_strided_slice %281 {offsets = [0, 384], sizes = [8, 128], strides = [1, 1]} : vector<8x512xf32> to vector<8x128xf32>
    %297 = arith.negf %296 : vector<8x128xf32>
    %298 = math.exp %297 : vector<8x128xf32>
    %cst_179 = arith.constant 1.000000e+00 : f32
    %299 = vector.broadcast %cst_179 : f32 to vector<8x128xf32>
    %300 = arith.addf %299, %298 : vector<8x128xf32>
    %301 = arith.divf %299, %300 : vector<8x128xf32>
    %302 = arith.mulf %293, %275 : vector<8x128xf32>
    %303 = arith.mulf %287, %295 : vector<8x128xf32>
    %304 = arith.addf %302, %303 : vector<8x128xf32>
    %305 = math.tanh %304 : vector<8x128xf32>
    %306 = arith.mulf %301, %305 : vector<8x128xf32>
    %c40 = arith.constant 40 : index
    %c0_180 = arith.constant 0 : index
    %307 = vector.load %arg9[%c40, %c0_180] : memref<64x512xf32, #tpu.memory_space<vmem>>, vector<8x512xf32>
    %c0_181 = arith.constant 0 : index
    %c0_182 = arith.constant 0 : index
    %308 = vector.load %arg3[%c0_181, %c0_182] : memref<128x512xf32, #tpu.memory_space<vmem>>, vector<128x512xf32>
    %cst_183 = arith.constant dense<0.000000e+00> : vector<8x512xf32>
    %309 = tpu.matmul %306, %308, %cst_183 {dimension_numbers = #tpu.dot_dimension_numbers<[1], [0], [0], [1], [0, 0, 1, 1], [], []>} : vector<8x128xf32>, vector<128x512xf32>, vector<8x512xf32> -> vector<8x512xf32>
    %310 = arith.addf %307, %309 : vector<8x512xf32>
    %311 = vector.extract_strided_slice %310 {offsets = [0, 0], sizes = [8, 128], strides = [1, 1]} : vector<8x512xf32> to vector<8x128xf32>
    %312 = arith.negf %311 : vector<8x128xf32>
    %313 = math.exp %312 : vector<8x128xf32>
    %cst_184 = arith.constant 1.000000e+00 : f32
    %314 = vector.broadcast %cst_184 : f32 to vector<8x128xf32>
    %315 = arith.addf %314, %313 : vector<8x128xf32>
    %316 = arith.divf %314, %315 : vector<8x128xf32>
    %317 = vector.extract_strided_slice %310 {offsets = [0, 128], sizes = [8, 128], strides = [1, 1]} : vector<8x512xf32> to vector<8x128xf32>
    %318 = arith.negf %317 : vector<8x128xf32>
    %319 = math.exp %318 : vector<8x128xf32>
    %cst_185 = arith.constant 1.000000e+00 : f32
    %320 = vector.broadcast %cst_185 : f32 to vector<8x128xf32>
    %321 = arith.addf %320, %319 : vector<8x128xf32>
    %322 = arith.divf %320, %321 : vector<8x128xf32>
    %323 = vector.extract_strided_slice %310 {offsets = [0, 256], sizes = [8, 128], strides = [1, 1]} : vector<8x512xf32> to vector<8x128xf32>
    %324 = math.tanh %323 : vector<8x128xf32>
    %325 = vector.extract_strided_slice %310 {offsets = [0, 384], sizes = [8, 128], strides = [1, 1]} : vector<8x512xf32> to vector<8x128xf32>
    %326 = arith.negf %325 : vector<8x128xf32>
    %327 = math.exp %326 : vector<8x128xf32>
    %cst_186 = arith.constant 1.000000e+00 : f32
    %328 = vector.broadcast %cst_186 : f32 to vector<8x128xf32>
    %329 = arith.addf %328, %327 : vector<8x128xf32>
    %330 = arith.divf %328, %329 : vector<8x128xf32>
    %331 = arith.mulf %322, %304 : vector<8x128xf32>
    %332 = arith.mulf %316, %324 : vector<8x128xf32>
    %333 = arith.addf %331, %332 : vector<8x128xf32>
    %334 = math.tanh %333 : vector<8x128xf32>
    %335 = arith.mulf %330, %334 : vector<8x128xf32>
    %c48 = arith.constant 48 : index
    %c0_187 = arith.constant 0 : index
    %336 = vector.load %arg9[%c48, %c0_187] : memref<64x512xf32, #tpu.memory_space<vmem>>, vector<8x512xf32>
    %c0_188 = arith.constant 0 : index
    %c0_189 = arith.constant 0 : index
    %337 = vector.load %arg3[%c0_188, %c0_189] : memref<128x512xf32, #tpu.memory_space<vmem>>, vector<128x512xf32>
    %cst_190 = arith.constant dense<0.000000e+00> : vector<8x512xf32>
    %338 = tpu.matmul %335, %337, %cst_190 {dimension_numbers = #tpu.dot_dimension_numbers<[1], [0], [0], [1], [0, 0, 1, 1], [], []>} : vector<8x128xf32>, vector<128x512xf32>, vector<8x512xf32> -> vector<8x512xf32>
    %339 = arith.addf %336, %338 : vector<8x512xf32>
    %340 = vector.extract_strided_slice %339 {offsets = [0, 0], sizes = [8, 128], strides = [1, 1]} : vector<8x512xf32> to vector<8x128xf32>
    %341 = arith.negf %340 : vector<8x128xf32>
    %342 = math.exp %341 : vector<8x128xf32>
    %cst_191 = arith.constant 1.000000e+00 : f32
    %343 = vector.broadcast %cst_191 : f32 to vector<8x128xf32>
    %344 = arith.addf %343, %342 : vector<8x128xf32>
    %345 = arith.divf %343, %344 : vector<8x128xf32>
    %346 = vector.extract_strided_slice %339 {offsets = [0, 128], sizes = [8, 128], strides = [1, 1]} : vector<8x512xf32> to vector<8x128xf32>
    %347 = arith.negf %346 : vector<8x128xf32>
    %348 = math.exp %347 : vector<8x128xf32>
    %cst_192 = arith.constant 1.000000e+00 : f32
    %349 = vector.broadcast %cst_192 : f32 to vector<8x128xf32>
    %350 = arith.addf %349, %348 : vector<8x128xf32>
    %351 = arith.divf %349, %350 : vector<8x128xf32>
    %352 = vector.extract_strided_slice %339 {offsets = [0, 256], sizes = [8, 128], strides = [1, 1]} : vector<8x512xf32> to vector<8x128xf32>
    %353 = math.tanh %352 : vector<8x128xf32>
    %354 = vector.extract_strided_slice %339 {offsets = [0, 384], sizes = [8, 128], strides = [1, 1]} : vector<8x512xf32> to vector<8x128xf32>
    %355 = arith.negf %354 : vector<8x128xf32>
    %356 = math.exp %355 : vector<8x128xf32>
    %cst_193 = arith.constant 1.000000e+00 : f32
    %357 = vector.broadcast %cst_193 : f32 to vector<8x128xf32>
    %358 = arith.addf %357, %356 : vector<8x128xf32>
    %359 = arith.divf %357, %358 : vector<8x128xf32>
    %360 = arith.mulf %351, %333 : vector<8x128xf32>
    %361 = arith.mulf %345, %353 : vector<8x128xf32>
    %362 = arith.addf %360, %361 : vector<8x128xf32>
    %363 = math.tanh %362 : vector<8x128xf32>
    %364 = arith.mulf %359, %363 : vector<8x128xf32>
    %c56 = arith.constant 56 : index
    %c0_194 = arith.constant 0 : index
    %365 = vector.load %arg9[%c56, %c0_194] : memref<64x512xf32, #tpu.memory_space<vmem>>, vector<8x512xf32>
    %c0_195 = arith.constant 0 : index
    %c0_196 = arith.constant 0 : index
    %366 = vector.load %arg3[%c0_195, %c0_196] : memref<128x512xf32, #tpu.memory_space<vmem>>, vector<128x512xf32>
    %cst_197 = arith.constant dense<0.000000e+00> : vector<8x512xf32>
    %367 = tpu.matmul %364, %366, %cst_197 {dimension_numbers = #tpu.dot_dimension_numbers<[1], [0], [0], [1], [0, 0, 1, 1], [], []>} : vector<8x128xf32>, vector<128x512xf32>, vector<8x512xf32> -> vector<8x512xf32>
    %368 = arith.addf %365, %367 : vector<8x512xf32>
    %369 = vector.extract_strided_slice %368 {offsets = [0, 0], sizes = [8, 128], strides = [1, 1]} : vector<8x512xf32> to vector<8x128xf32>
    %370 = arith.negf %369 : vector<8x128xf32>
    %371 = math.exp %370 : vector<8x128xf32>
    %cst_198 = arith.constant 1.000000e+00 : f32
    %372 = vector.broadcast %cst_198 : f32 to vector<8x128xf32>
    %373 = arith.addf %372, %371 : vector<8x128xf32>
    %374 = arith.divf %372, %373 : vector<8x128xf32>
    %375 = vector.extract_strided_slice %368 {offsets = [0, 128], sizes = [8, 128], strides = [1, 1]} : vector<8x512xf32> to vector<8x128xf32>
    %376 = arith.negf %375 : vector<8x128xf32>
    %377 = math.exp %376 : vector<8x128xf32>
    %cst_199 = arith.constant 1.000000e+00 : f32
    %378 = vector.broadcast %cst_199 : f32 to vector<8x128xf32>
    %379 = arith.addf %378, %377 : vector<8x128xf32>
    %380 = arith.divf %378, %379 : vector<8x128xf32>
    %381 = vector.extract_strided_slice %368 {offsets = [0, 256], sizes = [8, 128], strides = [1, 1]} : vector<8x512xf32> to vector<8x128xf32>
    %382 = math.tanh %381 : vector<8x128xf32>
    %383 = vector.extract_strided_slice %368 {offsets = [0, 384], sizes = [8, 128], strides = [1, 1]} : vector<8x512xf32> to vector<8x128xf32>
    %384 = arith.negf %383 : vector<8x128xf32>
    %385 = math.exp %384 : vector<8x128xf32>
    %cst_200 = arith.constant 1.000000e+00 : f32
    %386 = vector.broadcast %cst_200 : f32 to vector<8x128xf32>
    %387 = arith.addf %386, %385 : vector<8x128xf32>
    %388 = arith.divf %386, %387 : vector<8x128xf32>
    %389 = arith.mulf %380, %362 : vector<8x128xf32>
    %390 = arith.mulf %374, %382 : vector<8x128xf32>
    %391 = arith.addf %389, %390 : vector<8x128xf32>
    %392 = math.tanh %391 : vector<8x128xf32>
    %393 = arith.mulf %388, %392 : vector<8x128xf32>
    %c0_201 = arith.constant 0 : index
    %c0_202 = arith.constant 0 : index
    %394 = vector.load %arg5[%c0_201, %c0_202] : memref<128x256xf32, #tpu.memory_space<vmem>>, vector<128x256xf32>
    %cst_203 = arith.constant dense<0.000000e+00> : vector<8x256xf32>
    %395 = tpu.matmul %393, %394, %cst_203 {dimension_numbers = #tpu.dot_dimension_numbers<[1], [0], [0], [1], [0, 0, 1, 1], [], []>} : vector<8x128xf32>, vector<128x256xf32>, vector<8x256xf32> -> vector<8x256xf32>
    %c0_204 = arith.constant 0 : index
    %c0_205 = arith.constant 0 : index
    %396 = vector.load %arg6[%c0_204, %c0_205] : memref<1x256xf32, #tpu.memory_space<vmem>>, vector<1x256xf32>
    %397 = vector.broadcast %396 : vector<1x256xf32> to vector<8x256xf32>
    %398 = arith.addf %395, %397 : vector<8x256xf32>
    %cst_206 = arith.constant 0.000000e+00 : f32
    %399 = vector.broadcast %cst_206 : f32 to vector<8x256xf32>
    %400 = arith.maximumf %398, %399 : vector<8x256xf32>
    %c0_207 = arith.constant 0 : index
    %c0_208 = arith.constant 0 : index
    %401 = vector.load %arg7[%c0_207, %c0_208] : memref<8x256xf32, #tpu.memory_space<vmem>>, vector<8x256xf32>
    tpu.vector_store %arg7[%c0_207, %c0_208], %400 {strides = array<i32>} : memref<8x256xf32, #tpu.memory_space<vmem>>, vector<8x256xf32>,
    return
  }
}

</mosaic_0001>

<bundles_post_ra>
// kernel: tpu_custom_call.1
= control target key start
LH: loop header
LB: loop body
LE: loop exit
PB: predicated region body
PF: predicated region fallthrough
CT: control target
= control target key end

     0   :  { %12 = vsyncpa [#allocation7], 0  ;;  %s5113_s0 = inlined_call_operand.vmem [shape: s32[2,8], index: 0, kind: input, shape index: {}]   ;;  %s5114_s1 = inlined_call_operand.vmem [shape: f32[2000,64], index: 1, kind: input, shape index: {}]   ;;  %s5115_s2 = inlined_call_operand.vmem [shape: f32[64,512], index: 2, kind: input, shape index: {}]   ;;  %s5116_s3 = inlined_call_operand.vmem [shape: f32[128,512], index: 3, kind: input, shape index: {}]   ;;  %s5117_s4 = inlined_call_operand.vmem [shape: f32[1,512], index: 4, kind: input, shape index: {}]   ;;  %s5118_s5 = inlined_call_operand.vmem [shape: f32[128,256], index: 5, kind: input, shape index: {}]   ;;  %s5119_s6 = inlined_call_operand.vmem [shape: f32[1,256], index: 6, kind: input, shape index: {}]   ;;  %s5120_s7 = inlined_call_operand.hbm [shape: f32[8,256], index: 7, kind: output, shape index: {}]  }
   0x1   :  { %13 = vsyncpa [#allocation6], 0  ;;  %s20_s26 = sshll.u32 %s5113_s0, 4  ;;  %s21_s26 = int_to_ptr.vmem [resolvable:$true] %s20_s26 }
   0x2   :  { %s3381_s27 = scalar_lea.vmem %s21_s26, 32  ;;  %p3386_p1 = scmp.lt.s32.totalorder %s21_s26, %s21_s26 }
   0x3   :  { %p3382_p0 = scmp.ne.s32.totalorder %s21_s26, %s3381_s27  ;;  %p3387_p2 = scmp.lt.s32.totalorder %s3381_s27, %s3381_s27 }
   0x5   :  { %p3388_p3 = por %p3387_p2, %p3386_p1 }
   0x7   :  { %p3389_p4 = pnand %p3388_p3, %p3382_p0 }
   0x9   :  { %3392 = shalt.err (!%p3389_p4)
}
   0xa   :  { %s3449_s28 = smov [#allocation5]  }
   0xb   :  { %23 = dma.vmem_to_smem %s21_s26, 32, %s3449_s28, [#allocation7]  }
   0xc   :  { %3413 = dma.done.wait [#allocation7], 32  }
   0xd   :  { %3414 = vsyncadd [#allocation7], 4294967264 }
   0xe   :  { %37 = sfence }
   0xf   :  { %vm38_vm0 = vcmask 521216   ;;  %s47_s29 = sld [smem:[#allocation5]]  ;;  %v5121_v0 = vmov 0.0  }
  0x10   :  { %39 = vst.msk [vmem:[#allocation2 + $0x2] sm:$0x3f] %vm38_vm0, %v5121_v0  ;;  %40 = vst.msk [vmem:[#allocation2 + $0xa] sm:$0x3f] %vm38_vm0, %v5121_v0 }
  0x11   :  { %41 = vst.msk [vmem:[#allocation2 + $0x12] sm:$0x3f] %vm38_vm0, %v5121_v0  ;;  %42 = vst.msk [vmem:[#allocation2 + $0x1a] sm:$0x3f] %vm38_vm0, %v5121_v0 }
  0x12   :  { %43 = vst.msk [vmem:[#allocation2 + $0x22] sm:$0x3f] %vm38_vm0, %v5121_v0  ;;  %44 = vst.msk [vmem:[#allocation2 + $0x2a] sm:$0x3f] %vm38_vm0, %v5121_v0 }
  0x13   :  { %45 = vst.msk [vmem:[#allocation2 + $0x32] sm:$0x3f] %vm38_vm0, %v5121_v0  ;;  %46 = vst.msk [vmem:[#allocation2 + $0x3a] sm:$0x3f] %vm38_vm0, %v5121_v0 }
  0x15   :  { %s48_s8 = scalar_lea.vmem %s5114_s1, %s47_s29 }
  0x16   :  { %v67_v1 = vld [vmem:[%s48_s8] sm:$0x1] }
  0x17   :  { %68 = vst [vmem:[#allocation2] sm:$0x1] %v67_v1 }
  0x18   :  { %94 = vsyncadd [#allocation4], 16  ;;  %s3115_s9 = sld [smem:[#allocation5 + $0x80]] }
  0x1e   :  { %s96_s12 = scalar_lea.vmem %s5114_s1, %s3115_s9 }
  0x1f   :  { %v117_v2 = vld [vmem:[%s96_s12] sm:$0x1] }
  0x20   :  { %118 = vst [vmem:[#allocation2 + $0x1] sm:$0x1] %v117_v2 }
  0x21   :  { %144 = vsyncadd [#allocation4 + $0x1], 16  ;;  %s3116_s13 = sld [smem:[#allocation5 + $0x1]] }
  0x27   :  { %s146_s16 = scalar_lea.vmem %s5114_s1, %s3116_s13 }
  0x28   :  { %v167_v3 = vld [vmem:[%s146_s16] sm:$0x1] }
  0x29   :  { %168 = vst [vmem:[#allocation2 + $0x8] sm:$0x1] %v167_v3 }
  0x2a   :  { %194 = vsyncadd [#allocation4 + $0x2], 16  ;;  %s3117_s17 = sld [smem:[#allocation5 + $0x81]] }
  0x30   :  { %s196_s20 = scalar_lea.vmem %s5114_s1, %s3117_s17 }
  0x31   :  { %v217_v4 = vld [vmem:[%s196_s20] sm:$0x1] }
  0x32   :  { %218 = vst [vmem:[#allocation2 + $0x9] sm:$0x1] %v217_v4 }
  0x33   :  { %244 = vsyncadd [#allocation4 + $0x3], 16  ;;  %s3118_s21 = sld [smem:[#allocation5 + $0x2]] }
  0x39   :  { %s246_s24 = scalar_lea.vmem %s5114_s1, %s3118_s21 }
  0x3a   :  { %v267_v5 = vld [vmem:[%s246_s24] sm:$0x1] }
  0x3b   :  { %268 = vst [vmem:[#allocation2 + $0x10] sm:$0x1] %v267_v5 }
  0x3c   :  { %294 = vsyncadd [#allocation4 + $0x4], 16  ;;  %s3119_s25 = sld [smem:[#allocation5 + $0x82]] }
  0x42   :  { %s296_s28 = scalar_lea.vmem %s5114_s1, %s3119_s25 }
  0x43   :  { %v317_v6 = vld [vmem:[%s296_s28] sm:$0x1] }
  0x44   :  { %318 = vst [vmem:[#allocation2 + $0x11] sm:$0x1] %v317_v6 }
  0x45   :  { %344 = vsyncadd [#allocation4 + $0x5], 16  ;;  %s3120_s29 = sld [smem:[#allocation5 + $0x3]] }
  0x4b   :  { %s346_s8 = scalar_lea.vmem %s5114_s1, %s3120_s29 }
  0x4c   :  { %v367_v7 = vld [vmem:[%s346_s8] sm:$0x1] }
  0x4d   :  { %368 = vst [vmem:[#allocation2 + $0x18] sm:$0x1] %v367_v7 }
  0x4e   :  { %394 = vsyncadd [#allocation4 + $0x6], 16  ;;  %s3121_s9 = sld [smem:[#allocation5 + $0x83]] }
  0x54   :  { %s396_s12 = scalar_lea.vmem %s5114_s1, %s3121_s9 }
  0x55   :  { %v417_v8 = vld [vmem:[%s396_s12] sm:$0x1] }
  0x56   :  { %418 = vst [vmem:[#allocation2 + $0x19] sm:$0x1] %v417_v8 }
  0x57   :  { %444 = vsyncadd [#allocation4 + $0x7], 16  ;;  %s3122_s13 = sld [smem:[#allocation5 + $0x4]] }
  0x5d   :  { %s446_s16 = scalar_lea.vmem %s5114_s1, %s3122_s13 }
  0x5e   :  { %v467_v9 = vld [vmem:[%s446_s16] sm:$0x1] }
  0x5f   :  { %468 = vst [vmem:[#allocation2 + $0x20] sm:$0x1] %v467_v9 }
  0x60   :  { %494 = vsyncadd [#allocation4 + $0x8], 16  ;;  %s3123_s17 = sld [smem:[#allocation5 + $0x84]] }
  0x66   :  { %s496_s20 = scalar_lea.vmem %s5114_s1, %s3123_s17 }
  0x67   :  { %v517_v10 = vld [vmem:[%s496_s20] sm:$0x1] }
  0x68   :  { %518 = vst [vmem:[#allocation2 + $0x21] sm:$0x1] %v517_v10 }
  0x69   :  { %544 = vsyncadd [#allocation4 + $0x9], 16  ;;  %s3124_s21 = sld [smem:[#allocation5 + $0x5]] }
  0x6f   :  { %s546_s24 = scalar_lea.vmem %s5114_s1, %s3124_s21 }
  0x70   :  { %v567_v11 = vld [vmem:[%s546_s24] sm:$0x1] }
  0x71   :  { %568 = vst [vmem:[#allocation2 + $0x28] sm:$0x1] %v567_v11 }
  0x72   :  { %594 = vsyncadd [#allocation4 + $0xa], 16  ;;  %s3125_s25 = sld [smem:[#allocation5 + $0x85]] }
  0x78   :  { %s596_s28 = scalar_lea.vmem %s5114_s1, %s3125_s25 }
  0x79   :  { %v617_v12 = vld [vmem:[%s596_s28] sm:$0x1] }
  0x7a   :  { %618 = vst [vmem:[#allocation2 + $0x29] sm:$0x1] %v617_v12 }
  0x7b   :  { %644 = vsyncadd [#allocation4 + $0xb], 16  ;;  %s3126_s29 = sld [smem:[#allocation5 + $0x6]] }
  0x81   :  { %s646_s8 = scalar_lea.vmem %s5114_s1, %s3126_s29 }
  0x82   :  { %v667_v13 = vld [vmem:[%s646_s8] sm:$0x1] }
  0x83   :  { %668 = vst [vmem:[#allocation2 + $0x30] sm:$0x1] %v667_v13 }
  0x84   :  { %694 = vsyncadd [#allocation4 + $0xc], 16  ;;  %s3127_s9 = sld [smem:[#allocation5 + $0x86]] }
  0x8a   :  { %s696_s12 = scalar_lea.vmem %s5114_s1, %s3127_s9 }
  0x8b   :  { %v717_v14 = vld [vmem:[%s696_s12] sm:$0x1] }
  0x8c   :  { %718 = vst [vmem:[#allocation2 + $0x31] sm:$0x1] %v717_v14 }
  0x8d   :  { %744 = vsyncadd [#allocation4 + $0xd], 16  ;;  %s3128_s13 = sld [smem:[#allocation5 + $0x7]] }
  0x93   :  { %s746_s16 = scalar_lea.vmem %s5114_s1, %s3128_s13 }
  0x94   :  { %v767_v15 = vld [vmem:[%s746_s16] sm:$0x1] }
  0x95   :  { %768 = vst [vmem:[#allocation2 + $0x38] sm:$0x1] %v767_v15 }
  0x96   :  { %794 = vsyncadd [#allocation4 + $0xe], 16  ;;  %s3129_s17 = sld [smem:[#allocation5 + $0x87]] }
  0x9c   :  { %s796_s20 = scalar_lea.vmem %s5114_s1, %s3129_s17 }
  0x9d   :  { %v817_v16 = vld [vmem:[%s796_s20] sm:$0x1] }
  0x9e   :  { %818 = vst [vmem:[#allocation2 + $0x39] sm:$0x1] %v817_v16 }
  0x9f   :  { %844 = vsyncadd [#allocation4 + $0xf], 16 }
  0xa0   :  { %3415 = dma.done.wait [#allocation4], 16 }
  0xa1   :  { %3416 = vsyncadd [#allocation4], 4294967280 }
  0xa2   :  { %3417 = dma.done.wait [#allocation4 + $0x1], 16 }
  0xa3   :  { %3418 = vsyncadd [#allocation4 + $0x1], 4294967280 }
  0xa4   :  { %3419 = dma.done.wait [#allocation4 + $0x2], 16 }
  0xa5   :  { %3420 = vsyncadd [#allocation4 + $0x2], 4294967280 }
  0xa6   :  { %3421 = dma.done.wait [#allocation4 + $0x3], 16 }
  0xa7   :  { %3422 = vsyncadd [#allocation4 + $0x3], 4294967280 }
  0xa8   :  { %3423 = dma.done.wait [#allocation4 + $0x4], 16 }
  0xa9   :  { %3424 = vsyncadd [#allocation4 + $0x4], 4294967280 }
  0xaa   :  { %3425 = dma.done.wait [#allocation4 + $0x5], 16 }
  0xab   :  { %3426 = vsyncadd [#allocation4 + $0x5], 4294967280 }
  0xac   :  { %3427 = dma.done.wait [#allocation4 + $0x6], 16 }
  0xad   :  { %3428 = vsyncadd [#allocation4 + $0x6], 4294967280 }
  0xae   :  { %3429 = dma.done.wait [#allocation4 + $0x7], 16 }
  0xaf   :  { %3430 = vsyncadd [#allocation4 + $0x7], 4294967280 }
  0xb0   :  { %3431 = dma.done.wait [#allocation4 + $0x8], 16 }
  0xb1   :  { %3432 = vsyncadd [#allocation4 + $0x8], 4294967280 }
  0xb2   :  { %3433 = dma.done.wait [#allocation4 + $0x9], 16 }
  0xb3   :  { %3434 = vsyncadd [#allocation4 + $0x9], 4294967280 }
  0xb4   :  { %3435 = dma.done.wait [#allocation4 + $0xa], 16 }
  0xb5   :  { %3436 = vsyncadd [#allocation4 + $0xa], 4294967280 }
  0xb6   :  { %3437 = dma.done.wait [#allocation4 + $0xb], 16 }
  0xb7   :  { %3438 = vsyncadd [#allocation4 + $0xb], 4294967280 }
  0xb8   :  { %3439 = dma.done.wait [#allocation4 + $0xc], 16 }
  0xb9   :  { %3440 = vsyncadd [#allocation4 + $0xc], 4294967280 }
  0xba   :  { %3441 = dma.done.wait [#allocation4 + $0xd], 16 }
  0xbb   :  { %3442 = vsyncadd [#allocation4 + $0xd], 4294967280 }
  0xbc   :  { %3443 = dma.done.wait [#allocation4 + $0xe], 16 }
  0xbd   :  { %3444 = vsyncadd [#allocation4 + $0xe], 4294967280 }
  0xbe   :  { %3445 = dma.done.wait [#allocation4 + $0xf], 16 }
  0xbf   :  { %3446 = vsyncadd [#allocation4 + $0xf], 4294967280  ;;  %1029 = vmatprep.mubr.f32.mxu0 %v5121_v0  ;;  %1142 = vmatprep.mubr.f32.mxu1 %v5121_v0  ;;  %v915_v17 = vld [vmem:[%s5115_s2 + $0xe8] sm:$0xff]  ;;  %v917_v18 = vld [vmem:[%s5115_s2 + $0xf8] sm:$0xff]  ;;  %vm940_vm1 = vcmask 523264   ;;  %s3451_s10 = smov [#allocation8]  }
  0xc0   :  { %v914_v19 = vld [vmem:[%s5115_s2 + $0xe0] sm:$0xff]  ;;  %981 = vmatprep.subr.mxu0 %v915_v17  ;;  %1094 = vmatprep.subr.mxu1 %v917_v18  ;;  %v916_v20 = vld [vmem:[%s5115_s2 + $0xf0] sm:$0xff]  ;;  %v911_v21 = vld [vmem:[%s5115_s2 + $0xc8] sm:$0xff]  ;;  %s2804_s11 = sshll.u32 %s3451_s10, 4  ;;  %s2805_s11 = int_to_ptr.vmem [resolvable:$true] %s2804_s11 }
  0xc1   :  { %v913_v22 = vld [vmem:[%s5115_s2 + $0xd8] sm:$0xff]  ;;  %982 = vmatpush1.msra.mxu0 %v914_v19  ;;  %1095 = vmatpush1.msra.mxu1 %v916_v20  ;;  %v910_v23 = vld [vmem:[%s5115_s2 + $0xc0] sm:$0xff]  ;;  %v912_v24 = vld [vmem:[%s5115_s2 + $0xd0] sm:$0xff]  ;;  %s3393_s12 = scalar_lea.vmem %s2805_s11, 256  ;;  %p3398_p6 = scmp.lt.s32.totalorder %s2805_s11, %s2805_s11 }
  0xc2   :  { %v907_v25 = vld [vmem:[%s5115_s2 + $0xa8] sm:$0xff]  ;;  %983 = vmatprep.subr.mxu0 %v911_v21  ;;  %1096 = vmatprep.subr.mxu1 %v913_v22  ;;  %v909_v26 = vld [vmem:[%s5115_s2 + $0xb8] sm:$0xff]  ;;  %v906_v27 = vld [vmem:[%s5115_s2 + $0xa0] sm:$0xff]  ;;  %p3394_p5 = scmp.ne.s32.totalorder %s2805_s11, %s3393_s12  ;;  %p3399_p7 = scmp.lt.s32.totalorder %s3393_s12, %s3393_s12 }
  0xc3   :  { %v908_v28 = vld [vmem:[%s5115_s2 + $0xb0] sm:$0xff]  ;;  %984 = vmatpush1.msra.mxu0 %v910_v23  ;;  %1097 = vmatpush1.msra.mxu1 %v912_v24  ;;  %v903_v29 = vld [vmem:[%s5115_s2 + $0x88] sm:$0xff]  ;;  %v905_v30 = vld [vmem:[%s5115_s2 + $0x98] sm:$0xff] }
  0xc4   :  { %985 = vmatprep.subr.mxu0 %v907_v25  ;;  %1098 = vmatprep.subr.mxu1 %v909_v26  ;;  %v902_v31 = vld [vmem:[%s5115_s2 + $0x80] sm:$0xff]  ;;  %v904_v32 = vld [vmem:[%s5115_s2 + $0x90] sm:$0xff]  ;;  %v899_v33 = vld [vmem:[%s5115_s2 + $0x68] sm:$0xff]  ;;  %p3400_p8 = por %p3399_p7, %p3398_p6 }
  0xc5   :  { %986 = vmatpush1.msra.mxu0 %v906_v27  ;;  %1099 = vmatpush1.msra.mxu1 %v908_v28  ;;  %v901_v34 = vld [vmem:[%s5115_s2 + $0x78] sm:$0xff]  ;;  %v898_v35 = vld [vmem:[%s5115_s2 + $0x60] sm:$0xff]  ;;  %v900_v36 = vld [vmem:[%s5115_s2 + $0x70] sm:$0xff] }
  0xc6   :  { %987 = vmatprep.subr.mxu0 %v903_v29  ;;  %1100 = vmatprep.subr.mxu1 %v905_v30  ;;  %v895_v37 = vld [vmem:[%s5115_s2 + $0x48] sm:$0xff]  ;;  %v897_v38 = vld [vmem:[%s5115_s2 + $0x58] sm:$0xff]  ;;  %v894_v39 = vld [vmem:[%s5115_s2 + $0x40] sm:$0xff]  ;;  %p3401_p9 = pnand %p3400_p8, %p3394_p5 }
  0xc7   :  { %988 = vmatpush1.msra.mxu0 %v902_v31  ;;  %1101 = vmatpush1.msra.mxu1 %v904_v32  ;;  %v896_v40 = vld [vmem:[%s5115_s2 + $0x50] sm:$0xff]  ;;  %v891_v41 = vld [vmem:[%s5115_s2 + $0x28] sm:$0xff]  ;;  %v893_v42 = vld [vmem:[%s5115_s2 + $0x38] sm:$0xff] }
  0xc8   :  { %989 = vmatprep.subr.mxu0 %v899_v33  ;;  %1102 = vmatprep.subr.mxu1 %v901_v34  ;;  %v890_v43 = vld [vmem:[%s5115_s2 + $0x20] sm:$0xff]  ;;  %v892_v44 = vld [vmem:[%s5115_s2 + $0x30] sm:$0xff]  ;;  %v887_v45 = vld [vmem:[%s5115_s2 + $0x8] sm:$0xff] }
  0xc9   :  { %990 = vmatpush1.msra.mxu0 %v898_v35  ;;  %1103 = vmatpush1.msra.mxu1 %v900_v36  ;;  %v889_v46 = vld [vmem:[%s5115_s2 + $0x18] sm:$0xff]  ;;  %v886_v47 = vld [vmem:[%s5115_s2] sm:$0xff]  ;;  %v888_v48 = vld [vmem:[%s5115_s2 + $0x10] sm:$0xff] }
  0xca   :  { %991 = vmatprep.subr.mxu0 %v895_v37  ;;  %1104 = vmatprep.subr.mxu1 %v897_v38  ;;  %v878_v49 = vld [vmem:[#allocation2] sm:$0xff]  ;;  %v3652_v50 = vld [vmem:[%s5116_s3 + $0x1e8] sm:$0xff]  ;;  %v3657_v51 = vld [vmem:[%s5116_s3 + $0x1f8] sm:$0xff] }
  0xcb   :  { %992 = vmatpush1.msra.mxu0 %v894_v39  ;;  %1105 = vmatpush1.msra.mxu1 %v896_v40  ;;  %5215 = vst [vmem:[#allocation43_spill] sm:$0xff] %v3652_v50  ;;  %5216 = vst [vmem:[#allocation44_spill] sm:$0xff] %v3657_v51  ;;  %v3662_v52 = vld [vmem:[%s5116_s3 + $0x1e0] sm:$0xff]  ;;  %v3667_v53 = vld [vmem:[%s5116_s3 + $0x1f0] sm:$0xff] }
  0xcc   :  { %993 = vmatprep.subr.mxu0 %v891_v41  ;;  %1106 = vmatprep.subr.mxu1 %v893_v42  ;;  %v3674_v54 = vld [vmem:[%s5116_s3 + $0x1c8] sm:$0xff]  ;;  %v3679_v55 = vld [vmem:[%s5116_s3 + $0x1d8] sm:$0xff]  ;;  %v3688_v56 = vld [vmem:[%s5116_s3 + $0x1c0] sm:$0xff] }
  0xcd   :  { %994 = vmatpush1.msra.mxu0 %v890_v43  ;;  %1107 = vmatpush1.msra.mxu1 %v892_v44  ;;  %v3693_v57 = vld [vmem:[%s5116_s3 + $0x1d0] sm:$0xff]  ;;  %v879_v58 = vld [vmem:[#allocation2 + $0x8] sm:$0xff]  ;;  %v3707_v60 = vld [vmem:[%s5116_s3 + $0x1b8] sm:$0xff] }
  0xce   :  { %995 = vmatprep.subr.mxu0 %v887_v45  ;;  %1108 = vmatprep.subr.mxu1 %v889_v46  ;;  %v3702_v59 = vld [vmem:[%s5116_s3 + $0x1a8] sm:$0xff]  ;;  %v3714_v61 = vld [vmem:[%s5116_s3 + $0x1a0] sm:$0xff]  ;;  %v3719_v62 = vld [vmem:[%s5116_s3 + $0x1b0] sm:$0xff] }
  0xcf   :  { %996 = vmatpush1.msra.mxu0 %v886_v47  ;;  %1109 = vmatpush1.msra.mxu1 %v888_v48  ;;  %v3726_v63 = vld [vmem:[%s5116_s3 + $0x188] sm:$0xff]  ;;  %v3731_v1 = vld [vmem:[%s5116_s3 + $0x198] sm:$0xff]  ;;  %v3740_v2 = vld [vmem:[%s5116_s3 + $0x180] sm:$0xff] }
  0xd0   :  { %3130 = vmatmul.mubr.msk.f32.vlgmr.msra.gmra.mxu0 %vm940_vm1, %v878_v49  ;;  %3138 = vmatmul.mubr.msk.f32.vlgmr.msra.gmra.mxu1 %vm940_vm1, %v878_v49  ;;  %v3745_v3 = vld [vmem:[%s5116_s3 + $0x190] sm:$0xff]  ;;  %v3754_v5 = vld [vmem:[%s5116_s3 + $0x168] sm:$0xff]  ;;  %v3759_v6 = vld [vmem:[%s5116_s3 + $0x178] sm:$0xff] }
  0xd1   :  { %1291 = vmatprep.subr.mxu0 %v3652_v50  ;;  %1362 = vmatprep.subr.mxu1 %v3657_v51  ;;  %v880_v4 = vld [vmem:[#allocation2 + $0x10] sm:$0xff]  ;;  %v3766_v7 = vld [vmem:[%s5116_s3 + $0x160] sm:$0xff]  ;;  %v3778_v9 = vld [vmem:[%s5116_s3 + $0x148] sm:$0xff] }
  0xd2   :  { %1292 = vmatpush1.msra.mxu0 %v3662_v52  ;;  %1363 = vmatpush1.msra.mxu1 %v3667_v53  ;;  %v3771_v8 = vld [vmem:[%s5116_s3 + $0x170] sm:$0xff]  ;;  %v3783_v10 = vld [vmem:[%s5116_s3 + $0x158] sm:$0xff]  ;;  %v3792_v11 = vld [vmem:[%s5116_s3 + $0x140] sm:$0xff] }
  0xd3   :  { %1293 = vmatprep.subr.mxu0 %v3674_v54  ;;  %1364 = vmatprep.subr.mxu1 %v3679_v55  ;;  %v3797_v12 = vld [vmem:[%s5116_s3 + $0x150] sm:$0xff]  ;;  %v881_v13 = vld [vmem:[#allocation2 + $0x18] sm:$0xff]  ;;  %v3806_v14 = vld [vmem:[%s5116_s3 + $0x128] sm:$0xff] }
  0xd4   :  { %1035 = vmatprep.mubr.f32.mxu0 %v5121_v0  ;;  %1148 = vmatprep.mubr.f32.mxu1 %v5121_v0  ;;  %v3811_v15 = vld [vmem:[%s5116_s3 + $0x138] sm:$0xff]  ;;  %v3818_v16 = vld [vmem:[%s5116_s3 + $0x120] sm:$0xff]  ;;  %v3823_v17 = vld [vmem:[%s5116_s3 + $0x130] sm:$0xff] }
  0xd5   :  { %1294 = vmatpush1.msra.mxu0 %v3688_v56  ;;  %1365 = vmatpush1.msra.mxu1 %v3693_v57  ;;  %v3830_v18 = vld [vmem:[%s5116_s3 + $0x108] sm:$0xff]  ;;  %v3835_v19 = vld [vmem:[%s5116_s3 + $0x118] sm:$0xff]  ;;  %v3844_v20 = vld [vmem:[%s5116_s3 + $0x100] sm:$0xff] }
  0xd6   :  { %3131 = vmatmul.mubr.msk.f32.gmra.mxu0 %vm940_vm1, %v879_v58  ;;  %3139 = vmatmul.mubr.msk.f32.gmra.mxu1 %vm940_vm1, %v879_v58  ;;  %v3849_v21 = vld [vmem:[%s5116_s3 + $0x110] sm:$0xff]  ;;  %v882_v22 = vld [vmem:[#allocation2 + $0x20] sm:$0xff]  ;;  %v3858_v23 = vld [vmem:[%s5116_s3 + $0xe8] sm:$0xff] }
  0xd7   :  { %1295 = vmatprep.subr.mxu0 %v3702_v59  ;;  %1366 = vmatprep.subr.mxu1 %v3707_v60  ;;  %v3863_v24 = vld [vmem:[%s5116_s3 + $0xf8] sm:$0xff]  ;;  %v3870_v25 = vld [vmem:[%s5116_s3 + $0xe0] sm:$0xff]  ;;  %v3875_v26 = vld [vmem:[%s5116_s3 + $0xf0] sm:$0xff] }
  0xd8   :  { %1296 = vmatpush1.msra.mxu0 %v3714_v61  ;;  %1367 = vmatpush1.msra.mxu1 %v3719_v62  ;;  %v3882_v27 = vld [vmem:[%s5116_s3 + $0xc8] sm:$0xff]  ;;  %v3887_v28 = vld [vmem:[%s5116_s3 + $0xd8] sm:$0xff]  ;;  %v3896_v29 = vld [vmem:[%s5116_s3 + $0xc0] sm:$0xff] }
  0xd9   :  { %1297 = vmatprep.subr.mxu0 %v3726_v63  ;;  %1368 = vmatprep.subr.mxu1 %v3731_v1  ;;  %v3901_v30 = vld [vmem:[%s5116_s3 + $0xd0] sm:$0xff]  ;;  %v883_v31 = vld [vmem:[#allocation2 + $0x28] sm:$0xff]  ;;  %v3915_v33 = vld [vmem:[%s5116_s3 + $0xb8] sm:$0xff] }
  0xda   :  { %1041 = vmatprep.mubr.f32.mxu0 %v5121_v0  ;;  %1154 = vmatprep.mubr.f32.mxu1 %v5121_v0  ;;  %v3910_v32 = vld [vmem:[%s5116_s3 + $0xa8] sm:$0xff]  ;;  %v3922_v34 = vld [vmem:[%s5116_s3 + $0xa0] sm:$0xff]  ;;  %v3927_v35 = vld [vmem:[%s5116_s3 + $0xb0] sm:$0xff] }
  0xdb   :  { %1298 = vmatpush1.msra.mxu0 %v3740_v2  ;;  %1369 = vmatpush1.msra.mxu1 %v3745_v3  ;;  %5217 = vst [vmem:[#allocation45_spill] sm:$0xff] %v3927_v35  ;;  %v3934_v36 = vld [vmem:[%s5116_s3 + $0x88] sm:$0xff]  ;;  %v3939_v37 = vld [vmem:[%s5116_s3 + $0x98] sm:$0xff]  ;;  %v3948_v38 = vld [vmem:[%s5116_s3 + $0x80] sm:$0xff] }
  0xdc   :  { %3132 = vmatmul.mubr.msk.f32.gmra.mxu0 %vm940_vm1, %v880_v4  ;;  %3140 = vmatmul.mubr.msk.f32.gmra.mxu1 %vm940_vm1, %v880_v4  ;;  %5218 = vst [vmem:[#allocation46_spill] sm:$0xff] %v3934_v36  ;;  %5219 = vst [vmem:[#allocation47_spill] sm:$0xff] %v3939_v37  ;;  %v3953_v39 = vld [vmem:[%s5116_s3 + $0x90] sm:$0xff]  ;;  %v3962_v41 = vld [vmem:[%s5116_s3 + $0x68] sm:$0xff] }
  0xdd   :  { %1299 = vmatprep.subr.mxu0 %v3754_v5  ;;  %1370 = vmatprep.subr.mxu1 %v3759_v6  ;;  %5220 = vst [vmem:[#allocation48_spill] sm:$0xff] %v3948_v38  ;;  %5221 = vst [vmem:[#allocation49_spill] sm:$0xff] %v3953_v39  ;;  %v884_v40 = vld [vmem:[#allocation2 + $0x30] sm:$0xff]  ;;  %v3967_v42 = vld [vmem:[%s5116_s3 + $0x78] sm:$0xff] }
  0xde   :  { %1300 = vmatpush1.msra.mxu0 %v3766_v7  ;;  %1371 = vmatpush1.msra.mxu1 %v3771_v8  ;;  %5222 = vst [vmem:[#allocation50_spill] sm:$0xff] %v3962_v41  ;;  %5223 = vst [vmem:[#allocation51_spill] sm:$0xff] %v3967_v42  ;;  %v3974_v43 = vld [vmem:[%s5116_s3 + $0x60] sm:$0xff]  ;;  %v3979_v44 = vld [vmem:[%s5116_s3 + $0x70] sm:$0xff] }
  0xdf   :  { %1301 = vmatprep.subr.mxu0 %v3778_v9  ;;  %1372 = vmatprep.subr.mxu1 %v3783_v10  ;;  %5224 = vst [vmem:[#allocation52_spill] sm:$0xff] %v3974_v43  ;;  %5225 = vst [vmem:[#allocation53_spill] sm:$0xff] %v3979_v44  ;;  %v3986_v45 = vld [vmem:[%s5116_s3 + $0x48] sm:$0xff]  ;;  %v3991_v46 = vld [vmem:[%s5116_s3 + $0x58] sm:$0xff] }
  0xe0   :  { %1047 = vmatprep.mubr.f32.mxu0 %v5121_v0  ;;  %1160 = vmatprep.mubr.f32.mxu1 %v5121_v0  ;;  %5226 = vst [vmem:[#allocation54_spill] sm:$0xff] %v3986_v45  ;;  %5227 = vst [vmem:[#allocation55_spill] sm:$0xff] %v3991_v46  ;;  %v4000_v47 = vld [vmem:[%s5116_s3 + $0x40] sm:$0xff]  ;;  %v4005_v48 = vld [vmem:[%s5116_s3 + $0x50] sm:$0xff] }
  0xe1   :  { %1302 = vmatpush1.msra.mxu0 %v3792_v11  ;;  %1373 = vmatpush1.msra.mxu1 %v3797_v12  ;;  %5228 = vst [vmem:[#allocation56_spill] sm:$0xff] %v4000_v47  ;;  %5229 = vst [vmem:[#allocation57_spill] sm:$0xff] %v4005_v48  ;;  %v885_v49 = vld [vmem:[#allocation2 + $0x38] sm:$0xff]  ;;  %v4014_v58 = vld [vmem:[%s5116_s3 + $0x28] sm:$0xff] }
  0xe2   :  { %3133 = vmatmul.mubr.msk.f32.gmra.mxu0 %vm940_vm1, %v881_v13  ;;  %3141 = vmatmul.mubr.msk.f32.gmra.mxu1 %vm940_vm1, %v881_v13  ;;  %5230 = vst [vmem:[#allocation58_spill] sm:$0xff] %v4014_v58  ;;  %v4019_v4 = vld [vmem:[%s5116_s3 + $0x38] sm:$0xff]  ;;  %v4026_v13 = vld [vmem:[%s5116_s3 + $0x20] sm:$0xff] }
  0xe3   :  { %1303 = vmatprep.subr.mxu0 %v3806_v14  ;;  %1374 = vmatprep.subr.mxu1 %v3811_v15  ;;  %5231 = vst [vmem:[#allocation59_spill] sm:$0xff] %v4019_v4  ;;  %5232 = vst [vmem:[#allocation60_spill] sm:$0xff] %v4026_v13 }
  0xe4   :  { %1304 = vmatpush1.msra.mxu0 %v3818_v16  ;;  %1375 = vmatpush1.msra.mxu1 %v3823_v17 }
  0xe5   :  { %1305 = vmatprep.subr.mxu0 %v3830_v18  ;;  %1376 = vmatprep.subr.mxu1 %v3835_v19 }
  0xe6   :  { %1053 = vmatprep.mubr.f32.mxu0 %v5121_v0  ;;  %1166 = vmatprep.mubr.f32.mxu1 %v5121_v0 }
  0xe7   :  { %1306 = vmatpush1.msra.mxu0 %v3844_v20  ;;  %1377 = vmatpush1.msra.mxu1 %v3849_v21 }
  0xe8   :  { %3134 = vmatmul.mubr.msk.f32.gmra.mxu0 %vm940_vm1, %v882_v22  ;;  %3142 = vmatmul.mubr.msk.f32.gmra.mxu1 %vm940_vm1, %v882_v22  ;;  %v4031_v22 = vld [vmem:[%s5116_s3 + $0x30] sm:$0xff] }
  0xe9   :  { %1307 = vmatprep.subr.mxu0 %v3858_v23  ;;  %1378 = vmatprep.subr.mxu1 %v3863_v24  ;;  %5233 = vst [vmem:[#allocation61_spill] sm:$0xff] %v4031_v22 }
  0xea   :  { %1308 = vmatpush1.msra.mxu0 %v3870_v25  ;;  %1379 = vmatpush1.msra.mxu1 %v3875_v26 }
  0xeb   :  { %1309 = vmatprep.subr.mxu0 %v3882_v27  ;;  %1380 = vmatprep.subr.mxu1 %v3887_v28 }
  0xec   :  { %1059 = vmatprep.mubr.f32.mxu0 %v5121_v0  ;;  %1172 = vmatprep.mubr.f32.mxu1 %v5121_v0 }
  0xed   :  { %1310 = vmatpush1.msra.mxu0 %v3896_v29  ;;  %1381 = vmatpush1.msra.mxu1 %v3901_v30 }
  0xee   :  { %3135 = vmatmul.mubr.msk.f32.gmra.mxu0 %vm940_vm1, %v883_v31  ;;  %3143 = vmatmul.mubr.msk.f32.gmra.mxu1 %vm940_vm1, %v883_v31  ;;  %v4038_v31 = vld [vmem:[%s5116_s3 + $0x8] sm:$0xff] }
  0xef   :  { %1311 = vmatprep.subr.mxu0 %v3910_v32  ;;  %1382 = vmatprep.subr.mxu1 %v3915_v33  ;;  %5234 = vst [vmem:[#allocation62_spill] sm:$0xff] %v4038_v31 }
  0xf0   :  { %1312 = vmatpush1.msra.mxu0 %v3922_v34  ;;  %1383 = vmatpush1.msra.mxu1 %v3927_v35 }
  0xf1   :  { %1313 = vmatprep.subr.mxu0 %v3934_v36  ;;  %1384 = vmatprep.subr.mxu1 %v3939_v37 }
  0xf2   :  { %1065 = vmatprep.mubr.f32.mxu0 %v5121_v0  ;;  %1178 = vmatprep.mubr.f32.mxu1 %v5121_v0 }
  0xf3   :  { %1314 = vmatpush1.msra.mxu0 %v3948_v38  ;;  %1385 = vmatpush1.msra.mxu1 %v3953_v39 }
  0xf4   :  { %3136 = vmatmul.mubr.msk.f32.gmra.mxu0 %vm940_vm1, %v884_v40  ;;  %3144 = vmatmul.mubr.msk.f32.gmra.mxu1 %vm940_vm1, %v884_v40  ;;  %v4043_v40 = vld [vmem:[%s5116_s3 + $0x18] sm:$0xff] }
  0xf5   :  { %1315 = vmatprep.subr.mxu0 %v3962_v41  ;;  %1386 = vmatprep.subr.mxu1 %v3967_v42  ;;  %5235 = vst [vmem:[#allocation63_spill] sm:$0xff] %v4043_v40 }
  0xf6   :  { %1316 = vmatpush1.msra.mxu0 %v3974_v43  ;;  %1387 = vmatpush1.msra.mxu1 %v3979_v44 }
  0xf7   :  { %1317 = vmatprep.subr.mxu0 %v3986_v45  ;;  %1388 = vmatprep.subr.mxu1 %v3991_v46 }
  0xf8   :  { %1071 = vmatprep.mubr.f32.mxu0 %v5121_v0  ;;  %1184 = vmatprep.mubr.f32.mxu1 %v5121_v0  ;;  %v4050_v0 = vld [vmem:[%s5116_s3] sm:$0xff] }
  0xf9   :  { %1318 = vmatpush1.msra.mxu0 %v4000_v47  ;;  %1389 = vmatpush1.msra.mxu1 %v4005_v48  ;;  %5236 = vst [vmem:[#allocation64_spill] sm:$0xff] %v4050_v0 }
  0xfa   :  { %3137 = vmatmul.mubr.msk.f32.gmra.mxu0 %vm940_vm1, %v885_v49  ;;  %3145 = vmatmul.mubr.msk.f32.gmra.mxu1 %vm940_vm1, %v885_v49  ;;  %v4057_v49 = vld [vmem:[%s5116_s3 + $0x10] sm:$0xff] }
  0xfb   :  { %1319 = vmatprep.subr.mxu0 %v4014_v58  ;;  %1390 = vmatprep.subr.mxu1 %v4019_v4  ;;  %5237 = vst [vmem:[#allocation65_spill] sm:$0xff] %v4057_v49  ;;  %v5238_v4 = vmov 0.0  }
  0xfc   :  { %1320 = vmatpush1.msra.mxu0 %v4026_v13  ;;  %1391 = vmatpush1.msra.mxu1 %v4031_v22 }
  0xfd   :  { %1321 = vmatprep.subr.mxu0 %v4038_v31  ;;  %1392 = vmatprep.subr.mxu1 %v4043_v40 }
  0xfe   :  { %1322 = vmatpush1.msra.mxu0 %v4050_v0  ;;  %1355 = vmatprep.mubr.f32.mxu0 %v5238_v4 }
  0xff   :  { %1393 = vmatpush1.msra.mxu1 %v4057_v49  ;;  %1426 = vmatprep.mubr.f32.mxu1 %v5238_v4 }
 0x100   :  { %1356 = vmatmul.mubr.f32.vlgmr.msra.gmra.mxu0 %v5238_v4  ;;  %1427 = vmatmul.mubr.f32.vlgmr.msra.gmra.mxu1 %v5238_v4 }
 0x101   :  { %1465 = vmatprep.subr.mxu0 %v3652_v50  ;;  %1536 = vmatprep.subr.mxu1 %v3657_v51 }
 0x102   :  { %1466 = vmatpush1.msra.mxu0 %v3662_v52  ;;  %1537 = vmatpush1.msra.mxu1 %v3667_v53 }
 0x103   :  { %1467 = vmatprep.subr.mxu0 %v3674_v54  ;;  %1538 = vmatprep.subr.mxu1 %v3679_v55 }
 0x104   :  { %1468 = vmatpush1.msra.mxu0 %v3688_v56  ;;  %1539 = vmatpush1.msra.mxu1 %v3693_v57 }
 0x105   :  { %1469 = vmatprep.subr.mxu0 %v3702_v59  ;;  %1540 = vmatprep.subr.mxu1 %v3707_v60 }
 0x106   :  { %1470 = vmatpush1.msra.mxu0 %v3714_v61  ;;  %1541 = vmatpush1.msra.mxu1 %v3719_v62 }
 0x107   :  { %1471 = vmatprep.subr.mxu0 %v3726_v63  ;;  %1542 = vmatprep.subr.mxu1 %v3731_v1 }
 0x108   :  { %1472 = vmatpush1.msra.mxu0 %v3740_v2  ;;  %1543 = vmatpush1.msra.mxu1 %v3745_v3 }
 0x109   :  { %1473 = vmatprep.subr.mxu0 %v3754_v5  ;;  %1544 = vmatprep.subr.mxu1 %v3759_v6 }
 0x10a   :  { %1474 = vmatpush1.msra.mxu0 %v3766_v7  ;;  %1545 = vmatpush1.msra.mxu1 %v3771_v8 }
 0x10b   :  { %1475 = vmatprep.subr.mxu0 %v3778_v9  ;;  %1546 = vmatprep.subr.mxu1 %v3783_v10 }
 0x10c   :  { %1476 = vmatpush1.msra.mxu0 %v3792_v11  ;;  %1547 = vmatpush1.msra.mxu1 %v3797_v12 }
 0x10d   :  { %1477 = vmatprep.subr.mxu0 %v3806_v14  ;;  %1548 = vmatprep.subr.mxu1 %v3811_v15 }
 0x10e   :  { %1478 = vmatpush1.msra.mxu0 %v3818_v16  ;;  %1549 = vmatpush1.msra.mxu1 %v3823_v17 }
 0x10f   :  { %1479 = vmatprep.subr.mxu0 %v3830_v18  ;;  %1550 = vmatprep.subr.mxu1 %v3835_v19 }
 0x110   :  { %1480 = vmatpush1.msra.mxu0 %v3844_v20  ;;  %1551 = vmatpush1.msra.mxu1 %v3849_v21 }
 0x111   :  { %1481 = vmatprep.subr.mxu0 %v3858_v23  ;;  %1552 = vmatprep.subr.mxu1 %v3863_v24 }
 0x112   :  { %1482 = vmatpush1.msra.mxu0 %v3870_v25  ;;  %1553 = vmatpush1.msra.mxu1 %v3875_v26 }
 0x113   :  { %1483 = vmatprep.subr.mxu0 %v3882_v27  ;;  %1554 = vmatprep.subr.mxu1 %v3887_v28 }
 0x114   :  { %1484 = vmatpush1.msra.mxu0 %v3896_v29  ;;  %1555 = vmatpush1.msra.mxu1 %v3901_v30 }
 0x115   :  { %1485 = vmatprep.subr.mxu0 %v3910_v32  ;;  %1556 = vmatprep.subr.mxu1 %v3915_v33 }
 0x116   :  { %1486 = vmatpush1.msra.mxu0 %v3922_v34  ;;  %1557 = vmatpush1.msra.mxu1 %v3927_v35 }
 0x117   :  { %1487 = vmatprep.subr.mxu0 %v3934_v36  ;;  %1558 = vmatprep.subr.mxu1 %v3939_v37 }
 0x118   :  { %1488 = vmatpush1.msra.mxu0 %v3948_v38  ;;  %1559 = vmatpush1.msra.mxu1 %v3953_v39  ;;  %v5239_v38 = vld [vmem:[#allocation59_spill] sm:$0xff] }
 0x119   :  { %1489 = vmatprep.subr.mxu0 %v3962_v41  ;;  %1560 = vmatprep.subr.mxu1 %v3967_v42 }
 0x11a   :  { %1490 = vmatpush1.msra.mxu0 %v3974_v43  ;;  %1561 = vmatpush1.msra.mxu1 %v3979_v44 }
 0x11b   :  { %1491 = vmatprep.subr.mxu0 %v3986_v45  ;;  %1562 = vmatprep.subr.mxu1 %v3991_v46 }
 0x11c   :  { %1492 = vmatpush1.msra.mxu0 %v4000_v47  ;;  %1563 = vmatpush1.msra.mxu1 %v4005_v48 }
 0x11d   :  { %1493 = vmatprep.subr.mxu0 %v4014_v58  ;;  %1564 = vmatprep.subr.mxu1 %v5239_v38  ;;  %v920_v38 = vlaneseq }
 0x11e   :  { %1494 = vmatpush1.msra.mxu0 %v4026_v13  ;;  %1565 = vmatpush1.msra.mxu1 %v4031_v22 }
 0x11f   :  { %1495 = vmatprep.subr.mxu0 %v4038_v31  ;;  %1566 = vmatprep.subr.mxu1 %v4043_v40  ;;  %v4135_v13 = vshrl.u32 %v920_v38, 7 }
 0x120   :  { %1496 = vmatpush1.msra.mxu0 %v4050_v0  ;;  %1529 = vmatprep.mubr.f32.mxu0 %v5238_v4 }
 0x121   :  { %1567 = vmatpush1.msra.mxu1 %v4057_v49  ;;  %1600 = vmatprep.mubr.f32.mxu1 %v5238_v4  ;;  %5240 = vst [vmem:[#allocation66_spill] sm:$0xff] %v4135_v13  ;;  %v5164_v40 = vsub.s32 0, %v4135_v13  ;;  %v930_v0 = vsub.s32 2, %v4135_v13  ;;  %v918_v49 = vld [vmem:[%s5117_s4] sm:$0xf]  ;;  %v934_v38 = vsub.s32 3, %v4135_v13 }
 0x122   :  { %1639 = vmatprep.subr.mxu0 %v3652_v50  ;;  %1710 = vmatprep.subr.mxu1 %v3657_v51  ;;  %v5169_v51 = vsub.s32 1, %v4135_v13 }
 0x123   :  { %v923_v58 = vrot.slane %v918_v49, %v5164_v40  ;;  %v4154_v48 = vrot.slane %v918_v49, %v930_v0  ;;  %v4158_v44 = vrot.slane %v918_v49, %v934_v38 }
 0x124   :  { %v927_v45 = vrot.slane %v918_v49, %v5169_v51 }
 0x190   :  { %v4137_v22 = vpop.f32.mrf.mxu0  ;;  %v4139_v31 = vpop.f32.mrf.mxu1 }
 0x192   :  { %v4146_v4 = vpop.f32.mrf.mxu0  ;;  %v4148_v50 = vpop.f32.mrf.mxu1 }
 0x196   :  { %v1037_v47 = vpop.f32.mrf.mxu0  ;;  %v1150_v46 = vpop.f32.mrf.mxu1 }
 0x197   :  { %v4160_v43 = vadd.f32 %v1037_v47, %v923_v58  ;;  %v4163_v42 = vadd.f32 %v1150_v46, %v4154_v48 }
 0x198   :  { %v1039_v41 = vpop.f32.mrf.mxu0  ;;  %v1152_v39 = vpop.f32.mrf.mxu1 }
 0x199   :  { %5241 = vst [vmem:[#allocation67_spill] sm:$0xff] %v4163_v42  ;;  %v4165_v37 = vadd.f32 %v1039_v41, %v927_v45  ;;  %v4168_v40 = vadd.f32 %v1152_v39, %v4158_v44 }
 0x19b   :  { %5242 = vst [vmem:[#allocation68_spill] sm:$0xff] %v4165_v37  ;;  %5243 = vst [vmem:[#allocation69_spill] sm:$0xff] %v4168_v40 }
 0x19c   :  { %v1043_v0 = vpop.f32.mrf.mxu0  ;;  %v1156_v36 = vpop.f32.mrf.mxu1 }
 0x19d   :  { %v4170_v35 = vadd.f32 %v1043_v0, %v923_v58  ;;  %v4173_v51 = vadd.f32 %v1156_v36, %v4154_v48 }
 0x19e   :  { %v1045_v49 = vpop.f32.mrf.mxu0  ;;  %v1158_v47 = vpop.f32.mrf.mxu1 }
 0x19f   :  { %5244 = vst [vmem:[#allocation70_spill] sm:$0xff] %v4170_v35  ;;  %5245 = vst [vmem:[#allocation71_spill] sm:$0xff] %v4173_v51  ;;  %v4175_v38 = vadd.f32 %v1045_v49, %v927_v45  ;;  %v4178_v46 = vadd.f32 %v1158_v47, %v4158_v44 }
 0x1a1   :  { %5246 = vst [vmem:[#allocation72_spill] sm:$0xff] %v4175_v38  ;;  %5247 = vst [vmem:[#allocation73_spill] sm:$0xff] %v4178_v46 }
 0x1a2   :  { %v1049_v13 = vpop.f32.mrf.mxu0  ;;  %v1162_v41 = vpop.f32.mrf.mxu1 }
 0x1a3   :  { %v4180_v42 = vadd.f32 %v1049_v13, %v923_v58  ;;  %v4183_v39 = vadd.f32 %v1162_v41, %v4154_v48 }
 0x1a4   :  { %v1051_v40 = vpop.f32.mrf.mxu0  ;;  %v1164_v0 = vpop.f32.mrf.mxu1 }
 0x1a5   :  { %5248 = vst [vmem:[#allocation74_spill] sm:$0xff] %v4180_v42  ;;  %5249 = vst [vmem:[#allocation75_spill] sm:$0xff] %v4183_v39  ;;  %v4185_v35 = vadd.f32 %v1051_v40, %v927_v45  ;;  %v4188_v36 = vadd.f32 %v1164_v0, %v4158_v44 }
 0x1a7   :  { %5250 = vst [vmem:[#allocation76_spill] sm:$0xff] %v4185_v35  ;;  %5251 = vst [vmem:[#allocation77_spill] sm:$0xff] %v4188_v36 }
 0x1a8   :  { %v1055_v51 = vpop.f32.mrf.mxu0  ;;  %v1168_v49 = vpop.f32.mrf.mxu1 }
 0x1a9   :  { %v4190_v38 = vadd.f32 %v1055_v51, %v923_v58  ;;  %v4193_v47 = vadd.f32 %v1168_v49, %v4154_v48 }
 0x1aa   :  { %v1057_v46 = vpop.f32.mrf.mxu0  ;;  %v1170_v13 = vpop.f32.mrf.mxu1 }
 0x1ab   :  { %5252 = vst [vmem:[#allocation78_spill] sm:$0xff] %v4190_v38  ;;  %5253 = vst [vmem:[#allocation79_spill] sm:$0xff] %v4193_v47  ;;  %v4195_v42 = vadd.f32 %v1057_v46, %v927_v45  ;;  %v4198_v41 = vadd.f32 %v1170_v13, %v4158_v44 }
 0x1ad   :  { %5254 = vst [vmem:[#allocation80_spill] sm:$0xff] %v4195_v42  ;;  %5255 = vst [vmem:[#allocation81_spill] sm:$0xff] %v4198_v41 }
 0x1ae   :  { %v1061_v39 = vpop.f32.mrf.mxu0  ;;  %v1174_v40 = vpop.f32.mrf.mxu1 }
 0x1af   :  { %v4200_v35 = vadd.f32 %v1061_v39, %v923_v58  ;;  %v4203_v0 = vadd.f32 %v1174_v40, %v4154_v48 }
 0x1b0   :  { %v1063_v36 = vpop.f32.mrf.mxu0  ;;  %v1176_v51 = vpop.f32.mrf.mxu1 }
 0x1b1   :  { %5256 = vst [vmem:[#allocation82_spill] sm:$0xff] %v4200_v35  ;;  %5257 = vst [vmem:[#allocation83_spill] sm:$0xff] %v4203_v0  ;;  %v4205_v38 = vadd.f32 %v1063_v36, %v927_v45  ;;  %v4208_v49 = vadd.f32 %v1176_v51, %v4158_v44 }
 0x1b3   :  { %5258 = vst [vmem:[#allocation84_spill] sm:$0xff] %v4205_v38  ;;  %5259 = vst [vmem:[#allocation85_spill] sm:$0xff] %v4208_v49 }
 0x1b4   :  { %v1067_v47 = vpop.f32.mrf.mxu0  ;;  %v1180_v46 = vpop.f32.mrf.mxu1 }
 0x1b5   :  { %v4210_v42 = vadd.f32 %v1067_v47, %v923_v58  ;;  %v4213_v13 = vadd.f32 %v1180_v46, %v4154_v48 }
 0x1b6   :  { %v1069_v41 = vpop.f32.mrf.mxu0  ;;  %v1182_v39 = vpop.f32.mrf.mxu1 }
 0x1b7   :  { %5260 = vst [vmem:[#allocation86_spill] sm:$0xff] %v4210_v42  ;;  %5261 = vst [vmem:[#allocation87_spill] sm:$0xff] %v4213_v13  ;;  %v4215_v35 = vadd.f32 %v1069_v41, %v927_v45  ;;  %v4218_v40 = vadd.f32 %v1182_v39, %v4158_v44  ;;  %v1032_v41 = vadd.f32 %v4137_v22, %v923_v58 }
 0x1b8   :  { %v1034_v39 = vadd.f32 %v4146_v4, %v927_v45 }
 0x1b9   :  { %5262 = vst [vmem:[#allocation88_spill] sm:$0xff] %v4215_v35  ;;  %5263 = vst [vmem:[#allocation89_spill] sm:$0xff] %v4218_v40 }
 0x1ba   :  { %v1073_v0 = vpop.f32.mrf.mxu0  ;;  %v1186_v36 = vpop.f32.mrf.mxu1 }
 0x1bb   :  { %v4220_v38 = vadd.f32 %v1073_v0, %v923_v58  ;;  %v4223_v51 = vadd.f32 %v1186_v36, %v4154_v48 }
 0x1bc   :  { %v1075_v49 = vpop.f32.mrf.mxu0  ;;  %v1188_v47 = vpop.f32.mrf.mxu1 }
 0x1bd   :  { %5264 = vst [vmem:[#allocation90_spill] sm:$0xff] %v4220_v38  ;;  %5265 = vst [vmem:[#allocation91_spill] sm:$0xff] %v4223_v51  ;;  %v4225_v42 = vadd.f32 %v1075_v49, %v927_v45  ;;  %v4228_v46 = vadd.f32 %v1188_v47, %v4158_v44  ;;  %v1147_v49 = vadd.f32 %v4148_v50, %v4158_v44 }
 0x1be   :  { %v1145_v47 = vadd.f32 %v4139_v31, %v4154_v48 }
 0x1bf   :  { %5266 = vst [vmem:[#allocation92_spill] sm:$0xff] %v4225_v42  ;;  %5267 = vst [vmem:[#allocation93_spill] sm:$0xff] %v4228_v46 }
 0x1c0   :  { %v1357_v13 = vpop.f32.mrf.mxu0  ;;  %v1428_v38 = vpop.f32.mrf.mxu1 }
 0x1c1   :  { %v1433_v40 = vadd.f32 %v1357_v13, %v1032_v41  ;;  %v1435_v46 = vadd.f32 %v1428_v38, %v1145_v47  ;;  %v5268_v38 = vld [vmem:[#allocation45_spill] sm:$0xff]  ;;  %v5273_v47 = vld [vmem:[#allocation50_spill] sm:$0xff] }
 0x1c2   :  { %v1359_v35 = vpop.f32.mrf.mxu0  ;;  %v1430_v51 = vpop.f32.mrf.mxu1 }
 0x1c3   :  { %v3146_v37 = vmul.f32 -1.442695, %v1433_v40  ;;  %v1434_v0 = vadd.f32 %v1359_v35, %v1034_v39  ;;  %v1436_v42 = vadd.f32 %v1430_v51, %v1147_v49  ;;  %v5272_v49 = vld [vmem:[#allocation49_spill] sm:$0xff] }
 0x1c5   :  { %3189 = vpow2.f32 %v3146_v37  ;;  %v3147_v36 = vmul.f32 -1.442695, %v1434_v0  ;;  %v3148_v58 = vmul.f32 -1.442695, %v1436_v42  ;;  %v5270_v0 = vld [vmem:[#allocation47_spill] sm:$0xff] }
 0x1c7   :  { %3191 = vpow2.f32 %v3147_v36  ;;  %v5271_v36 = vld [vmem:[#allocation48_spill] sm:$0xff] }
 0x1c8   :  { %3193 = vpow2.f32 %v3148_v58  ;;  %v5274_v58 = vld [vmem:[#allocation51_spill] sm:$0xff] }
 0x1d2   :  { %v3190_v22 = vpop.eup %3189 }
 0x1d3   :  { %v1440_v45 = vadd.f32 1.0, %v3190_v22  ;;  %v5275_v22 = vld [vmem:[#allocation52_spill] sm:$0xff] }
 0x1d4   :  { %v3192_v4 = vpop.eup %3191 }
 0x1d5   :  { %3195 = vrcp.f32 %v1440_v45  ;;  %v1446_v35 = vadd.f32 1.0, %v3192_v4  ;;  %v3194_v37 = vpop.eup %3193  ;;  %v5276_v45 = vld [vmem:[#allocation53_spill] sm:$0xff]  ;;  %v5277_v4 = vld [vmem:[#allocation54_spill] sm:$0xff] }
 0x1d6   :  { %3197 = vtanh.f32 %v1435_v46  ;;  %v1453_v39 = vadd.f32 1.0, %v3194_v37  ;;  %v5269_v46 = vld [vmem:[#allocation46_spill] sm:$0xff]  ;;  %v5279_v37 = vld [vmem:[#allocation56_spill] sm:$0xff] }
 0x1d7   :  { %3199 = vrcp.f32 %v1446_v35  ;;  %v5278_v35 = vld [vmem:[#allocation55_spill] sm:$0xff] }
 0x1d8   :  { %3201 = vrcp.f32 %v1453_v39  ;;  %v5283_v39 = vld [vmem:[#allocation60_spill] sm:$0xff] }
 0x1e2   :  { %v3196_v13 = vpop.eup %3195 }
 0x1e3   :  { %v3198_v40 = vpop.eup %3197 }
 0x1e4   :  { %v3200_v41 = vpop.eup %3199  ;;  %v1457_v44 = vmul.f32 %v3198_v40, %v3196_v13  ;;  %v5280_v13 = vld [vmem:[#allocation57_spill] sm:$0xff]  ;;  %v5281_v40 = vld [vmem:[#allocation58_spill] sm:$0xff] }
 0x1e5   :  { %v1456_v50 = vmul.f32 0.0, %v3200_v41  ;;  %v3202_v42 = vpop.eup %3201  ;;  %v5282_v41 = vld [vmem:[#allocation59_spill] sm:$0xff] }
 0x1e7   :  { %v4236_v51 = vadd.f32 %v1457_v44, %v1456_v50  ;;  %v5284_v50 = vld [vmem:[#allocation61_spill] sm:$0xff]  ;;  %v5285_v44 = vld [vmem:[#allocation62_spill] sm:$0xff] }
 0x1e9   :  { %3203 = vtanh.f32 %v4236_v51 }
 0x1f6   :  { %v3204_v48 = vpop.eup %3203 }
 0x1f7   :  { %v1460_v31 = vmul.f32 %v3204_v48, %v3202_v42  ;;  %v5286_v42 = vld [vmem:[#allocation63_spill] sm:$0xff]  ;;  %v5287_v48 = vld [vmem:[#allocation64_spill] sm:$0xff] }
 0x1f9   :  { %1530 = vmatmul.mubr.f32.vlgmr.msra.gmra.mxu0 %v1460_v31  ;;  %1601 = vmatmul.mubr.f32.vlgmr.msra.gmra.mxu1 %v1460_v31  ;;  %v5288_v31 = vmov 0.0  }
 0x1fa   :  { %1640 = vmatpush1.msra.mxu0 %v3662_v52  ;;  %1711 = vmatpush1.msra.mxu1 %v3667_v53 }
 0x1fb   :  { %1641 = vmatprep.subr.mxu0 %v3674_v54  ;;  %1712 = vmatprep.subr.mxu1 %v3679_v55 }
 0x1fc   :  { %1642 = vmatpush1.msra.mxu0 %v3688_v56  ;;  %1713 = vmatpush1.msra.mxu1 %v3693_v57 }
 0x1fd   :  { %1643 = vmatprep.subr.mxu0 %v3702_v59  ;;  %1714 = vmatprep.subr.mxu1 %v3707_v60 }
 0x1fe   :  { %1644 = vmatpush1.msra.mxu0 %v3714_v61  ;;  %1715 = vmatpush1.msra.mxu1 %v3719_v62 }
 0x1ff   :  { %1645 = vmatprep.subr.mxu0 %v3726_v63  ;;  %1716 = vmatprep.subr.mxu1 %v3731_v1 }
 0x200   :  { %1646 = vmatpush1.msra.mxu0 %v3740_v2  ;;  %1717 = vmatpush1.msra.mxu1 %v3745_v3 }
 0x201   :  { %1647 = vmatprep.subr.mxu0 %v3754_v5  ;;  %1718 = vmatprep.subr.mxu1 %v3759_v6 }
 0x202   :  { %1648 = vmatpush1.msra.mxu0 %v3766_v7  ;;  %1719 = vmatpush1.msra.mxu1 %v3771_v8 }
 0x203   :  { %1649 = vmatprep.subr.mxu0 %v3778_v9  ;;  %1720 = vmatprep.subr.mxu1 %v3783_v10 }
 0x204   :  { %1650 = vmatpush1.msra.mxu0 %v3792_v11  ;;  %1721 = vmatpush1.msra.mxu1 %v3797_v12 }
 0x205   :  { %1651 = vmatprep.subr.mxu0 %v3806_v14  ;;  %1722 = vmatprep.subr.mxu1 %v3811_v15 }
 0x206   :  { %1652 = vmatpush1.msra.mxu0 %v3818_v16  ;;  %1723 = vmatpush1.msra.mxu1 %v3823_v17 }
 0x207   :  { %1653 = vmatprep.subr.mxu0 %v3830_v18  ;;  %1724 = vmatprep.subr.mxu1 %v3835_v19 }
 0x208   :  { %1654 = vmatpush1.msra.mxu0 %v3844_v20  ;;  %1725 = vmatpush1.msra.mxu1 %v3849_v21 }
 0x209   :  { %1655 = vmatprep.subr.mxu0 %v3858_v23  ;;  %1726 = vmatprep.subr.mxu1 %v3863_v24 }
 0x20a   :  { %1656 = vmatpush1.msra.mxu0 %v3870_v25  ;;  %1727 = vmatpush1.msra.mxu1 %v3875_v26 }
 0x20b   :  { %1657 = vmatprep.subr.mxu0 %v3882_v27  ;;  %1728 = vmatprep.subr.mxu1 %v3887_v28 }
 0x20c   :  { %1658 = vmatpush1.msra.mxu0 %v3896_v29  ;;  %1729 = vmatpush1.msra.mxu1 %v3901_v30 }
 0x20d   :  { %1659 = vmatprep.subr.mxu0 %v3910_v32  ;;  %1730 = vmatprep.subr.mxu1 %v3915_v33 }
 0x20e   :  { %1660 = vmatpush1.msra.mxu0 %v3922_v34  ;;  %1731 = vmatpush1.msra.mxu1 %v5268_v38 }
 0x20f   :  { %1661 = vmatprep.subr.mxu0 %v5269_v46  ;;  %1732 = vmatprep.subr.mxu1 %v5270_v0 }
 0x210   :  { %1662 = vmatpush1.msra.mxu0 %v5271_v36  ;;  %1733 = vmatpush1.msra.mxu1 %v5272_v49 }
 0x211   :  { %1663 = vmatprep.subr.mxu0 %v5273_v47  ;;  %1734 = vmatprep.subr.mxu1 %v5274_v58  ;;  %v5294_v58 = vld [vmem:[#allocation67_spill] sm:$0xff] }
 0x212   :  { %1664 = vmatpush1.msra.mxu0 %v5275_v22  ;;  %1735 = vmatpush1.msra.mxu1 %v5276_v45  ;;  %v5293_v22 = vld [vmem:[#allocation69_spill] sm:$0xff] }
 0x213   :  { %1665 = vmatprep.subr.mxu0 %v5277_v4  ;;  %1736 = vmatprep.subr.mxu1 %v5278_v35  ;;  %v5289_v35 = vld [vmem:[#allocation65_spill] sm:$0xff] }
 0x214   :  { %1666 = vmatpush1.msra.mxu0 %v5279_v37  ;;  %1737 = vmatpush1.msra.mxu1 %v5280_v13  ;;  %v5290_v13 = vld [vmem:[#allocation43_spill] sm:$0xff] }
 0x215   :  { %1667 = vmatprep.subr.mxu0 %v5281_v40  ;;  %1738 = vmatprep.subr.mxu1 %v5282_v41  ;;  %v5291_v40 = vld [vmem:[#allocation44_spill] sm:$0xff] }
 0x216   :  { %1668 = vmatpush1.msra.mxu0 %v5283_v39  ;;  %1739 = vmatpush1.msra.mxu1 %v5284_v50 }
 0x217   :  { %1669 = vmatprep.subr.mxu0 %v5285_v44  ;;  %1740 = vmatprep.subr.mxu1 %v5286_v42  ;;  %v5292_v44 = vld [vmem:[#allocation68_spill] sm:$0xff] }
 0x218   :  { %1670 = vmatpush1.msra.mxu0 %v5287_v48  ;;  %1703 = vmatprep.mubr.f32.mxu0 %v5288_v31 }
 0x219   :  { %1741 = vmatpush1.msra.mxu1 %v5289_v35  ;;  %1774 = vmatprep.mubr.f32.mxu1 %v5288_v31 }
 0x21a   :  { %1813 = vmatprep.subr.mxu0 %v5290_v13  ;;  %1884 = vmatprep.subr.mxu1 %v5291_v40 }
 0x2b9   :  { %v1531_v41 = vpop.f32.mrf.mxu0  ;;  %v1602_v42 = vpop.f32.mrf.mxu1 }
 0x2ba   :  { %v1607_v39 = vadd.f32 %v1531_v41, %v4160_v43  ;;  %v1609_v31 = vadd.f32 %v1602_v42, %v5294_v58 }
 0x2bb   :  { %v1533_v50 = vpop.f32.mrf.mxu0  ;;  %v1604_v45 = vpop.f32.mrf.mxu1 }
 0x2bc   :  { %v3149_v37 = vmul.f32 -1.442695, %v1607_v39  ;;  %v1608_v4 = vadd.f32 %v1533_v50, %v5292_v44  ;;  %v1610_v35 = vadd.f32 %v1604_v45, %v5293_v22 }
 0x2be   :  { %3205 = vpow2.f32 %v3149_v37  ;;  %v3150_v48 = vmul.f32 -1.442695, %v1608_v4  ;;  %v3151_v47 = vmul.f32 -1.442695, %v1610_v35 }
 0x2c0   :  { %3207 = vpow2.f32 %v3150_v48 }
 0x2c1   :  { %3209 = vtanh.f32 %v1609_v31 }
 0x2c2   :  { %3211 = vpow2.f32 %v3151_v47 }
 0x2cb   :  { %v3206_v13 = vpop.eup %3205 }
 0x2cc   :  { %v1614_v49 = vadd.f32 1.0, %v3206_v13 }
 0x2cd   :  { %v3208_v40 = vpop.eup %3207 }
 0x2ce   :  { %3213 = vrcp.f32 %v1614_v49  ;;  %v1620_v43 = vadd.f32 1.0, %v3208_v40  ;;  %v3210_v41 = vpop.eup %3209  ;;  %v5316_v49 = vld [vmem:[#allocation72_spill] sm:$0xff]  ;;  %v5317_v40 = vld [vmem:[#allocation73_spill] sm:$0xff] }
 0x2cf   :  { %v3212_v39 = vpop.eup %3211 }
 0x2d0   :  { %3215 = vrcp.f32 %v1620_v43  ;;  %v1627_v44 = vadd.f32 1.0, %v3212_v39 }
 0x2d2   :  { %3217 = vrcp.f32 %v1627_v44 }
 0x2db   :  { %v3214_v37 = vpop.eup %3213 }
 0x2dc   :  { %v1631_v50 = vmul.f32 %v3214_v37, %v3210_v41  ;;  %v5318_v41 = vld [vmem:[#allocation71_spill] sm:$0xff] }
 0x2dd   :  { %v3216_v4 = vpop.eup %3215 }
 0x2de   :  { %v1630_v48 = vmul.f32 %v3216_v4, %v4236_v51 }
 0x2df   :  { %v3218_v58 = vpop.eup %3217 }
 0x2e0   :  { %v4310_v22 = vadd.f32 %v1631_v50, %v1630_v48 }
 0x2e2   :  { %3219 = vtanh.f32 %v4310_v22 }
 0x2ef   :  { %v3220_v45 = vpop.eup %3219 }
 0x2f0   :  { %v1634_v35 = vmul.f32 %v3220_v45, %v3218_v58 }
 0x2f2   :  { %1704 = vmatmul.mubr.f32.vlgmr.msra.gmra.mxu0 %v1634_v35  ;;  %1775 = vmatmul.mubr.f32.vlgmr.msra.gmra.mxu1 %v1634_v35 }
 0x2f3   :  { %1814 = vmatpush1.msra.mxu0 %v3662_v52  ;;  %1885 = vmatpush1.msra.mxu1 %v3667_v53  ;;  %v5295_v52 = vld [vmem:[#allocation49_spill] sm:$0xff]  ;;  %v5296_v53 = vld [vmem:[#allocation50_spill] sm:$0xff] }
 0x2f4   :  { %1815 = vmatprep.subr.mxu0 %v3674_v54  ;;  %1886 = vmatprep.subr.mxu1 %v3679_v55  ;;  %v5297_v54 = vld [vmem:[#allocation51_spill] sm:$0xff]  ;;  %v5298_v55 = vld [vmem:[#allocation52_spill] sm:$0xff] }
 0x2f5   :  { %1816 = vmatpush1.msra.mxu0 %v3688_v56  ;;  %1887 = vmatpush1.msra.mxu1 %v3693_v57  ;;  %v5299_v56 = vld [vmem:[#allocation53_spill] sm:$0xff]  ;;  %v5300_v57 = vld [vmem:[#allocation54_spill] sm:$0xff] }
 0x2f6   :  { %1817 = vmatprep.subr.mxu0 %v3702_v59  ;;  %1888 = vmatprep.subr.mxu1 %v3707_v60  ;;  %v5301_v59 = vld [vmem:[#allocation55_spill] sm:$0xff]  ;;  %v5302_v60 = vld [vmem:[#allocation56_spill] sm:$0xff] }
 0x2f7   :  { %1818 = vmatpush1.msra.mxu0 %v3714_v61  ;;  %1889 = vmatpush1.msra.mxu1 %v3719_v62  ;;  %v5303_v61 = vld [vmem:[#allocation57_spill] sm:$0xff]  ;;  %v5304_v62 = vld [vmem:[#allocation58_spill] sm:$0xff] }
 0x2f8   :  { %1819 = vmatprep.subr.mxu0 %v3726_v63  ;;  %1890 = vmatprep.subr.mxu1 %v3731_v1  ;;  %v5305_v63 = vld [vmem:[#allocation59_spill] sm:$0xff]  ;;  %v5306_v1 = vld [vmem:[#allocation60_spill] sm:$0xff] }
 0x2f9   :  { %1820 = vmatpush1.msra.mxu0 %v3740_v2  ;;  %1891 = vmatpush1.msra.mxu1 %v3745_v3  ;;  %v5307_v2 = vld [vmem:[#allocation61_spill] sm:$0xff]  ;;  %v5308_v3 = vld [vmem:[#allocation62_spill] sm:$0xff] }
 0x2fa   :  { %1821 = vmatprep.subr.mxu0 %v3754_v5  ;;  %1892 = vmatprep.subr.mxu1 %v3759_v6  ;;  %v5309_v5 = vld [vmem:[#allocation63_spill] sm:$0xff]  ;;  %v5310_v6 = vld [vmem:[#allocation64_spill] sm:$0xff] }
 0x2fb   :  { %1822 = vmatpush1.msra.mxu0 %v3766_v7  ;;  %1893 = vmatpush1.msra.mxu1 %v3771_v8  ;;  %v5311_v7 = vmov 0.0   ;;  %v5312_v8 = vld [vmem:[#allocation65_spill] sm:$0xff] }
 0x2fc   :  { %1823 = vmatprep.subr.mxu0 %v3778_v9  ;;  %1894 = vmatprep.subr.mxu1 %v3783_v10  ;;  %v4380_v9 = vld [vmem:[%s5116_s3 + $0x1e8] sm:$0xff]  ;;  %v4386_v10 = vld [vmem:[%s5116_s3 + $0x1f8] sm:$0xff] }
 0x2fd   :  { %1824 = vmatpush1.msra.mxu0 %v3792_v11  ;;  %1895 = vmatpush1.msra.mxu1 %v3797_v12  ;;  %5313 = vst [vmem:[#allocation45_spill] sm:$0xff] %v4380_v9  ;;  %5314 = vst [vmem:[#allocation46_spill] sm:$0xff] %v4386_v10  ;;  %v5315_v12 = vld [vmem:[#allocation70_spill] sm:$0xff] }
 0x2fe   :  { %1825 = vmatprep.subr.mxu0 %v3806_v14  ;;  %1896 = vmatprep.subr.mxu1 %v3811_v15 }
 0x2ff   :  { %1826 = vmatpush1.msra.mxu0 %v3818_v16  ;;  %1897 = vmatpush1.msra.mxu1 %v3823_v17 }
 0x300   :  { %1827 = vmatprep.subr.mxu0 %v3830_v18  ;;  %1898 = vmatprep.subr.mxu1 %v3835_v19 }
 0x301   :  { %1828 = vmatpush1.msra.mxu0 %v3844_v20  ;;  %1899 = vmatpush1.msra.mxu1 %v3849_v21 }
 0x302   :  { %1829 = vmatprep.subr.mxu0 %v3858_v23  ;;  %1900 = vmatprep.subr.mxu1 %v3863_v24 }
 0x303   :  { %1830 = vmatpush1.msra.mxu0 %v3870_v25  ;;  %1901 = vmatpush1.msra.mxu1 %v3875_v26 }
 0x304   :  { %1831 = vmatprep.subr.mxu0 %v3882_v27  ;;  %1902 = vmatprep.subr.mxu1 %v3887_v28 }
 0x305   :  { %1832 = vmatpush1.msra.mxu0 %v3896_v29  ;;  %1903 = vmatpush1.msra.mxu1 %v3901_v30 }
 0x306   :  { %1833 = vmatprep.subr.mxu0 %v3910_v32  ;;  %1904 = vmatprep.subr.mxu1 %v3915_v33 }
 0x307   :  { %1834 = vmatpush1.msra.mxu0 %v3922_v34  ;;  %1905 = vmatpush1.msra.mxu1 %v5268_v38 }
 0x308   :  { %1835 = vmatprep.subr.mxu0 %v5269_v46  ;;  %1906 = vmatprep.subr.mxu1 %v5270_v0 }
 0x309   :  { %1836 = vmatpush1.msra.mxu0 %v5271_v36  ;;  %1907 = vmatpush1.msra.mxu1 %v5295_v52 }
 0x30a   :  { %1837 = vmatprep.subr.mxu0 %v5296_v53  ;;  %1908 = vmatprep.subr.mxu1 %v5297_v54 }
 0x30b   :  { %1838 = vmatpush1.msra.mxu0 %v5298_v55  ;;  %1909 = vmatpush1.msra.mxu1 %v5299_v56 }
 0x30c   :  { %1839 = vmatprep.subr.mxu0 %v5300_v57  ;;  %1910 = vmatprep.subr.mxu1 %v5301_v59 }
 0x30d   :  { %1840 = vmatpush1.msra.mxu0 %v5302_v60  ;;  %1911 = vmatpush1.msra.mxu1 %v5303_v61 }
 0x30e   :  { %1841 = vmatprep.subr.mxu0 %v5304_v62  ;;  %1912 = vmatprep.subr.mxu1 %v5305_v63 }
 0x30f   :  { %1842 = vmatpush1.msra.mxu0 %v5306_v1  ;;  %1913 = vmatpush1.msra.mxu1 %v5307_v2 }
 0x310   :  { %1843 = vmatprep.subr.mxu0 %v5308_v3  ;;  %1914 = vmatprep.subr.mxu1 %v5309_v5 }
 0x311   :  { %1844 = vmatpush1.msra.mxu0 %v5310_v6  ;;  %1877 = vmatprep.mubr.f32.mxu0 %v5311_v7 }
 0x312   :  { %1915 = vmatpush1.msra.mxu1 %v5312_v8  ;;  %1948 = vmatprep.mubr.f32.mxu1 %v5311_v7 }
 0x313   :  { %1987 = vmatprep.subr.mxu0 %v4380_v9  ;;  %2058 = vmatprep.subr.mxu1 %v4386_v10 }
 0x3b2   :  { %v1705_v11 = vpop.f32.mrf.mxu0  ;;  %v1776_v42 = vpop.f32.mrf.mxu1 }
 0x3b3   :  { %v1781_v14 = vadd.f32 %v1705_v11, %v5315_v12  ;;  %v1783_v39 = vadd.f32 %v1776_v42, %v5318_v41  ;;  %v4430_v41 = vld [vmem:[%s5116_s3 + $0x1d0] sm:$0xff] }
 0x3b4   :  { %v1707_v15 = vpop.f32.mrf.mxu0  ;;  %v1778_v13 = vpop.f32.mrf.mxu1 }
 0x3b5   :  { %v3152_v51 = vmul.f32 -1.442695, %v1781_v14  ;;  %v1782_v47 = vadd.f32 %v1707_v15, %v5316_v49  ;;  %v1784_v43 = vadd.f32 %v1778_v13, %v5317_v40  ;;  %v4412_v13 = vld [vmem:[%s5116_s3 + $0x1c8] sm:$0xff]  ;;  %v4418_v40 = vld [vmem:[%s5116_s3 + $0x1d8] sm:$0xff] }
 0x3b7   :  { %3221 = vpow2.f32 %v3152_v51  ;;  %v3153_v31 = vmul.f32 -1.442695, %v1782_v47  ;;  %v3154_v37 = vmul.f32 -1.442695, %v1784_v43  ;;  %v4424_v43 = vld [vmem:[%s5116_s3 + $0x1c0] sm:$0xff] }
 0x3b9   :  { %3223 = vpow2.f32 %v3153_v31  ;;  %v4400_v31 = vld [vmem:[%s5116_s3 + $0x1e0] sm:$0xff] }
 0x3ba   :  { %3225 = vtanh.f32 %v1783_v39  ;;  %v4436_v39 = vld [vmem:[%s5116_s3 + $0x1a8] sm:$0xff] }
 0x3bb   :  { %3227 = vpow2.f32 %v3154_v37  ;;  %v4442_v37 = vld [vmem:[%s5116_s3 + $0x1b8] sm:$0xff] }
 0x3c4   :  { %v3222_v50 = vpop.eup %3221 }
 0x3c5   :  { %v1788_v4 = vadd.f32 1.0, %v3222_v50  ;;  %v4448_v50 = vld [vmem:[%s5116_s3 + $0x1a0] sm:$0xff] }
 0x3c6   :  { %v3224_v44 = vpop.eup %3223 }
 0x3c7   :  { %3229 = vrcp.f32 %v1788_v4  ;;  %v1794_v48 = vadd.f32 1.0, %v3224_v44  ;;  %v3226_v58 = vpop.eup %3225  ;;  %v4454_v4 = vld [vmem:[%s5116_s3 + $0x1b0] sm:$0xff]  ;;  %v4460_v44 = vld [vmem:[%s5116_s3 + $0x188] sm:$0xff] }
 0x3c8   :  { %v3228_v45 = vpop.eup %3227 }
 0x3c9   :  { %3231 = vrcp.f32 %v1794_v48  ;;  %v1801_v14 = vadd.f32 1.0, %v3228_v45  ;;  %v4466_v48 = vld [vmem:[%s5116_s3 + $0x198] sm:$0xff]  ;;  %v4478_v45 = vld [vmem:[%s5116_s3 + $0x190] sm:$0xff] }
 0x3cb   :  { %3233 = vrcp.f32 %v1801_v14  ;;  %v4502_v14 = vld [vmem:[%s5116_s3 + $0x170] sm:$0xff] }
 0x3d4   :  { %v3230_v35 = vpop.eup %3229 }
 0x3d5   :  { %v1805_v11 = vmul.f32 %v3230_v35, %v3226_v58  ;;  %v4472_v58 = vld [vmem:[%s5116_s3 + $0x180] sm:$0xff]  ;;  %v4484_v35 = vld [vmem:[%s5116_s3 + $0x168] sm:$0xff] }
 0x3d6   :  { %v3232_v12 = vpop.eup %3231 }
 0x3d7   :  { %v1804_v15 = vmul.f32 %v3232_v12, %v4310_v22  ;;  %v4406_v22 = vld [vmem:[%s5116_s3 + $0x1f0] sm:$0xff]  ;;  %v4496_v12 = vld [vmem:[%s5116_s3 + $0x160] sm:$0xff] }
 0x3d8   :  { %v3234_v49 = vpop.eup %3233 }
 0x3d9   :  { %v4394_v51 = vadd.f32 %v1805_v11, %v1804_v15  ;;  %v4490_v11 = vld [vmem:[%s5116_s3 + $0x178] sm:$0xff]  ;;  %v4508_v15 = vld [vmem:[%s5116_s3 + $0x148] sm:$0xff] }
 0x3da   :  { %5319 = vst [vmem:[#allocation47_spill] sm:$0xff] %v4508_v15 }
 0x3db   :  { %3235 = vtanh.f32 %v4394_v51 }
 0x3e8   :  { %v3236_v47 = vpop.eup %3235 }
 0x3e9   :  { %v1808_v42 = vmul.f32 %v3236_v47, %v3234_v49  ;;  %v4514_v49 = vld [vmem:[%s5116_s3 + $0x158] sm:$0xff]  ;;  %v4520_v47 = vld [vmem:[%s5116_s3 + $0x140] sm:$0xff] }
 0x3ea   :  { %5320 = vst [vmem:[#allocation48_spill] sm:$0xff] %v4514_v49 }
 0x3eb   :  { %1878 = vmatmul.mubr.f32.vlgmr.msra.gmra.mxu0 %v1808_v42  ;;  %1949 = vmatmul.mubr.f32.vlgmr.msra.gmra.mxu1 %v1808_v42  ;;  %v4526_v42 = vld [vmem:[%s5116_s3 + $0x150] sm:$0xff] }
 0x3ec   :  { %1988 = vmatpush1.msra.mxu0 %v4400_v31  ;;  %2059 = vmatpush1.msra.mxu1 %v4406_v22 }
 0x3ed   :  { %1989 = vmatprep.subr.mxu0 %v4412_v13  ;;  %2060 = vmatprep.subr.mxu1 %v4418_v40 }
 0x3ee   :  { %1990 = vmatpush1.msra.mxu0 %v4424_v43  ;;  %2061 = vmatpush1.msra.mxu1 %v4430_v41 }
 0x3ef   :  { %1991 = vmatprep.subr.mxu0 %v4436_v39  ;;  %2062 = vmatprep.subr.mxu1 %v4442_v37 }
 0x3f0   :  { %1992 = vmatpush1.msra.mxu0 %v4448_v50  ;;  %2063 = vmatpush1.msra.mxu1 %v4454_v4 }
 0x3f1   :  { %1993 = vmatprep.subr.mxu0 %v4460_v44  ;;  %2064 = vmatprep.subr.mxu1 %v4466_v48 }
 0x3f2   :  { %1994 = vmatpush1.msra.mxu0 %v4472_v58  ;;  %2065 = vmatpush1.msra.mxu1 %v4478_v45 }
 0x3f3   :  { %1995 = vmatprep.subr.mxu0 %v4484_v35  ;;  %2066 = vmatprep.subr.mxu1 %v4490_v11 }
 0x3f4   :  { %1996 = vmatpush1.msra.mxu0 %v4496_v12  ;;  %2067 = vmatpush1.msra.mxu1 %v4502_v14 }
 0x3f5   :  { %1997 = vmatprep.subr.mxu0 %v4508_v15  ;;  %2068 = vmatprep.subr.mxu1 %v4514_v49  ;;  %v4532_v15 = vld [vmem:[%s5116_s3 + $0x128] sm:$0xff]  ;;  %v4538_v49 = vld [vmem:[%s5116_s3 + $0x138] sm:$0xff] }
 0x3f6   :  { %1998 = vmatpush1.msra.mxu0 %v4520_v47  ;;  %2069 = vmatpush1.msra.mxu1 %v4526_v42 }
 0x3f7   :  { %1999 = vmatprep.subr.mxu0 %v4532_v15  ;;  %2070 = vmatprep.subr.mxu1 %v4538_v49 }
 0x3f8   :  { %2000 = vmatpush1.msra.mxu0 %v3818_v16  ;;  %2071 = vmatpush1.msra.mxu1 %v3823_v17  ;;  %v5321_v17 = vld [vmem:[#allocation74_spill] sm:$0xff] }
 0x3f9   :  { %2001 = vmatprep.subr.mxu0 %v3830_v18  ;;  %2072 = vmatprep.subr.mxu1 %v3835_v19 }
 0x3fa   :  { %2002 = vmatpush1.msra.mxu0 %v3844_v20  ;;  %2073 = vmatpush1.msra.mxu1 %v3849_v21  ;;  %v5322_v21 = vld [vmem:[#allocation76_spill] sm:$0xff] }
 0x3fb   :  { %2003 = vmatprep.subr.mxu0 %v3858_v23  ;;  %2074 = vmatprep.subr.mxu1 %v3863_v24 }
 0x3fc   :  { %2004 = vmatpush1.msra.mxu0 %v3870_v25  ;;  %2075 = vmatpush1.msra.mxu1 %v3875_v26 }
 0x3fd   :  { %2005 = vmatprep.subr.mxu0 %v3882_v27  ;;  %2076 = vmatprep.subr.mxu1 %v3887_v28  ;;  %v5323_v27 = vld [vmem:[#allocation77_spill] sm:$0xff] }
 0x3fe   :  { %2006 = vmatpush1.msra.mxu0 %v3896_v29  ;;  %2077 = vmatpush1.msra.mxu1 %v3901_v30  ;;  %v5324_v29 = vld [vmem:[#allocation75_spill] sm:$0xff] }
 0x3ff   :  { %2007 = vmatprep.subr.mxu0 %v3910_v32  ;;  %2078 = vmatprep.subr.mxu1 %v3915_v33 }
 0x400   :  { %2008 = vmatpush1.msra.mxu0 %v3922_v34  ;;  %2079 = vmatpush1.msra.mxu1 %v5268_v38 }
 0x401   :  { %2009 = vmatprep.subr.mxu0 %v5269_v46  ;;  %2080 = vmatprep.subr.mxu1 %v5270_v0 }
 0x402   :  { %2010 = vmatpush1.msra.mxu0 %v5271_v36  ;;  %2081 = vmatpush1.msra.mxu1 %v5295_v52 }
 0x403   :  { %2011 = vmatprep.subr.mxu0 %v5296_v53  ;;  %2082 = vmatprep.subr.mxu1 %v5297_v54 }
 0x404   :  { %2012 = vmatpush1.msra.mxu0 %v5298_v55  ;;  %2083 = vmatpush1.msra.mxu1 %v5299_v56 }
 0x405   :  { %2013 = vmatprep.subr.mxu0 %v5300_v57  ;;  %2084 = vmatprep.subr.mxu1 %v5301_v59 }
 0x406   :  { %2014 = vmatpush1.msra.mxu0 %v5302_v60  ;;  %2085 = vmatpush1.msra.mxu1 %v5303_v61 }
 0x407   :  { %2015 = vmatprep.subr.mxu0 %v5304_v62  ;;  %2086 = vmatprep.subr.mxu1 %v5305_v63  ;;  %v5325_v62 = vld [vmem:[#allocation47_spill] sm:$0xff]  ;;  %v5326_v63 = vld [vmem:[#allocation48_spill] sm:$0xff] }
 0x408   :  { %2016 = vmatpush1.msra.mxu0 %v5306_v1  ;;  %2087 = vmatpush1.msra.mxu1 %v5307_v2  ;;  %v4618_v1 = vld [vmem:[%s5116_s3 + $0x120] sm:$0xff]  ;;  %v4624_v2 = vld [vmem:[%s5116_s3 + $0x130] sm:$0xff] }
 0x409   :  { %2017 = vmatprep.subr.mxu0 %v5308_v3  ;;  %2088 = vmatprep.subr.mxu1 %v5309_v5  ;;  %v4630_v3 = vld [vmem:[%s5116_s3 + $0x108] sm:$0xff]  ;;  %v4636_v5 = vld [vmem:[%s5116_s3 + $0x118] sm:$0xff] }
 0x40a   :  { %2018 = vmatpush1.msra.mxu0 %v5310_v6  ;;  %2051 = vmatprep.mubr.f32.mxu0 %v5311_v7  ;;  %v4642_v6 = vld [vmem:[%s5116_s3 + $0x100] sm:$0xff] }
 0x40b   :  { %2089 = vmatpush1.msra.mxu1 %v5312_v8  ;;  %2122 = vmatprep.mubr.f32.mxu1 %v5311_v7  ;;  %v4648_v8 = vld [vmem:[%s5116_s3 + $0x110] sm:$0xff] }
 0x40c   :  { %2161 = vmatprep.subr.mxu0 %v4380_v9  ;;  %2232 = vmatprep.subr.mxu1 %v4386_v10 }
 0x4ab   :  { %v1879_v16 = vpop.f32.mrf.mxu0  ;;  %v1950_v24 = vpop.f32.mrf.mxu1 }
 0x4ac   :  { %v1955_v18 = vadd.f32 %v1879_v16, %v5321_v17  ;;  %v1957_v30 = vadd.f32 %v1950_v24, %v5324_v29  ;;  %v4660_v16 = vld [vmem:[%s5116_s3 + $0xf8] sm:$0xff]  ;;  %v4666_v17 = vld [vmem:[%s5116_s3 + $0xe0] sm:$0xff]  ;;  %v4702_v24 = vld [vmem:[%s5116_s3 + $0xa8] sm:$0xff] }
 0x4ad   :  { %v1881_v19 = vpop.f32.mrf.mxu0  ;;  %v1952_v26 = vpop.f32.mrf.mxu1  ;;  %v4732_v29 = vld [vmem:[%s5116_s3 + $0x98] sm:$0xff] }
 0x4ae   :  { %v3155_v20 = vmul.f32 -1.442695, %v1955_v18  ;;  %v1956_v23 = vadd.f32 %v1881_v19, %v5322_v21  ;;  %v1958_v28 = vadd.f32 %v1952_v26, %v5323_v27  ;;  %v4672_v18 = vld [vmem:[%s5116_s3 + $0xf0] sm:$0xff]  ;;  %v4678_v19 = vld [vmem:[%s5116_s3 + $0xc8] sm:$0xff]  ;;  %v4690_v21 = vld [vmem:[%s5116_s3 + $0xc0] sm:$0xff] }
 0x4af   :  { %v4714_v26 = vld [vmem:[%s5116_s3 + $0xa0] sm:$0xff]  ;;  %v4720_v27 = vld [vmem:[%s5116_s3 + $0xb0] sm:$0xff] }
 0x4b0   :  { %3237 = vpow2.f32 %v3155_v20  ;;  %v3156_v25 = vmul.f32 -1.442695, %v1956_v23  ;;  %v3157_v32 = vmul.f32 -1.442695, %v1958_v28  ;;  %v4684_v20 = vld [vmem:[%s5116_s3 + $0xd8] sm:$0xff]  ;;  %v4696_v23 = vld [vmem:[%s5116_s3 + $0xd0] sm:$0xff] }
 0x4b1   :  { %v4726_v28 = vld [vmem:[%s5116_s3 + $0x88] sm:$0xff] }
 0x4b2   :  { %3239 = vpow2.f32 %v3156_v25  ;;  %v4708_v25 = vld [vmem:[%s5116_s3 + $0xb8] sm:$0xff] }
 0x4b3   :  { %3241 = vtanh.f32 %v1957_v30  ;;  %v4738_v30 = vld [vmem:[%s5116_s3 + $0x80] sm:$0xff] }
 0x4b4   :  { %3243 = vpow2.f32 %v3157_v32  ;;  %v4744_v32 = vld [vmem:[%s5116_s3 + $0x90] sm:$0xff] }
 0x4b5   :  { %5327 = vst [vmem:[#allocation43_spill] sm:$0xff] %v4744_v32 }
 0x4bd   :  { %v3238_v33 = vpop.eup %3237 }
 0x4be   :  { %v1962_v34 = vadd.f32 1.0, %v3238_v33  ;;  %v4750_v33 = vld [vmem:[%s5116_s3 + $0x68] sm:$0xff] }
 0x4bf   :  { %v3240_v38 = vpop.eup %3239  ;;  %5328 = vst [vmem:[#allocation44_spill] sm:$0xff] %v4750_v33 }
 0x4c0   :  { %3245 = vrcp.f32 %v1962_v34  ;;  %v1968_v46 = vadd.f32 1.0, %v3240_v38  ;;  %v3242_v0 = vpop.eup %3241  ;;  %v4756_v34 = vld [vmem:[%s5116_s3 + $0x78] sm:$0xff]  ;;  %v4762_v38 = vld [vmem:[%s5116_s3 + $0x60] sm:$0xff] }
 0x4c1   :  { %v3244_v36 = vpop.eup %3243  ;;  %5329 = vst [vmem:[#allocation68_spill] sm:$0xff] %v4756_v34  ;;  %5330 = vst [vmem:[#allocation69_spill] sm:$0xff] %v4762_v38 }
 0x4c2   :  { %3247 = vrcp.f32 %v1968_v46  ;;  %v1975_v55 = vadd.f32 1.0, %v3244_v36  ;;  %v4768_v46 = vld [vmem:[%s5116_s3 + $0x70] sm:$0xff]  ;;  %v4780_v36 = vld [vmem:[%s5116_s3 + $0x58] sm:$0xff] }
 0x4c3   :  { %5331 = vst [vmem:[#allocation67_spill] sm:$0xff] %v4768_v46  ;;  %5333 = vst [vmem:[#allocation50_spill] sm:$0xff] %v4780_v36 }
 0x4c4   :  { %3249 = vrcp.f32 %v1975_v55  ;;  %v4804_v55 = vld [vmem:[%s5116_s3 + $0x38] sm:$0xff] }
 0x4c5   :  { %5337 = vst [vmem:[#allocation54_spill] sm:$0xff] %v4804_v55 }
 0x4cd   :  { %v3246_v52 = vpop.eup %3245 }
 0x4ce   :  { %v1979_v53 = vmul.f32 %v3246_v52, %v3242_v0  ;;  %v4774_v0 = vld [vmem:[%s5116_s3 + $0x48] sm:$0xff]  ;;  %v4786_v52 = vld [vmem:[%s5116_s3 + $0x40] sm:$0xff] }
 0x4cf   :  { %v3248_v54 = vpop.eup %3247  ;;  %5332 = vst [vmem:[#allocation49_spill] sm:$0xff] %v4774_v0  ;;  %5334 = vst [vmem:[#allocation51_spill] sm:$0xff] %v4786_v52 }
 0x4d0   :  { %v1978_v56 = vmul.f32 %v3248_v54, %v4394_v51  ;;  %v4654_v51 = vld [vmem:[%s5116_s3 + $0xe8] sm:$0xff] }
 0x4d1   :  { %v3250_v59 = vpop.eup %3249  ;;  %v4798_v54 = vld [vmem:[%s5116_s3 + $0x28] sm:$0xff] }
 0x4d2   :  { %v4588_v57 = vadd.f32 %v1979_v53, %v1978_v56  ;;  %v4792_v53 = vld [vmem:[%s5116_s3 + $0x50] sm:$0xff]  ;;  %5336 = vst [vmem:[#allocation53_spill] sm:$0xff] %v4798_v54  ;;  %v4810_v56 = vld [vmem:[%s5116_s3 + $0x20] sm:$0xff] }
 0x4d3   :  { %5335 = vst [vmem:[#allocation52_spill] sm:$0xff] %v4792_v53  ;;  %5338 = vst [vmem:[#allocation55_spill] sm:$0xff] %v4810_v56 }
 0x4d4   :  { %3251 = vtanh.f32 %v4588_v57 }
 0x4e1   :  { %v3252_v60 = vpop.eup %3251 }
 0x4e2   :  { %v1982_v61 = vmul.f32 %v3252_v60, %v3250_v59  ;;  %v4816_v59 = vld [vmem:[%s5116_s3 + $0x30] sm:$0xff]  ;;  %v4822_v60 = vld [vmem:[%s5116_s3 + $0x8] sm:$0xff] }
 0x4e3   :  { %5339 = vst [vmem:[#allocation56_spill] sm:$0xff] %v4816_v59  ;;  %5340 = vst [vmem:[#allocation57_spill] sm:$0xff] %v4822_v60 }
 0x4e4   :  { %2052 = vmatmul.mubr.f32.vlgmr.msra.gmra.mxu0 %v1982_v61  ;;  %2123 = vmatmul.mubr.f32.vlgmr.msra.gmra.mxu1 %v1982_v61  ;;  %v4828_v61 = vld [vmem:[%s5116_s3 + $0x18] sm:$0xff] }
 0x4e5   :  { %2162 = vmatpush1.msra.mxu0 %v4400_v31  ;;  %2233 = vmatpush1.msra.mxu1 %v4406_v22  ;;  %5341 = vst [vmem:[#allocation58_spill] sm:$0xff] %v4828_v61 }
 0x4e6   :  { %2163 = vmatprep.subr.mxu0 %v4412_v13  ;;  %2234 = vmatprep.subr.mxu1 %v4418_v40 }
 0x4e7   :  { %2164 = vmatpush1.msra.mxu0 %v4424_v43  ;;  %2235 = vmatpush1.msra.mxu1 %v4430_v41 }
 0x4e8   :  { %2165 = vmatprep.subr.mxu0 %v4436_v39  ;;  %2236 = vmatprep.subr.mxu1 %v4442_v37 }
 0x4e9   :  { %2166 = vmatpush1.msra.mxu0 %v4448_v50  ;;  %2237 = vmatpush1.msra.mxu1 %v4454_v4 }
 0x4ea   :  { %2167 = vmatprep.subr.mxu0 %v4460_v44  ;;  %2238 = vmatprep.subr.mxu1 %v4466_v48 }
 0x4eb   :  { %2168 = vmatpush1.msra.mxu0 %v4472_v58  ;;  %2239 = vmatpush1.msra.mxu1 %v4478_v45 }
 0x4ec   :  { %2169 = vmatprep.subr.mxu0 %v4484_v35  ;;  %2240 = vmatprep.subr.mxu1 %v4490_v11 }
 0x4ed   :  { %2170 = vmatpush1.msra.mxu0 %v4496_v12  ;;  %2241 = vmatpush1.msra.mxu1 %v4502_v14 }
 0x4ee   :  { %2171 = vmatprep.subr.mxu0 %v5325_v62  ;;  %2242 = vmatprep.subr.mxu1 %v5326_v63 }
 0x4ef   :  { %2172 = vmatpush1.msra.mxu0 %v4520_v47  ;;  %2243 = vmatpush1.msra.mxu1 %v4526_v42 }
 0x4f0   :  { %2173 = vmatprep.subr.mxu0 %v4532_v15  ;;  %2244 = vmatprep.subr.mxu1 %v4538_v49 }
 0x4f1   :  { %2174 = vmatpush1.msra.mxu0 %v4618_v1  ;;  %2245 = vmatpush1.msra.mxu1 %v4624_v2 }
 0x4f2   :  { %2175 = vmatprep.subr.mxu0 %v4630_v3  ;;  %2246 = vmatprep.subr.mxu1 %v4636_v5 }
 0x4f3   :  { %2176 = vmatpush1.msra.mxu0 %v4642_v6  ;;  %2247 = vmatpush1.msra.mxu1 %v4648_v8 }
 0x4f4   :  { %2177 = vmatprep.subr.mxu0 %v4654_v51  ;;  %2248 = vmatprep.subr.mxu1 %v4660_v16 }
 0x4f5   :  { %2178 = vmatpush1.msra.mxu0 %v4666_v17  ;;  %2249 = vmatpush1.msra.mxu1 %v4672_v18 }
 0x4f6   :  { %2179 = vmatprep.subr.mxu0 %v4678_v19  ;;  %2250 = vmatprep.subr.mxu1 %v4684_v20 }
 0x4f7   :  { %2180 = vmatpush1.msra.mxu0 %v4690_v21  ;;  %2251 = vmatpush1.msra.mxu1 %v4696_v23 }
 0x4f8   :  { %2181 = vmatprep.subr.mxu0 %v4702_v24  ;;  %2252 = vmatprep.subr.mxu1 %v4708_v25 }
 0x4f9   :  { %2182 = vmatpush1.msra.mxu0 %v4714_v26  ;;  %2253 = vmatpush1.msra.mxu1 %v4720_v27 }
 0x4fa   :  { %2183 = vmatprep.subr.mxu0 %v4726_v28  ;;  %2254 = vmatprep.subr.mxu1 %v4732_v29 }
 0x4fb   :  { %2184 = vmatpush1.msra.mxu0 %v4738_v30  ;;  %2255 = vmatpush1.msra.mxu1 %v4744_v32 }
 0x4fc   :  { %2185 = vmatprep.subr.mxu0 %v4750_v33  ;;  %2256 = vmatprep.subr.mxu1 %v4756_v34  ;;  %v5347_v34 = vld [vmem:[#allocation79_spill] sm:$0xff] }
 0x4fd   :  { %2186 = vmatpush1.msra.mxu0 %v4762_v38  ;;  %2257 = vmatpush1.msra.mxu1 %v4768_v46  ;;  %v5346_v38 = vld [vmem:[#allocation81_spill] sm:$0xff] }
 0x4fe   :  { %2187 = vmatprep.subr.mxu0 %v4774_v0  ;;  %2258 = vmatprep.subr.mxu1 %v4780_v36 }
 0x4ff   :  { %2188 = vmatpush1.msra.mxu0 %v4786_v52  ;;  %2259 = vmatpush1.msra.mxu1 %v4792_v53  ;;  %v5345_v53 = vld [vmem:[#allocation80_spill] sm:$0xff] }
 0x500   :  { %2189 = vmatprep.subr.mxu0 %v4798_v54  ;;  %2260 = vmatprep.subr.mxu1 %v4804_v55 }
 0x501   :  { %2190 = vmatpush1.msra.mxu0 %v4810_v56  ;;  %2261 = vmatpush1.msra.mxu1 %v4816_v59  ;;  %v4834_v56 = vld [vmem:[%s5116_s3] sm:$0xff]  ;;  %v5344_v59 = vld [vmem:[#allocation78_spill] sm:$0xff] }
 0x502   :  { %2191 = vmatprep.subr.mxu0 %v4822_v60  ;;  %2262 = vmatprep.subr.mxu1 %v4828_v61  ;;  %5342 = vst [vmem:[#allocation59_spill] sm:$0xff] %v4834_v56  ;;  %v4841_v60 = vld [vmem:[%s5116_s3 + $0x10] sm:$0xff] }
 0x503   :  { %2192 = vmatpush1.msra.mxu0 %v4834_v56  ;;  %2225 = vmatprep.mubr.f32.mxu0 %v5311_v7  ;;  %5343 = vst [vmem:[#allocation60_spill] sm:$0xff] %v4841_v60 }
 0x504   :  { %2263 = vmatpush1.msra.mxu1 %v4841_v60  ;;  %2296 = vmatprep.mubr.f32.mxu1 %v5311_v7 }
 0x505   :  { %2335 = vmatprep.subr.mxu0 %v4380_v9  ;;  %2406 = vmatprep.subr.mxu1 %v4386_v10 }
 0x5a4   :  { %v2053_v61 = vpop.f32.mrf.mxu0  ;;  %v2124_v36 = vpop.f32.mrf.mxu1 }
 0x5a5   :  { %v2129_v55 = vadd.f32 %v2053_v61, %v5344_v59  ;;  %v2131_v7 = vadd.f32 %v2124_v36, %v5347_v34  ;;  %v5353_v36 = vld [vmem:[#allocation49_spill] sm:$0xff] }
 0x5a6   :  { %v2055_v54 = vpop.f32.mrf.mxu0  ;;  %v2126_v46 = vpop.f32.mrf.mxu1 }
 0x5a7   :  { %v3158_v56 = vmul.f32 -1.442695, %v2129_v55  ;;  %v2130_v52 = vadd.f32 %v2055_v54, %v5345_v53  ;;  %v2132_v60 = vadd.f32 %v2126_v46, %v5346_v38  ;;  %v5352_v46 = vld [vmem:[#allocation67_spill] sm:$0xff] }
 0x5a9   :  { %3253 = vpow2.f32 %v3158_v56  ;;  %v3159_v0 = vmul.f32 -1.442695, %v2130_v52  ;;  %v3160_v33 = vmul.f32 -1.442695, %v2132_v60  ;;  %v5354_v60 = vld [vmem:[#allocation50_spill] sm:$0xff] }
 0x5ab   :  { %3255 = vpow2.f32 %v3159_v0 }
 0x5ac   :  { %3257 = vtanh.f32 %v2131_v7 }
 0x5ad   :  { %3259 = vpow2.f32 %v3160_v33  ;;  %v5351_v33 = vld [vmem:[#allocation69_spill] sm:$0xff] }
 0x5b6   :  { %v3254_v9 = vpop.eup %3253 }
 0x5b7   :  { %v2136_v32 = vadd.f32 1.0, %v3254_v9 }
 0x5b8   :  { %v3256_v10 = vpop.eup %3255 }
 0x5b9   :  { %3261 = vrcp.f32 %v2136_v32  ;;  %v2142_v59 = vadd.f32 1.0, %v3256_v10  ;;  %v3258_v55 = vpop.eup %3257  ;;  %v5348_v10 = vld [vmem:[#allocation43_spill] sm:$0xff]  ;;  %v5350_v32 = vld [vmem:[#allocation68_spill] sm:$0xff] }
 0x5ba   :  { %v3260_v53 = vpop.eup %3259 }
 0x5bb   :  { %3263 = vrcp.f32 %v2142_v59  ;;  %v2149_v0 = vadd.f32 1.0, %v3260_v53  ;;  %v5355_v59 = vld [vmem:[#allocation51_spill] sm:$0xff]  ;;  %v5357_v53 = vld [vmem:[#allocation53_spill] sm:$0xff] }
 0x5bd   :  { %3265 = vrcp.f32 %v2149_v0  ;;  %v5361_v0 = vld [vmem:[#allocation57_spill] sm:$0xff] }
 0x5c6   :  { %v3262_v54 = vpop.eup %3261 }
 0x5c7   :  { %v2153_v56 = vmul.f32 %v3262_v54, %v3258_v55  ;;  %v5356_v55 = vld [vmem:[#allocation52_spill] sm:$0xff]  ;;  %v5358_v54 = vld [vmem:[#allocation54_spill] sm:$0xff] }
 0x5c8   :  { %v3264_v52 = vpop.eup %3263 }
 0x5c9   :  { %v2152_v61 = vmul.f32 %v3264_v52, %v4588_v57  ;;  %v5349_v57 = vld [vmem:[#allocation44_spill] sm:$0xff] }
 0x5ca   :  { %v3266_v9 = vpop.eup %3265  ;;  %v5360_v52 = vld [vmem:[#allocation56_spill] sm:$0xff] }
 0x5cb   :  { %v4852_v38 = vadd.f32 %v2153_v56, %v2152_v61  ;;  %v5359_v56 = vld [vmem:[#allocation55_spill] sm:$0xff]  ;;  %v5362_v61 = vld [vmem:[#allocation58_spill] sm:$0xff] }
 0x5cd   :  { %3267 = vtanh.f32 %v4852_v38 }
 0x5da   :  { %v3268_v7 = vpop.eup %3267 }
 0x5db   :  { %v2156_v34 = vmul.f32 %v3268_v7, %v3266_v9  ;;  %v5363_v9 = vld [vmem:[#allocation59_spill] sm:$0xff]  ;;  %v5364_v7 = vmov 0.0  }
 0x5dd   :  { %2226 = vmatmul.mubr.f32.vlgmr.msra.gmra.mxu0 %v2156_v34  ;;  %2297 = vmatmul.mubr.f32.vlgmr.msra.gmra.mxu1 %v2156_v34  ;;  %v5365_v34 = vld [vmem:[#allocation60_spill] sm:$0xff] }
 0x5de   :  { %2336 = vmatpush1.msra.mxu0 %v4400_v31  ;;  %2407 = vmatpush1.msra.mxu1 %v4406_v22 }
 0x5df   :  { %2337 = vmatprep.subr.mxu0 %v4412_v13  ;;  %2408 = vmatprep.subr.mxu1 %v4418_v40 }
 0x5e0   :  { %2338 = vmatpush1.msra.mxu0 %v4424_v43  ;;  %2409 = vmatpush1.msra.mxu1 %v4430_v41 }
 0x5e1   :  { %2339 = vmatprep.subr.mxu0 %v4436_v39  ;;  %2410 = vmatprep.subr.mxu1 %v4442_v37 }
 0x5e2   :  { %2340 = vmatpush1.msra.mxu0 %v4448_v50  ;;  %2411 = vmatpush1.msra.mxu1 %v4454_v4 }
 0x5e3   :  { %2341 = vmatprep.subr.mxu0 %v4460_v44  ;;  %2412 = vmatprep.subr.mxu1 %v4466_v48 }
 0x5e4   :  { %2342 = vmatpush1.msra.mxu0 %v4472_v58  ;;  %2413 = vmatpush1.msra.mxu1 %v4478_v45 }
 0x5e5   :  { %2343 = vmatprep.subr.mxu0 %v4484_v35  ;;  %2414 = vmatprep.subr.mxu1 %v4490_v11 }
 0x5e6   :  { %2344 = vmatpush1.msra.mxu0 %v4496_v12  ;;  %2415 = vmatpush1.msra.mxu1 %v4502_v14 }
 0x5e7   :  { %2345 = vmatprep.subr.mxu0 %v5325_v62  ;;  %2416 = vmatprep.subr.mxu1 %v5326_v63 }
 0x5e8   :  { %2346 = vmatpush1.msra.mxu0 %v4520_v47  ;;  %2417 = vmatpush1.msra.mxu1 %v4526_v42 }
 0x5e9   :  { %2347 = vmatprep.subr.mxu0 %v4532_v15  ;;  %2418 = vmatprep.subr.mxu1 %v4538_v49 }
 0x5ea   :  { %2348 = vmatpush1.msra.mxu0 %v4618_v1  ;;  %2419 = vmatpush1.msra.mxu1 %v4624_v2 }
 0x5eb   :  { %2349 = vmatprep.subr.mxu0 %v4630_v3  ;;  %2420 = vmatprep.subr.mxu1 %v4636_v5 }
 0x5ec   :  { %2350 = vmatpush1.msra.mxu0 %v4642_v6  ;;  %2421 = vmatpush1.msra.mxu1 %v4648_v8 }
 0x5ed   :  { %2351 = vmatprep.subr.mxu0 %v4654_v51  ;;  %2422 = vmatprep.subr.mxu1 %v4660_v16 }
 0x5ee   :  { %2352 = vmatpush1.msra.mxu0 %v4666_v17  ;;  %2423 = vmatpush1.msra.mxu1 %v4672_v18 }
 0x5ef   :  { %2353 = vmatprep.subr.mxu0 %v4678_v19  ;;  %2424 = vmatprep.subr.mxu1 %v4684_v20 }
 0x5f0   :  { %2354 = vmatpush1.msra.mxu0 %v4690_v21  ;;  %2425 = vmatpush1.msra.mxu1 %v4696_v23 }
 0x5f1   :  { %2355 = vmatprep.subr.mxu0 %v4702_v24  ;;  %2426 = vmatprep.subr.mxu1 %v4708_v25 }
 0x5f2   :  { %2356 = vmatpush1.msra.mxu0 %v4714_v26  ;;  %2427 = vmatpush1.msra.mxu1 %v4720_v27 }
 0x5f3   :  { %2357 = vmatprep.subr.mxu0 %v4726_v28  ;;  %2428 = vmatprep.subr.mxu1 %v4732_v29 }
 0x5f4   :  { %2358 = vmatpush1.msra.mxu0 %v4738_v30  ;;  %2429 = vmatpush1.msra.mxu1 %v5348_v10 }
 0x5f5   :  { %2359 = vmatprep.subr.mxu0 %v5349_v57  ;;  %2430 = vmatprep.subr.mxu1 %v5350_v32  ;;  %v5371_v32 = vld [vmem:[#allocation83_spill] sm:$0xff] }
 0x5f6   :  { %2360 = vmatpush1.msra.mxu0 %v5351_v33  ;;  %2431 = vmatpush1.msra.mxu1 %v5352_v46  ;;  %v5370_v33 = vld [vmem:[#allocation85_spill] sm:$0xff] }
 0x5f7   :  { %2361 = vmatprep.subr.mxu0 %v5353_v36  ;;  %2432 = vmatprep.subr.mxu1 %v5354_v60 }
 0x5f8   :  { %2362 = vmatpush1.msra.mxu0 %v5355_v59  ;;  %2433 = vmatpush1.msra.mxu1 %v5356_v55  ;;  %v5366_v55 = vld [vmem:[#allocation45_spill] sm:$0xff] }
 0x5f9   :  { %2363 = vmatprep.subr.mxu0 %v5357_v53  ;;  %2434 = vmatprep.subr.mxu1 %v5358_v54  ;;  %v5367_v53 = vld [vmem:[#allocation46_spill] sm:$0xff] }
 0x5fa   :  { %2364 = vmatpush1.msra.mxu0 %v5359_v56  ;;  %2435 = vmatpush1.msra.mxu1 %v5360_v52  ;;  %v5368_v56 = vld [vmem:[#allocation82_spill] sm:$0xff] }
 0x5fb   :  { %2365 = vmatprep.subr.mxu0 %v5361_v0  ;;  %2436 = vmatprep.subr.mxu1 %v5362_v61  ;;  %v5369_v0 = vld [vmem:[#allocation84_spill] sm:$0xff] }
 0x5fc   :  { %2366 = vmatpush1.msra.mxu0 %v5363_v9  ;;  %2399 = vmatprep.mubr.f32.mxu0 %v5364_v7 }
 0x5fd   :  { %2437 = vmatpush1.msra.mxu1 %v5365_v34  ;;  %2470 = vmatprep.mubr.f32.mxu1 %v5364_v7 }
 0x5fe   :  { %2509 = vmatprep.subr.mxu0 %v5366_v55  ;;  %2580 = vmatprep.subr.mxu1 %v5367_v53 }
 0x69d   :  { %v2227_v54 = vpop.f32.mrf.mxu0  ;;  %v2298_v61 = vpop.f32.mrf.mxu1 }
 0x69e   :  { %v2303_v59 = vadd.f32 %v2227_v54, %v5368_v56  ;;  %v2305_v7 = vadd.f32 %v2298_v61, %v5371_v32 }
 0x69f   :  { %v2229_v52 = vpop.f32.mrf.mxu0  ;;  %v2300_v46 = vpop.f32.mrf.mxu1 }
 0x6a0   :  { %v3161_v60 = vmul.f32 -1.442695, %v2303_v59  ;;  %v2304_v36 = vadd.f32 %v2229_v52, %v5369_v0  ;;  %v2306_v34 = vadd.f32 %v2300_v46, %v5370_v33 }
 0x6a2   :  { %3269 = vpow2.f32 %v3161_v60  ;;  %v3162_v9 = vmul.f32 -1.442695, %v2304_v36  ;;  %v3163_v57 = vmul.f32 -1.442695, %v2306_v34  ;;  %v2709_v34 = vld [vmem:[%s5118_s5 + $0xf0] sm:$0xff] }
 0x6a4   :  { %3271 = vpow2.f32 %v3162_v9 }
 0x6a5   :  { %3273 = vtanh.f32 %v2305_v7  ;;  %v2710_v7 = vld [vmem:[%s5118_s5 + $0xf8] sm:$0xff] }
 0x6a6   :  { %3275 = vpow2.f32 %v3163_v57 }
 0x6af   :  { %v3270_v55 = vpop.eup %3269 }
 0x6b0   :  { %v2310_v10 = vadd.f32 1.0, %v3270_v55  ;;  %v2708_v55 = vld [vmem:[%s5118_s5 + $0xe8] sm:$0xff] }
 0x6b1   :  { %v3272_v53 = vpop.eup %3271 }
 0x6b2   :  { %3277 = vrcp.f32 %v2310_v10  ;;  %v2316_v54 = vadd.f32 1.0, %v3272_v53  ;;  %v3274_v59 = vpop.eup %3273  ;;  %v2707_v53 = vld [vmem:[%s5118_s5 + $0xe0] sm:$0xff] }
 0x6b3   :  { %v3276_v56 = vpop.eup %3275 }
 0x6b4   :  { %3279 = vrcp.f32 %v2316_v54  ;;  %v2323_v0 = vadd.f32 1.0, %v3276_v56  ;;  %v2706_v54 = vld [vmem:[%s5118_s5 + $0xd8] sm:$0xff]  ;;  %v2704_v56 = vld [vmem:[%s5118_s5 + $0xc8] sm:$0xff] }
 0x6b6   :  { %3281 = vrcp.f32 %v2323_v0  ;;  %v2700_v0 = vld [vmem:[%s5118_s5 + $0xa8] sm:$0xff] }
 0x6bf   :  { %v3278_v60 = vpop.eup %3277 }
 0x6c0   :  { %v2327_v52 = vmul.f32 %v3278_v60, %v3274_v59  ;;  %v2705_v59 = vld [vmem:[%s5118_s5 + $0xd0] sm:$0xff]  ;;  %v2703_v60 = vld [vmem:[%s5118_s5 + $0xc0] sm:$0xff] }
 0x6c1   :  { %v3280_v36 = vpop.eup %3279 }
 0x6c2   :  { %v2326_v9 = vmul.f32 %v3280_v36, %v4852_v38  ;;  %v2701_v36 = vld [vmem:[%s5118_s5 + $0xb0] sm:$0xff] }
 0x6c3   :  { %v3282_v32 = vpop.eup %3281 }
 0x6c4   :  { %v4926_v33 = vadd.f32 %v2327_v52, %v2326_v9  ;;  %v2702_v52 = vld [vmem:[%s5118_s5 + $0xb8] sm:$0xff]  ;;  %v2699_v9 = vld [vmem:[%s5118_s5 + $0xa0] sm:$0xff] }
 0x6c6   :  { %3283 = vtanh.f32 %v4926_v33 }
 0x6d3   :  { %v3284_v46 = vpop.eup %3283 }
 0x6d4   :  { %v2330_v61 = vmul.f32 %v3284_v46, %v3282_v32  ;;  %v2697_v32 = vld [vmem:[%s5118_s5 + $0x90] sm:$0xff]  ;;  %v2696_v46 = vld [vmem:[%s5118_s5 + $0x88] sm:$0xff] }
 0x6d6   :  { %2400 = vmatmul.mubr.f32.vlgmr.msra.gmra.mxu0 %v2330_v61  ;;  %2471 = vmatmul.mubr.f32.vlgmr.msra.gmra.mxu1 %v2330_v61  ;;  %v2695_v61 = vld [vmem:[%s5118_s5 + $0x80] sm:$0xff] }
 0x6d7   :  { %2510 = vmatpush1.msra.mxu0 %v4400_v31  ;;  %2581 = vmatpush1.msra.mxu1 %v4406_v22  ;;  %v5372_v31 = vld [vmem:[#allocation43_spill] sm:$0xff]  ;;  %v5373_v22 = vld [vmem:[#allocation44_spill] sm:$0xff] }
 0x6d8   :  { %2511 = vmatprep.subr.mxu0 %v4412_v13  ;;  %2582 = vmatprep.subr.mxu1 %v4418_v40  ;;  %v5374_v13 = vld [vmem:[#allocation68_spill] sm:$0xff]  ;;  %v5375_v40 = vld [vmem:[#allocation69_spill] sm:$0xff] }
 0x6d9   :  { %2512 = vmatpush1.msra.mxu0 %v4424_v43  ;;  %2583 = vmatpush1.msra.mxu1 %v4430_v41  ;;  %v5376_v43 = vld [vmem:[#allocation67_spill] sm:$0xff]  ;;  %v5377_v41 = vld [vmem:[#allocation49_spill] sm:$0xff] }
 0x6da   :  { %2513 = vmatprep.subr.mxu0 %v4436_v39  ;;  %2584 = vmatprep.subr.mxu1 %v4442_v37  ;;  %v5378_v39 = vld [vmem:[#allocation50_spill] sm:$0xff]  ;;  %v5379_v37 = vld [vmem:[#allocation51_spill] sm:$0xff] }
 0x6db   :  { %2514 = vmatpush1.msra.mxu0 %v4448_v50  ;;  %2585 = vmatpush1.msra.mxu1 %v4454_v4  ;;  %v5380_v50 = vld [vmem:[#allocation52_spill] sm:$0xff]  ;;  %v5381_v4 = vld [vmem:[#allocation53_spill] sm:$0xff] }
 0x6dc   :  { %2515 = vmatprep.subr.mxu0 %v4460_v44  ;;  %2586 = vmatprep.subr.mxu1 %v4466_v48  ;;  %v5382_v44 = vld [vmem:[#allocation54_spill] sm:$0xff]  ;;  %v5383_v48 = vld [vmem:[#allocation55_spill] sm:$0xff] }
 0x6dd   :  { %2516 = vmatpush1.msra.mxu0 %v4472_v58  ;;  %2587 = vmatpush1.msra.mxu1 %v4478_v45  ;;  %v5384_v58 = vld [vmem:[#allocation56_spill] sm:$0xff]  ;;  %v5385_v45 = vld [vmem:[#allocation57_spill] sm:$0xff] }
 0x6de   :  { %2517 = vmatprep.subr.mxu0 %v4484_v35  ;;  %2588 = vmatprep.subr.mxu1 %v4490_v11  ;;  %v5386_v35 = vld [vmem:[#allocation58_spill] sm:$0xff]  ;;  %v5387_v11 = vld [vmem:[#allocation59_spill] sm:$0xff] }
 0x6df   :  { %2518 = vmatpush1.msra.mxu0 %v4496_v12  ;;  %2589 = vmatpush1.msra.mxu1 %v4502_v14  ;;  %v5388_v12 = vmov 0.0   ;;  %v5389_v14 = vld [vmem:[#allocation60_spill] sm:$0xff] }
 0x6e0   :  { %2519 = vmatprep.subr.mxu0 %v5325_v62  ;;  %2590 = vmatprep.subr.mxu1 %v5326_v63  ;;  %v5391_v63 = vld [vmem:[#allocation88_spill] sm:$0xff] }
 0x6e1   :  { %2520 = vmatpush1.msra.mxu0 %v4520_v47  ;;  %2591 = vmatpush1.msra.mxu1 %v4526_v42 }
 0x6e2   :  { %2521 = vmatprep.subr.mxu0 %v4532_v15  ;;  %2592 = vmatprep.subr.mxu1 %v4538_v49  ;;  %v5390_v49 = vld [vmem:[#allocation86_spill] sm:$0xff] }
 0x6e3   :  { %2522 = vmatpush1.msra.mxu0 %v4618_v1  ;;  %2593 = vmatpush1.msra.mxu1 %v4624_v2 }
 0x6e4   :  { %2523 = vmatprep.subr.mxu0 %v4630_v3  ;;  %2594 = vmatprep.subr.mxu1 %v4636_v5 }
 0x6e5   :  { %2524 = vmatpush1.msra.mxu0 %v4642_v6  ;;  %2595 = vmatpush1.msra.mxu1 %v4648_v8  ;;  %v5392_v6 = vld [vmem:[#allocation89_spill] sm:$0xff] }
 0x6e6   :  { %2525 = vmatprep.subr.mxu0 %v4654_v51  ;;  %2596 = vmatprep.subr.mxu1 %v4660_v16  ;;  %v5393_v51 = vld [vmem:[#allocation87_spill] sm:$0xff] }
 0x6e7   :  { %2526 = vmatpush1.msra.mxu0 %v4666_v17  ;;  %2597 = vmatpush1.msra.mxu1 %v4672_v18 }
 0x6e8   :  { %2527 = vmatprep.subr.mxu0 %v4678_v19  ;;  %2598 = vmatprep.subr.mxu1 %v4684_v20 }
 0x6e9   :  { %2528 = vmatpush1.msra.mxu0 %v4690_v21  ;;  %2599 = vmatpush1.msra.mxu1 %v4696_v23 }
 0x6ea   :  { %2529 = vmatprep.subr.mxu0 %v4702_v24  ;;  %2600 = vmatprep.subr.mxu1 %v4708_v25 }
 0x6eb   :  { %2530 = vmatpush1.msra.mxu0 %v4714_v26  ;;  %2601 = vmatpush1.msra.mxu1 %v4720_v27 }
 0x6ec   :  { %2531 = vmatprep.subr.mxu0 %v4726_v28  ;;  %2602 = vmatprep.subr.mxu1 %v4732_v29 }
 0x6ed   :  { %2532 = vmatpush1.msra.mxu0 %v4738_v30  ;;  %2603 = vmatpush1.msra.mxu1 %v5372_v31  ;;  %v2694_v31 = vld [vmem:[%s5118_s5 + $0x78] sm:$0xff] }
 0x6ee   :  { %2533 = vmatprep.subr.mxu0 %v5373_v22  ;;  %2604 = vmatprep.subr.mxu1 %v5374_v13  ;;  %v2693_v22 = vld [vmem:[%s5118_s5 + $0x70] sm:$0xff]  ;;  %v2692_v13 = vld [vmem:[%s5118_s5 + $0x68] sm:$0xff] }
 0x6ef   :  { %2534 = vmatpush1.msra.mxu0 %v5375_v40  ;;  %2605 = vmatpush1.msra.mxu1 %v5376_v43  ;;  %v2691_v40 = vld [vmem:[%s5118_s5 + $0x60] sm:$0xff]  ;;  %v2690_v43 = vld [vmem:[%s5118_s5 + $0x58] sm:$0xff] }
 0x6f0   :  { %2535 = vmatprep.subr.mxu0 %v5377_v41  ;;  %2606 = vmatprep.subr.mxu1 %v5378_v39  ;;  %v2689_v41 = vld [vmem:[%s5118_s5 + $0x50] sm:$0xff]  ;;  %v2688_v39 = vld [vmem:[%s5118_s5 + $0x48] sm:$0xff] }
 0x6f1   :  { %2536 = vmatpush1.msra.mxu0 %v5379_v37  ;;  %2607 = vmatpush1.msra.mxu1 %v5380_v50  ;;  %v2687_v37 = vld [vmem:[%s5118_s5 + $0x40] sm:$0xff]  ;;  %v2686_v50 = vld [vmem:[%s5118_s5 + $0x38] sm:$0xff] }
 0x6f2   :  { %2537 = vmatprep.subr.mxu0 %v5381_v4  ;;  %2608 = vmatprep.subr.mxu1 %v5382_v44  ;;  %v2685_v4 = vld [vmem:[%s5118_s5 + $0x30] sm:$0xff]  ;;  %v2684_v44 = vld [vmem:[%s5118_s5 + $0x28] sm:$0xff] }
 0x6f3   :  { %2538 = vmatpush1.msra.mxu0 %v5383_v48  ;;  %2609 = vmatpush1.msra.mxu1 %v5384_v58  ;;  %v2683_v48 = vld [vmem:[%s5118_s5 + $0x20] sm:$0xff]  ;;  %v2682_v58 = vld [vmem:[%s5118_s5 + $0x18] sm:$0xff] }
 0x6f4   :  { %2539 = vmatprep.subr.mxu0 %v5385_v45  ;;  %2610 = vmatprep.subr.mxu1 %v5386_v35  ;;  %v2681_v45 = vld [vmem:[%s5118_s5 + $0x10] sm:$0xff]  ;;  %v2680_v35 = vld [vmem:[%s5118_s5 + $0x8] sm:$0xff] }
 0x6f5   :  { %2540 = vmatpush1.msra.mxu0 %v5387_v11  ;;  %2573 = vmatprep.mubr.f32.mxu0 %v5388_v12  ;;  %v2679_v11 = vld [vmem:[%s5118_s5] sm:$0xff] }
 0x6f6   :  { %2611 = vmatpush1.msra.mxu1 %v5389_v14  ;;  %2644 = vmatprep.mubr.f32.mxu1 %v5388_v12  ;;  %v5394_v14 = vld [vmem:[#allocation90_spill] sm:$0xff] }
 0x6f7   :  { %2723 = vmatprep.subr.mxu0 %v2710_v7  ;;  %v5398_v7 = vld [vmem:[#allocation66_spill] sm:$0xff] }
 0x796   :  { %v2401_v15 = vpop.f32.mrf.mxu0  ;;  %v2472_v2 = vpop.f32.mrf.mxu1 }
 0x797   :  { %v2477_v47 = vadd.f32 %v2401_v15, %v5390_v49  ;;  %v2479_v16 = vadd.f32 %v2472_v2, %v5393_v51 }
 0x798   :  { %v2403_v42 = vpop.f32.mrf.mxu0  ;;  %v2474_v5 = vpop.f32.mrf.mxu1 }
 0x799   :  { %v3164_v62 = vmul.f32 -1.442695, %v2477_v47  ;;  %v2478_v1 = vadd.f32 %v2403_v42, %v5391_v63  ;;  %v2480_v8 = vadd.f32 %v2474_v5, %v5392_v6  ;;  %v5395_v42 = vld [vmem:[#allocation92_spill] sm:$0xff]  ;;  %v5397_v6 = vld [vmem:[#allocation91_spill] sm:$0xff] }
 0x79b   :  { %3285 = vpow2.f32 %v3164_v62  ;;  %v3165_v3 = vmul.f32 -1.442695, %v2478_v1  ;;  %v3166_v17 = vmul.f32 -1.442695, %v2480_v8 }
 0x79d   :  { %3287 = vpow2.f32 %v3165_v3  ;;  %v5396_v3 = vld [vmem:[#allocation93_spill] sm:$0xff] }
 0x79e   :  { %3289 = vtanh.f32 %v2479_v16 }
 0x79f   :  { %3291 = vpow2.f32 %v3166_v17 }
 0x7a8   :  { %v3286_v18 = vpop.eup %3285 }
 0x7a9   :  { %v2484_v19 = vadd.f32 1.0, %v3286_v18 }
 0x7aa   :  { %v3288_v20 = vpop.eup %3287 }
 0x7ab   :  { %3293 = vrcp.f32 %v2484_v19  ;;  %v2490_v21 = vadd.f32 1.0, %v3288_v20  ;;  %v3290_v23 = vpop.eup %3289 }
 0x7ac   :  { %v3292_v24 = vpop.eup %3291 }
 0x7ad   :  { %3295 = vrcp.f32 %v2490_v21  ;;  %v2497_v28 = vadd.f32 1.0, %v3292_v24 }
 0x7af   :  { %3297 = vrcp.f32 %v2497_v28 }
 0x7b8   :  { %v3294_v25 = vpop.eup %3293 }
 0x7b9   :  { %v2501_v26 = vmul.f32 %v3294_v25, %v3290_v23 }
 0x7ba   :  { %v3296_v27 = vpop.eup %3295 }
 0x7bb   :  { %v2500_v29 = vmul.f32 %v3296_v27, %v4926_v33  ;;  %v2698_v33 = vld [vmem:[%s5118_s5 + $0x98] sm:$0xff] }
 0x7bc   :  { %v3298_v38 = vpop.eup %3297 }
 0x7bd   :  { %v4998_v30 = vadd.f32 %v2501_v26, %v2500_v29 }
 0x7bf   :  { %3299 = vtanh.f32 %v4998_v30 }
 0x7cc   :  { %v3300_v10 = vpop.eup %3299 }
 0x7cd   :  { %v2504_v57 = vmul.f32 %v3300_v10, %v3298_v38 }
 0x7cf   :  { %2574 = vmatmul.mubr.f32.vlgmr.msra.gmra.mxu0 %v2504_v57  ;;  %2645 = vmatmul.mubr.f32.vlgmr.msra.gmra.mxu1 %v2504_v57  ;;  %v2711_v57 = vld [vmem:[%s5119_s6] sm:$0x3] }
 0x7d0   :  { %2787 = vmatprep.mubr.f32.mxu0 %v5388_v12  ;;  %2724 = vmatpush1.msra.mxu0 %v2709_v34  ;;  %v5399_v34 = vsub.s32 0, %v5398_v7 }
 0x7d1   :  { %2725 = vmatprep.subr.mxu0 %v2708_v55 }
 0x7d2   :  { %2726 = vmatpush1.msra.mxu0 %v2707_v53  ;;  %v2716_v55 = vrot.slane %v2711_v57, %v5399_v34  ;;  %v5400_v53 = vsub.s32 1, %v5398_v7 }
 0x7d3   :  { %2727 = vmatprep.subr.mxu0 %v2706_v54 }
 0x7d4   :  { %2728 = vmatpush1.msra.mxu0 %v2705_v59  ;;  %v2720_v54 = vrot.slane %v2711_v57, %v5400_v53 }
 0x7d5   :  { %2729 = vmatprep.subr.mxu0 %v2704_v56 }
 0x7d6   :  { %2730 = vmatpush1.msra.mxu0 %v2703_v60 }
 0x7d7   :  { %2731 = vmatprep.subr.mxu0 %v2702_v52 }
 0x7d8   :  { %2732 = vmatpush1.msra.mxu0 %v2701_v36 }
 0x7d9   :  { %2733 = vmatprep.subr.mxu0 %v2700_v0 }
 0x7da   :  { %2734 = vmatpush1.msra.mxu0 %v2699_v9 }
 0x7db   :  { %2735 = vmatprep.subr.mxu0 %v2698_v33 }
 0x7dc   :  { %2736 = vmatpush1.msra.mxu0 %v2697_v32 }
 0x7dd   :  { %2737 = vmatprep.subr.mxu0 %v2696_v46 }
 0x7de   :  { %2738 = vmatpush1.msra.mxu0 %v2695_v61 }
 0x7df   :  { %2739 = vmatprep.subr.mxu0 %v2694_v31 }
 0x7e0   :  { %2740 = vmatpush1.msra.mxu0 %v2693_v22 }
 0x7e1   :  { %2741 = vmatprep.subr.mxu0 %v2692_v13 }
 0x7e2   :  { %2742 = vmatpush1.msra.mxu0 %v2691_v40 }
 0x7e3   :  { %2743 = vmatprep.subr.mxu0 %v2690_v43 }
 0x7e4   :  { %2744 = vmatpush1.msra.mxu0 %v2689_v41 }
 0x7e5   :  { %2745 = vmatprep.subr.mxu0 %v2688_v39 }
 0x7e6   :  { %2746 = vmatpush1.msra.mxu0 %v2687_v37 }
 0x7e7   :  { %2747 = vmatprep.subr.mxu0 %v2686_v50 }
 0x7e8   :  { %2748 = vmatpush1.msra.mxu0 %v2685_v4 }
 0x7e9   :  { %2749 = vmatprep.subr.mxu0 %v2684_v44 }
 0x7ea   :  { %2750 = vmatpush1.msra.mxu0 %v2683_v48 }
 0x7eb   :  { %2751 = vmatprep.subr.mxu0 %v2682_v58 }
 0x7ec   :  { %2752 = vmatpush1.msra.mxu0 %v2681_v45 }
 0x7ed   :  { %2753 = vmatprep.subr.mxu0 %v2680_v35 }
 0x7ee   :  { %2754 = vmatpush1.msra.mxu0 %v2679_v11 }
 0x88f   :  { %v2575_v12 = vpop.f32.mrf.mxu0  ;;  %v2646_v63 = vpop.f32.mrf.mxu1 }
 0x890   :  { %v2651_v15 = vadd.f32 %v2575_v12, %v5394_v14  ;;  %v2653_v8 = vadd.f32 %v2646_v63, %v5397_v6 }
 0x891   :  { %v2577_v49 = vpop.f32.mrf.mxu0  ;;  %v2648_v2 = vpop.f32.mrf.mxu1 }
 0x892   :  { %v3167_v47 = vmul.f32 -1.442695, %v2651_v15  ;;  %v2652_v62 = vadd.f32 %v2577_v49, %v5395_v42  ;;  %v2654_v5 = vadd.f32 %v2648_v2, %v5396_v3 }
 0x894   :  { %3301 = vpow2.f32 %v3167_v47  ;;  %v3168_v1 = vmul.f32 -1.442695, %v2652_v62  ;;  %v3169_v51 = vmul.f32 -1.442695, %v2654_v5 }
 0x896   :  { %3303 = vpow2.f32 %v3168_v1 }
 0x897   :  { %3305 = vtanh.f32 %v2653_v8 }
 0x898   :  { %3307 = vpow2.f32 %v3169_v51 }
 0x8a1   :  { %v3302_v16 = vpop.eup %3301 }
 0x8a2   :  { %v2658_v17 = vadd.f32 1.0, %v3302_v16 }
 0x8a3   :  { %v3304_v18 = vpop.eup %3303 }
 0x8a4   :  { %3309 = vrcp.f32 %v2658_v17  ;;  %v2664_v19 = vadd.f32 1.0, %v3304_v18  ;;  %v3306_v20 = vpop.eup %3305 }
 0x8a5   :  { %v3308_v21 = vpop.eup %3307 }
 0x8a6   :  { %3311 = vrcp.f32 %v2664_v19  ;;  %v2671_v26 = vadd.f32 1.0, %v3308_v21 }
 0x8a8   :  { %3313 = vrcp.f32 %v2671_v26 }
 0x8b1   :  { %v3310_v23 = vpop.eup %3309 }
 0x8b2   :  { %v2675_v24 = vmul.f32 %v3310_v23, %v3306_v20 }
 0x8b3   :  { %v3312_v25 = vpop.eup %3311 }
 0x8b4   :  { %v2674_v27 = vmul.f32 %v3312_v25, %v4998_v30 }
 0x8b5   :  { %v3314_v29 = vpop.eup %3313 }
 0x8b6   :  { %v2676_v28 = vadd.f32 %v2675_v24, %v2674_v27 }
 0x8b8   :  { %3315 = vtanh.f32 %v2676_v28 }
 0x8c5   :  { %v3316_v38 = vpop.eup %3315 }
 0x8c6   :  { %v2678_v10 = vmul.f32 %v3316_v38, %v3314_v29 }
 0x8c8   :  { %2788 = vmatmul.mubr.f32.vlgmr.msra.gmra.mxu0 %v2678_v10 }
 0x988   :  { %v2789_v59 = vpop.f32.mrf.mxu0 }
 0x989   :  { %v2790_v56 = vadd.f32 %v2789_v59, %v2716_v55 }
 0x98a   :  { %v2791_v30 = vpop.f32.mrf.mxu0 }
 0x98b   :  { %v2794_v60 = vmax.f32 %v2790_v56, 0.0  ;;  %v2792_v52 = vadd.f32 %v2791_v30, %v2720_v54 }
 0x98d   :  { %2796 = vst [vmem:[#allocation8] sm:$0xff] %v2794_v60  ;;  %v2795_v36 = vmax.f32 %v2792_v52, 0.0 }
 0x98f   :  { %2797 = vst [vmem:[#allocation8 + $0x8] sm:$0xff] %v2795_v36 }
 0x990   :  { %3404 = shalt.err (!%p3401_p9)
}
 0x991   :  { %2807 = dma.vmem_to_hbm [thread:$0]  %s2805_s11, 256, %s5120_s7, [#allocation6]  }
 0x992   :  { %3447 = dma.done.wait [#allocation6], 256  }
 0x993   :  { %3448 = vsyncadd [#allocation6], 4294967040 }
 0x994   :  { %2811 = vsyncpa [#allocation6], 1 }
 0x995   :  { %2812 = vsyncpa [#allocation7], 1 }
 0x996   :  { %2813 = vsyncmov [#allocation4] }
 0x999   :  { %s2814_s14 = vpop.sfrf %2813 }
 0x99a   :  { %p3170_p10 = scmp.ne.s32.totalorder %s2814_s14, 0 }
 0x99c   :  { %2818 = shalt.err (%p3170_p10)  }
 0x99d   :  { %2820 = vsyncmov [#allocation4 + $0x1] }
 0x9a0   :  { %s2821_s2 = vpop.sfrf %2820 }
 0x9a1   :  { %p3171_p11 = scmp.ne.s32.totalorder %s2821_s2, 0 }
 0x9a3   :  { %2825 = shalt.err (%p3171_p11)  }
 0x9a4   :  { %2827 = vsyncmov [#allocation4 + $0x2] }
 0x9a7   :  { %s2828_s15 = vpop.sfrf %2827 }
 0x9a8   :  { %p3172_p12 = scmp.ne.s32.totalorder %s2828_s15, 0 }
 0x9aa   :  { %2832 = shalt.err (%p3172_p12)  }
 0x9ab   :  { %2834 = vsyncmov [#allocation4 + $0x3] }
 0x9ae   :  { %s2835_s16 = vpop.sfrf %2834 }
 0x9af   :  { %p3173_p13 = scmp.ne.s32.totalorder %s2835_s16, 0 }
 0x9b1   :  { %2839 = shalt.err (%p3173_p13)  }
 0x9b2   :  { %2841 = vsyncmov [#allocation4 + $0x4] }
 0x9b5   :  { %s2842_s7 = vpop.sfrf %2841 }
 0x9b6   :  { %p3174_p0 = scmp.ne.s32.totalorder %s2842_s7, 0 }
 0x9b8   :  { %2846 = shalt.err (%p3174_p0)  }
 0x9b9   :  { %2848 = vsyncmov [#allocation4 + $0x5] }
 0x9bc   :  { %s2849_s17 = vpop.sfrf %2848 }
 0x9bd   :  { %p3175_p1 = scmp.ne.s32.totalorder %s2849_s17, 0 }
 0x9bf   :  { %2853 = shalt.err (%p3175_p1)  }
 0x9c0   :  { %2855 = vsyncmov [#allocation4 + $0x6] }
 0x9c3   :  { %s2856_s18 = vpop.sfrf %2855 }
 0x9c4   :  { %p3176_p2 = scmp.ne.s32.totalorder %s2856_s18, 0 }
 0x9c6   :  { %2860 = shalt.err (%p3176_p2)  }
 0x9c7   :  { %2862 = vsyncmov [#allocation4 + $0x7] }
 0x9ca   :  { %s2863_s19 = vpop.sfrf %2862 }
 0x9cb   :  { %p3177_p3 = scmp.ne.s32.totalorder %s2863_s19, 0 }
 0x9cd   :  { %2867 = shalt.err (%p3177_p3)  }
 0x9ce   :  { %2869 = vsyncmov [#allocation4 + $0x8] }
 0x9d1   :  { %s2870_s20 = vpop.sfrf %2869 }
 0x9d2   :  { %p3178_p4 = scmp.ne.s32.totalorder %s2870_s20, 0 }
 0x9d4   :  { %2874 = shalt.err (%p3178_p4)  }
 0x9d5   :  { %2876 = vsyncmov [#allocation4 + $0x9] }
 0x9d8   :  { %s2877_s1 = vpop.sfrf %2876 }
 0x9d9   :  { %p3179_p5 = scmp.ne.s32.totalorder %s2877_s1, 0 }
 0x9db   :  { %2881 = shalt.err (%p3179_p5)  }
 0x9dc   :  { %2883 = vsyncmov [#allocation4 + $0xa] }
 0x9df   :  { %s2884_s21 = vpop.sfrf %2883 }
 0x9e0   :  { %p3180_p6 = scmp.ne.s32.totalorder %s2884_s21, 0 }
 0x9e2   :  { %2888 = shalt.err (%p3180_p6)  }
 0x9e3   :  { %2890 = vsyncmov [#allocation4 + $0xb] }
 0x9e6   :  { %s2891_s22 = vpop.sfrf %2890 }
 0x9e7   :  { %p3181_p7 = scmp.ne.s32.totalorder %s2891_s22, 0 }
 0x9e9   :  { %2895 = shalt.err (%p3181_p7)  }
 0x9ea   :  { %2897 = vsyncmov [#allocation4 + $0xc] }
 0x9ed   :  { %s2898_s23 = vpop.sfrf %2897 }
 0x9ee   :  { %p3182_p8 = scmp.ne.s32.totalorder %s2898_s23, 0 }
 0x9f0   :  { %2902 = shalt.err (%p3182_p8)  }
 0x9f1   :  { %2904 = vsyncmov [#allocation4 + $0xd] }
 0x9f4   :  { %s2905_s24 = vpop.sfrf %2904 }
 0x9f5   :  { %p3183_p9 = scmp.ne.s32.totalorder %s2905_s24, 0 }
 0x9f7   :  { %2909 = shalt.err (%p3183_p9)  }
 0x9f8   :  { %2911 = vsyncmov [#allocation4 + $0xe] }
 0x9fb   :  { %s2912_s25 = vpop.sfrf %2911 }
 0x9fc   :  { %p3184_p10 = scmp.ne.s32.totalorder %s2912_s25, 0 }
 0x9fe   :  { %2916 = shalt.err (%p3184_p10)  }
 0x9ff   :  { %2918 = vsyncmov [#allocation4 + $0xf] }
 0xa02   :  { %s2919_s26 = vpop.sfrf %2918 }
 0xa03   :  { %p3185_p11 = scmp.ne.s32.totalorder %s2919_s26, 0 }
 0xa05   :  { %2923 = shalt.err (%p3185_p11)  }

</bundles_post_ra>
